<compile_context>
chip_gen: v7x
topology: tpu7x:2x2x1
jax: 0.10.0
libtpu: 0.0.40
codegen_flags: <defaults>
</compile_context>

<pallas_src>
import functools

import numpy as np
import jax
import jax.numpy as jnp
from jax import lax
from jax.experimental import pallas as pl
from jax.experimental.pallas import tpu as pltpu


def _mxu_row_tile():
    # 256-row tiles feed the 2x256^2 MXUs of v6e/v7x (and halve per-step grid
    # overhead); v5e's 4x128^2 MXU + single vector-store slot prefers 128.
    try:
        kind = jax.devices()[0].device_kind.lower()
    except Exception:
        return 128
    return 256 if ("v6" in kind or "v7" in kind) else 128


# ----------------------------------------------------------------------------
# Pallas kernel: the _contrastive() hot path, row-tiled.
#   cf_row_ref : (TM, Dp)  bf16   row tile of contrast features
#   cf_all_ref : (Np, Dp)  bf16   all contrast features (grid-constant)
#   lab_row_ref: (TM, 1)   int32  labels of the row tile (-1 for padded rows)
#   lab_col_ref: (1, Np)   int32  labels of all columns  (-1 for padded rows)
#   inv_pos_ref: (TM, 1)   f32    exact 1 / (#positives excl. self); 0 for pads
#   out_ref    : (1, 8, 128) f32  per-tile partial loss sum (lane-dense broadcast)
# ----------------------------------------------------------------------------
def _contrastive_kernel(cf_row_ref, cf_all_ref, lab_row_ref, lab_col_ref,
                        inv_pos_ref, out_ref, *, inv_temp, loss_scale, n_pad):
    a = cf_row_ref[...]                                   # (TM, Dp) bf16
    b = cf_all_ref[...]                                   # (Np, Dp) bf16

    # Fold 1/temperature into the small (TM, Dp) operand (not the (TM, Np) product).
    af = a.astype(jnp.float32)
    a_scaled = (af * inv_temp).astype(jnp.bfloat16)
    asf = a_scaled.astype(jnp.float32)

    # anchor_dot_contrast tile = (cf_row @ cf_all.T) / temperature
    # (MXU, bf16 in, f32 accumulate).
    adc = lax.dot_general(a_scaled, b, (((1,), (1,)), ((), ())),
                          preferred_element_type=jnp.float32)        # (TM, Np)

    lab_r = lab_row_ref[...]                              # (TM, 1) int32
    lab_c = lab_col_ref[...]                              # (1, Np) int32
    same = (lab_r == lab_c).astype(jnp.float32)           # (TM, Np)
    valid_row = lab_r >= 0                                # (TM, 1) pad rows -> False

    # logits = adc - rowmax(adc)   (rowmax includes the diagonal, like the ref)
    logits_max = jnp.max(adc, axis=1, keepdims=True)      # (TM, 1)
    logits = adc - logits_max
    e = jnp.exp(logits)                                   # (TM, Np)

    # negatives = sum over *real* columns with a different label.
    # Padded columns have all-zero features -> logits exactly -rowmax, so their
    # contribution to rowsum(e) is n_pad * exp(-rowmax); remove analytically.
    sum_e = jnp.sum(e, axis=1, keepdims=True)             # (TM, 1)
    if n_pad:
        sum_e = sum_e - n_pad * jnp.exp(-logits_max)
    sum_e_same = jnp.sum(e * same, axis=1, keepdims=True)  # (TM, 1)
    neg_logits = sum_e - sum_e_same

    log_prob = logits - jnp.log(e + neg_logits + 1e-8)    # (TM, Np)
    masked_sum = jnp.sum(same * log_prob, axis=1, keepdims=True)  # incl. diagonal

    # Diagonal (self-similarity) correction as a (TM,1) vector -- no N x N iota.
    # Computed from the *same* bf16 values the MXU multiplied so it matches the
    # diagonal term inside masked_sum up to f32 accumulation order.
    diag_adc = jnp.sum(asf * af, axis=1, keepdims=True)
    diag_logits = diag_adc - logits_max
    diag_log_prob = diag_logits - jnp.log(jnp.exp(diag_logits) + neg_logits + 1e-8)

    pos_sum = masked_sum - diag_log_prob                  # positives exclude diagonal
    mean_log_prob_pos = pos_sum * inv_pos_ref[...]        # exact precomputed 1/pos_cnt

    row_loss = jnp.where(valid_row, loss_scale * mean_log_prob_pos, 0.0)
    out_ref[...] = jnp.broadcast_to(jnp.sum(row_loss), (1, 8, 128))


def _contrastive_pallas(feats_, labels_, temperature, base_temperature):
    """feats_: (A, V, D) float32, labels_: (A,) int -> scalar loss."""
    A, V, D = feats_.shape
    N = A * V
    TM = _mxu_row_tile()
    Np = ((N + TM - 1) // TM) * TM                 # pad rows to a multiple of TM
    Dp = ((D + 127) // 128) * 128                  # pad feature dim to 128 lanes
    num_tiles = Np // TM
    n_pad = Np - N

    # contrast_feature = cat(unbind(feats_, dim=1), dim=0)  -> view-major rows
    cf = jnp.transpose(feats_, (1, 0, 2)).reshape(N, D).astype(jnp.float32)
    cf = jnp.pad(cf, ((0, n_pad), (0, Dp - D)))
    cf_bf16 = cf.astype(jnp.bfloat16)

    lab_a = labels_.astype(jnp.int32)                      # (A,)
    lab = jnp.tile(lab_a, (V,))                            # lab[v*A + a] = labels_[a]
    lab = jnp.pad(lab, (0, n_pad), constant_values=-1)     # pads never match real labels
    lab_row = lab.reshape(Np, 1)
    lab_col = lab.reshape(1, Np)

    # pos_cnt per row = V * multiplicity(label among anchors) - 1 (excl. self).
    # Pure function of labels_ -> computed once here (tiny O(A^2) int op), so the
    # kernel drops one (TM, Np) masked reduction and uses an exact reciprocal.
    cnt = jnp.sum((lab_a[:, None] == lab_a[None, :]).astype(jnp.int32), axis=1)
    pos_cnt = (V * cnt - 1).astype(jnp.float32)
    inv_pos_a = jnp.where(pos_cnt > 0.0, 1.0 / pos_cnt, 0.0)
    inv_pos = jnp.pad(jnp.tile(inv_pos_a, (V,)), (0, n_pad)).reshape(Np, 1)

    kernel = functools.partial(
        _contrastive_kernel,
        inv_temp=float(1.0 / temperature),
        loss_scale=float(-(temperature / base_temperature)),
        n_pad=int(n_pad))

    # VMEM budget: double-buffered row tiles + resident cf matrix + ~8 (TM, Np)
    # f32 elementwise temporaries; never request below the scoped default.
    est = (2 * TM * Dp * 2 + 2 * Np * Dp * 2          # cf row tile + full matrix (bf16)
           + 2 * TM * 128 * 4 + 2 * 8 * Np * 4        # row / col labels (lane-padded)
           + 2 * TM * 128 * 4 + 2 * 8 * 128 * 4       # inv_pos + output blocks
           + 8 * TM * Np * 4)                         # elementwise temporaries
    vmem_limit = int(min(max(3 * est // 2, 32 * 1024 * 1024), 48 * 1024 * 1024))

    cost = pl.CostEstimate(
        flops=2 * Np * Np * Dp,
        transcendentals=2 * Np * Np,
        bytes_accessed=2 * Np * Dp * 2 + 3 * Np * 4 + num_tiles * 8 * 128 * 4)

    def _call(single_buffer_constants):
        def const_spec(shape):
            # Grid-constant block (index_map is always (0,0)): one VMEM buffer
            # suffices, halving the dominant resident footprint.
            if single_buffer_constants:
                return pl.BlockSpec(shape, lambda i: (0, 0),
                                    pipeline_mode=pl.Buffered(1))
            return pl.BlockSpec(shape, lambda i: (0, 0))

        return pl.pallas_call(
            kernel,
            out_shape=jax.ShapeDtypeStruct((num_tiles, 8, 128), jnp.float32),
            grid=(num_tiles,),
            in_specs=[pl.BlockSpec((TM, Dp), lambda i: (i, 0)),   # row tile
                      const_spec((Np, Dp)),                       # full matrix (resident)
                      pl.BlockSpec((TM, 1), lambda i: (i, 0)),    # row labels
                      const_spec((1, Np)),                        # column labels
                      pl.BlockSpec((TM, 1), lambda i: (i, 0))],   # 1/pos_cnt
            out_specs=pl.BlockSpec((1, 8, 128), lambda i: (i, 0, 0)),
            compiler_params=pltpu.CompilerParams(
                dimension_semantics=("parallel",),
                vmem_limit_bytes=vmem_limit),
            cost_estimate=cost,
        )(cf_bf16, cf_bf16, lab_row, lab_col, inv_pos)

    try:
        partials = _call(True)
    except Exception:
        # pipeline_mode / Buffered(1) unsupported on this jax -> default depth-2.
        partials = _call(False)

    return jnp.sum(partials[:, 0, 0]) / N


# ----------------------------------------------------------------------------
# Plain-JAX glue: nearest interpolation, argmax, reshapes
# ----------------------------------------------------------------------------
def _interpolate_nearest(x, out_hw):
    """x: (B, C, H, W) -> (B, C, oh, ow), PyTorch 'nearest' semantics."""
    B, C, H, W = x.shape
    oh, ow = out_hw
    ridx = (jnp.arange(oh) * H // oh).astype(jnp.int32)
    cidx = (jnp.arange(ow) * W // ow).astype(jnp.int32)
    return x[:, :, ridx[:, None], cidx[None, :]]


# ----------------------------------------------------------------------------
# Host-side hard anchor sampling -> returns INDICES only (feats stay on device).
# TODO(synk): torch.unique / nonzero / randperm with dynamic output shapes have
# no clean Pallas equivalent; done deterministically on host from the small
# integer label/prediction maps.  For training loops, cache these indices and
# refresh every K steps (or build a fixed-shape device-side sampler) so this
# host round-trip does not gate every step.
# ----------------------------------------------------------------------------
def _hard_anchor_sample_indices(y_hat, y, *, ignore_label, max_samples, max_views, rng):
    batch_size = y_hat.shape[0]
    classes = []
    total_classes = 0
    for ii in range(batch_size):
        this_y = y_hat[ii]
        this_classes = np.unique(this_y)
        this_classes = [c for c in this_classes if c != ignore_label]
        this_classes = [c for c in this_classes
                        if int((this_y == c).sum()) > max_views]
        classes.append(this_classes)
        total_classes += len(this_classes)
    if total_classes == 0:
        return None, None, None

    n_view = max_samples // total_classes
    n_view = min(n_view, max_views)

    batch_idx = np.zeros((total_classes,), dtype=np.int32)
    pix_idx = np.zeros((total_classes, n_view), dtype=np.int32)
    y_ = np.zeros((total_classes,), dtype=np.int32)
    ptr = 0
    for ii in range(batch_size):
        this_y_hat = y_hat[ii]
        this_y = y[ii]
        for cls_id in classes[ii]:
            hard_indices = np.nonzero((this_y_hat == cls_id) & (this_y != cls_id))[0]
            easy_indices = np.nonzero((this_y_hat == cls_id) & (this_y == cls_id))[0]
            num_hard = hard_indices.shape[0]
            num_easy = easy_indices.shape[0]
            if num_hard >= n_view / 2 and num_easy >= n_view / 2:
                num_hard_keep = n_view // 2
                num_easy_keep = n_view - num_hard_keep
            elif num_hard >= n_view / 2:
                num_easy_keep = num_easy
                num_hard_keep = n_view - num_easy_keep
            elif num_easy >= n_view / 2:
                num_hard_keep = num_hard
                num_easy_keep = n_view - num_hard_keep
            else:
                raise Exception("this should never be touched! {} {} {}".format(
                    num_hard, num_easy, n_view))
            perm = rng.permutation(num_hard)
            hard_sel = hard_indices[perm[:num_hard_keep]]
            perm = rng.permutation(num_easy)
            easy_sel = easy_indices[perm[:num_easy_keep]]
            indices = np.concatenate((hard_sel, easy_sel), axis=0)
            batch_idx[ptr] = ii
            pix_idx[ptr, :] = indices
            y_[ptr] = int(cls_id)
            ptr += 1
    return batch_idx, pix_idx, y_


# ----------------------------------------------------------------------------
# Full forward (PixelContrastLoss.forward)
# ----------------------------------------------------------------------------
def pixel_contrast_loss(feats, labels, predict, *,
                        temperature=0.1, base_temperature=0.07,
                        ignore_label=255, max_samples=1024, max_views=100,
                        sample_seed=0):
    B, C, H, W = feats.shape
    labels_r = _interpolate_nearest(labels.astype(jnp.float32)[:, None], (H, W))
    labels_r = labels_r[:, 0].astype(jnp.int32)                     # (B, H, W)
    pred_cls = jnp.argmax(predict, axis=1).astype(jnp.float32)[:, None]
    pred_r = _interpolate_nearest(pred_cls, (H, W))[:, 0].astype(jnp.int32)

    # Only the small int maps cross the host boundary (never the feature tensor);
    # fetch both in a single device_get to pay the sync once.
    labels_flat, pred_flat = jax.device_get(
        (labels_r.reshape(B, -1), pred_r.reshape(B, -1)))

    rng = np.random.RandomState(sample_seed)
    batch_idx, pix_idx, labels_ = _hard_anchor_sample_indices(
        np.asarray(labels_flat), np.asarray(pred_flat),
        ignore_label=ignore_label, max_samples=max_samples,
        max_views=max_views, rng=rng)
    if batch_idx is None:
        raise ValueError("no valid classes found for contrastive sampling")

    # On-device gather of only the sampled pixels: (A, n_view, C)
    feats_bhwc = jnp.transpose(feats, (0, 2, 3, 1)).reshape(B, H * W, C)
    feats_ = feats_bhwc[jnp.asarray(batch_idx)[:, None], jnp.asarray(pix_idx), :]

    loss = _contrastive_pallas(feats_, jnp.asarray(labels_),
                               temperature, base_temperature)
    return loss, feats_, labels_


# ----------------------------------------------------------------------------
# NumPy reference of _contrastive (for correctness check)
# ----------------------------------------------------------------------------
def _contrastive_ref(feats_, labels_, temperature, base_temperature):
    A, V, D = feats_.shape
    N = A * V
    cf = np.transpose(feats_, (1, 0, 2)).reshape(N, D).astype(np.float32)
    lab = np.tile(labels_.astype(np.float32), V)
    mask = (lab[:, None] == lab[None, :]).astype(np.float32)
    adc = cf @ cf.T / temperature
    logits = adc - adc.max(axis=1, keepdims=True)
    logits_mask = 1.0 - np.eye(N, dtype=np.float32)
    pos_mask = mask * logits_mask
    neg_mask = 1.0 - mask
    exp_logits = np.exp(logits)
    neg_logits = (exp_logits * neg_mask).sum(1, keepdims=True)
    log_prob = logits - np.log(exp_logits + neg_logits + 1e-8)
    mlp = (pos_mask * log_prob).sum(1) / pos_mask.sum(1)
    return float((-(temperature / base_temperature) * mlp).mean())


if __name__ == "__main__":
    key = jax.random.PRNGKey(0)
    k_feat, k_noise = jax.random.split(key)

    # Small shapes: B=2, C=32 feature dim, 16x16 feature map, 3 classes,
    # labels given at 32x32 (exercises the nearest-neighbor resize path).
    B, C, H, W = 2, 32, 16, 16
    n_cls = 3
    Hl = Wl = 32

    feats = jax.random.normal(k_feat, (B, C, H, W), dtype=jnp.float32)
    # L2-normalize along channel dim (typical for pixel-contrast embeddings)
    feats = feats / (jnp.linalg.norm(feats, axis=1, keepdims=True) + 1e-6)

    # Block-structured integer labels over 3 classes (deterministic).
    rr = jnp.arange(Hl)[:, None]
    cc = jnp.arange(Wl)[None, :]
    lab0 = ((rr // 11) + (cc // 11)) % n_cls
    lab1 = ((rr // 13) * 2 + (cc // 9)) % n_cls
    labels = jnp.stack([lab0, lab1], axis=0).astype(jnp.int32)       # (B, Hl, Wl)

    # Prediction logits mostly consistent with labels (some hard pixels).
    lab_hw = _interpolate_nearest(labels.astype(jnp.float32)[:, None], (H, W))
    lab_hw = lab_hw[:, 0].astype(jnp.int32)
    onehot = jax.nn.one_hot(lab_hw, n_cls, axis=1, dtype=jnp.float32)  # (B,n_cls,H,W)
    predict = 3.0 * onehot + 1.5 * jax.random.normal(k_noise, (B, n_cls, H, W),
                                                     dtype=jnp.float32)

    # Small sampling budget so the demo stays tiny (defaults: 1024 / 100).
    loss, feats_, labels_ = pixel_contrast_loss(
        feats, labels, predict,
        temperature=0.1, base_temperature=0.07, ignore_label=255,
        max_samples=128, max_views=16, sample_seed=0)
    loss = jax.block_until_ready(loss)

    feats_np = np.asarray(feats_)
    ref = _contrastive_ref(feats_np, np.asarray(labels_), 0.1, 0.07)
    if not np.allclose(float(loss), ref, rtol=5e-2, atol=5e-2):
        raise AssertionError(f"mismatch: pallas={float(loss)} ref={ref}")

    print("KERNEL_OK")
</pallas_src>

<mosaic_0001>
module attributes {stable_mosaic.version = 11 : i64} {
  func.func @_contrastive_kernel(%arg0: i32, %arg1: memref<128x128xbf16, #tpu.memory_space<vmem>>, %arg2: memref<128x128xbf16, #tpu.memory_space<vmem>>, %arg3: memref<128x1xi32, #tpu.memory_space<vmem>>, %arg4: memref<1x128xi32, #tpu.memory_space<vmem>>, %arg5: memref<128x1xf32, #tpu.memory_space<vmem>>, %arg6: memref<1x8x128xf32, #tpu.memory_space<vmem>>) attributes {dimension_semantics = [#tpu.dimension_semantics<parallel>], iteration_bounds = array<i64: 1>, scalar_prefetch = 0 : i64, scratch_operands = 0 : i64, tpu.core_type = #tpu.core_type<tc>, window_params = [{transform_indices = @transform_0, window_bounds = array<i64: 128, 128>}, {pipeline_mode = #tpu.pipeline_mode<synchronous>, transform_indices = @transform_1, window_bounds = array<i64: 128, 128>}, {transform_indices = @transform_2, window_bounds = array<i64: 128, 1>}, {pipeline_mode = #tpu.pipeline_mode<synchronous>, transform_indices = @transform_3, window_bounds = array<i64: 1, 128>}, {transform_indices = @transform_4, window_bounds = array<i64: 128, 1>}, {transform_indices = @transform_5, window_bounds = array<i64: 1, 8, 128>}]} {
    %c0 = arith.constant 0 : index
    %c0_0 = arith.constant 0 : index
    %0 = vector.load %arg1[%c0, %c0_0] : memref<128x128xbf16, #tpu.memory_space<vmem>>, vector<128x128xbf16>
    %c0_1 = arith.constant 0 : index
    %c0_2 = arith.constant 0 : index
    %1 = vector.load %arg2[%c0_1, %c0_2] : memref<128x128xbf16, #tpu.memory_space<vmem>>, vector<128x128xbf16>
    %2 = arith.extf %0 : vector<128x128xbf16> to vector<128x128xf32>
    %cst = arith.constant 1.000000e+01 : f32
    %3 = vector.broadcast %cst : f32 to vector<128x128xf32>
    %4 = arith.mulf %2, %3 : vector<128x128xf32>
    %5 = arith.truncf %4 : vector<128x128xf32> to vector<128x128xbf16>
    %6 = arith.extf %5 : vector<128x128xbf16> to vector<128x128xf32>
    %cst_3 = arith.constant dense<0.000000e+00> : vector<128x128xf32>
    %7 = tpu.matmul %5, %1, %cst_3 {dimension_numbers = #tpu.dot_dimension_numbers<[1], [1], [0], [0], [0, 0, 1, 0], [], []>} : vector<128x128xbf16>, vector<128x128xbf16>, vector<128x128xf32> -> vector<128x128xf32>
    %c0_4 = arith.constant 0 : index
    %c0_5 = arith.constant 0 : index
    %8 = vector.load %arg3[%c0_4, %c0_5] : memref<128x1xi32, #tpu.memory_space<vmem>>, vector<128x1xi32>
    %c0_6 = arith.constant 0 : index
    %c0_7 = arith.constant 0 : index
    %9 = vector.load %arg4[%c0_6, %c0_7] : memref<1x128xi32, #tpu.memory_space<vmem>>, vector<1x128xi32>
    %10 = vector.broadcast %8 : vector<128x1xi32> to vector<128x128xi32>
    %11 = vector.broadcast %9 : vector<1x128xi32> to vector<128x128xi32>
    %12 = arith.cmpi eq, %10, %11 : vector<128x128xi32>
    %13 = arith.extui %12 : vector<128x128xi1> to vector<128x128xi32>
    %14 = arith.sitofp %13 : vector<128x128xi32> to vector<128x128xf32>
    %c0_i32 = arith.constant 0 : i32
    %15 = vector.broadcast %c0_i32 : i32 to vector<128x1xi32>
    %16 = arith.cmpi sge, %8, %15 : vector<128x1xi32>
    %cst_8 = arith.constant dense<0xFF800000> : vector<128xf32>
    %17 = vector.multi_reduction <maximumf>, %7, %cst_8 [1] : vector<128x128xf32> to vector<128xf32>
    %18 = vector.shape_cast %17 : vector<128xf32> to vector<128x1xf32>
    %19 = vector.broadcast %18 : vector<128x1xf32> to vector<128x128xf32>
    %20 = arith.subf %7, %19 : vector<128x128xf32>
    %21 = math.exp %20 : vector<128x128xf32>
    %cst_9 = arith.constant dense<0.000000e+00> : vector<128xf32>
    %22 = vector.multi_reduction <add>, %21, %cst_9 [1] : vector<128x128xf32> to vector<128xf32>
    %23 = vector.shape_cast %22 : vector<128xf32> to vector<128x1xf32>
    %cst_10 = arith.constant 0.000000e+00 : f32
    %24 = vector.broadcast %cst_10 : f32 to vector<128x1xf32>
    %25 = arith.subf %24, %18 : vector<128x1xf32>
    %26 = math.exp %25 : vector<128x1xf32>
    %cst_11 = arith.constant 3.200000e+01 : f32
    %27 = vector.broadcast %cst_11 : f32 to vector<128x1xf32>
    %28 = arith.mulf %27, %26 : vector<128x1xf32>
    %29 = arith.subf %23, %28 : vector<128x1xf32>
    %30 = arith.mulf %21, %14 : vector<128x128xf32>
    %cst_12 = arith.constant dense<0.000000e+00> : vector<128xf32>
    %31 = vector.multi_reduction <add>, %30, %cst_12 [1] : vector<128x128xf32> to vector<128xf32>
    %32 = vector.shape_cast %31 : vector<128xf32> to vector<128x1xf32>
    %33 = arith.subf %29, %32 : vector<128x1xf32>
    %34 = vector.broadcast %33 : vector<128x1xf32> to vector<128x128xf32>
    %35 = arith.addf %21, %34 : vector<128x128xf32>
    %cst_13 = arith.constant 9.99999993E-9 : f32
    %36 = vector.broadcast %cst_13 : f32 to vector<128x128xf32>
    %37 = arith.addf %35, %36 : vector<128x128xf32>
    %38 = math.log %37 : vector<128x128xf32>
    %39 = arith.subf %20, %38 : vector<128x128xf32>
    %40 = arith.mulf %14, %39 : vector<128x128xf32>
    %cst_14 = arith.constant dense<0.000000e+00> : vector<128xf32>
    %41 = vector.multi_reduction <add>, %40, %cst_14 [1] : vector<128x128xf32> to vector<128xf32>
    %42 = vector.shape_cast %41 : vector<128xf32> to vector<128x1xf32>
    %43 = arith.mulf %6, %2 : vector<128x128xf32>
    %cst_15 = arith.constant dense<0.000000e+00> : vector<128xf32>
    %44 = vector.multi_reduction <add>, %43, %cst_15 [1] : vector<128x128xf32> to vector<128xf32>
    %45 = vector.shape_cast %44 : vector<128xf32> to vector<128x1xf32>
    %46 = arith.subf %45, %18 : vector<128x1xf32>
    %47 = math.exp %46 : vector<128x1xf32>
    %48 = arith.addf %47, %33 : vector<128x1xf32>
    %cst_16 = arith.constant 9.99999993E-9 : f32
    %49 = vector.broadcast %cst_16 : f32 to vector<128x1xf32>
    %50 = arith.addf %48, %49 : vector<128x1xf32>
    %51 = math.log %50 : vector<128x1xf32>
    %52 = arith.subf %46, %51 : vector<128x1xf32>
    %53 = arith.subf %42, %52 : vector<128x1xf32>
    %c0_17 = arith.constant 0 : index
    %c0_18 = arith.constant 0 : index
    %54 = vector.load %arg5[%c0_17, %c0_18] : memref<128x1xf32, #tpu.memory_space<vmem>>, vector<128x1xf32>
    %55 = arith.mulf %53, %54 : vector<128x1xf32>
    %cst_19 = arith.constant -1.42857146 : f32
    %56 = vector.broadcast %cst_19 : f32 to vector<128x1xf32>
    %57 = arith.mulf %56, %55 : vector<128x1xf32>
    %cst_20 = arith.constant 0.000000e+00 : f32
    %58 = vector.broadcast %cst_20 : f32 to vector<128x1xf32>
    %59 = arith.select %16, %57, %58 : vector<128x1xi1>, vector<128x1xf32>
    %60 = vector.shape_cast %59 : vector<128x1xf32> to vector<1x128x1xf32>
    %cst_21 = arith.constant dense<0.000000e+00> : vector<1xf32>
    %61 = vector.multi_reduction <add>, %60, %cst_21 [1, 2] : vector<1x128x1xf32> to vector<1xf32>
    %62 = vector.shape_cast %61 : vector<1xf32> to vector<1x1x1xf32>
    %63 = vector.extract %62[0, 0, 0] : f32 from vector<1x1x1xf32>
    %64 = vector.broadcast %63 : f32 to vector<1x8x128xf32>
    %c0_22 = arith.constant 0 : index
    %c0_23 = arith.constant 0 : index
    %c0_24 = arith.constant 0 : index
    %65 = vector.load %arg6[%c0_22, %c0_23, %c0_24] : memref<1x8x128xf32, #tpu.memory_space<vmem>>, vector<1x8x128xf32>
    tpu.vector_store %arg6[%c0_22, %c0_23, %c0_24], %64 {strides = array<i32>} : memref<1x8x128xf32, #tpu.memory_space<vmem>>, vector<1x8x128xf32>,
    return
  }
  func.func @transform_0(%arg0: i32) -> (i32, i32) {
    %c0_i32 = arith.constant 0 : i32
    %c0_i32_0 = arith.constant 0 : i32
    return %arg0, %c0_i32 : i32, i32
  }
  func.func @transform_1(%arg0: i32) -> (i32, i32) {
    %c0_i32 = arith.constant 0 : i32
    %c0_i32_0 = arith.constant 0 : i32
    %c0_i32_1 = arith.constant 0 : i32
    return %c0_i32, %c0_i32_0 : i32, i32
  }
  func.func @transform_2(%arg0: i32) -> (i32, i32) {
    %c0_i32 = arith.constant 0 : i32
    %c0_i32_0 = arith.constant 0 : i32
    return %arg0, %c0_i32 : i32, i32
  }
  func.func @transform_3(%arg0: i32) -> (i32, i32) {
    %c0_i32 = arith.constant 0 : i32
    %c0_i32_0 = arith.constant 0 : i32
    %c0_i32_1 = arith.constant 0 : i32
    return %c0_i32, %c0_i32_0 : i32, i32
  }
  func.func @transform_4(%arg0: i32) -> (i32, i32) {
    %c0_i32 = arith.constant 0 : i32
    %c0_i32_0 = arith.constant 0 : i32
    return %arg0, %c0_i32 : i32, i32
  }
  func.func @transform_5(%arg0: i32) -> (i32, i32, i32) {
    %c0_i32 = arith.constant 0 : i32
    %c0_i32_0 = arith.constant 0 : i32
    %c0_i32_1 = arith.constant 0 : i32
    return %arg0, %c0_i32, %c0_i32_0 : i32, i32, i32
  }
}

module attributes {stable_mosaic.version = 11 : i64} {
  func.func @_contrastive_kernel(%arg0: i32, %arg1: memref<128x128xbf16, #tpu.memory_space<vmem>>, %arg2: memref<128x128xbf16, #tpu.memory_space<vmem>>, %arg3: memref<128x1xi32, #tpu.memory_space<vmem>>, %arg4: memref<1x128xi32, #tpu.memory_space<vmem>>, %arg5: memref<128x1xf32, #tpu.memory_space<vmem>>, %arg6: memref<1x8x128xf32, #tpu.memory_space<vmem>>) attributes {dimension_semantics = [#tpu.dimension_semantics<parallel>], iteration_bounds = array<i64: 1>, scalar_prefetch = 0 : i64, scratch_operands = 0 : i64, tpu.core_type = #tpu.core_type<tc>, window_params = [{transform_indices = @transform_0, window_bounds = array<i64: 128, 128>}, {pipeline_mode = #tpu.pipeline_mode<synchronous>, transform_indices = @transform_1, window_bounds = array<i64: 128, 128>}, {transform_indices = @transform_2, window_bounds = array<i64: 128, 1>}, {pipeline_mode = #tpu.pipeline_mode<synchronous>, transform_indices = @transform_3, window_bounds = array<i64: 1, 128>}, {transform_indices = @transform_4, window_bounds = array<i64: 128, 1>}, {transform_indices = @transform_5, window_bounds = array<i64: 1, 8, 128>}]} {
    %c0 = arith.constant 0 : index
    %c0_0 = arith.constant 0 : index
    %0 = vector.load %arg1[%c0, %c0_0] : memref<128x128xbf16, #tpu.memory_space<vmem>>, vector<128x128xbf16>
    %c0_1 = arith.constant 0 : index
    %c0_2 = arith.constant 0 : index
    %1 = vector.load %arg2[%c0_1, %c0_2] : memref<128x128xbf16, #tpu.memory_space<vmem>>, vector<128x128xbf16>
    %2 = arith.extf %0 : vector<128x128xbf16> to vector<128x128xf32>
    %cst = arith.constant 1.000000e+01 : f32
    %3 = vector.broadcast %cst : f32 to vector<128x128xf32>
    %4 = arith.mulf %2, %3 : vector<128x128xf32>
    %5 = arith.truncf %4 : vector<128x128xf32> to vector<128x128xbf16>
    %6 = arith.extf %5 : vector<128x128xbf16> to vector<128x128xf32>
    %cst_3 = arith.constant dense<0.000000e+00> : vector<128x128xf32>
    %7 = tpu.matmul %5, %1, %cst_3 {dimension_numbers = #tpu.dot_dimension_numbers<[1], [1], [0], [0], [0, 0, 1, 0], [], []>} : vector<128x128xbf16>, vector<128x128xbf16>, vector<128x128xf32> -> vector<128x128xf32>
    %c0_4 = arith.constant 0 : index
    %c0_5 = arith.constant 0 : index
    %8 = vector.load %arg3[%c0_4, %c0_5] : memref<128x1xi32, #tpu.memory_space<vmem>>, vector<128x1xi32>
    %c0_6 = arith.constant 0 : index
    %c0_7 = arith.constant 0 : index
    %9 = vector.load %arg4[%c0_6, %c0_7] : memref<1x128xi32, #tpu.memory_space<vmem>>, vector<1x128xi32>
    %10 = vector.broadcast %8 : vector<128x1xi32> to vector<128x128xi32>
    %11 = vector.broadcast %9 : vector<1x128xi32> to vector<128x128xi32>
    %12 = arith.cmpi eq, %10, %11 : vector<128x128xi32>
    %13 = arith.extui %12 : vector<128x128xi1> to vector<128x128xi32>
    %14 = arith.sitofp %13 : vector<128x128xi32> to vector<128x128xf32>
    %c0_i32 = arith.constant 0 : i32
    %15 = vector.broadcast %c0_i32 : i32 to vector<128x1xi32>
    %16 = arith.cmpi sge, %8, %15 : vector<128x1xi32>
    %cst_8 = arith.constant dense<0xFF800000> : vector<128xf32>
    %17 = vector.multi_reduction <maximumf>, %7, %cst_8 [1] : vector<128x128xf32> to vector<128xf32>
    %18 = vector.shape_cast %17 : vector<128xf32> to vector<128x1xf32>
    %19 = vector.broadcast %18 : vector<128x1xf32> to vector<128x128xf32>
    %20 = arith.subf %7, %19 : vector<128x128xf32>
    %21 = math.exp %20 : vector<128x128xf32>
    %cst_9 = arith.constant dense<0.000000e+00> : vector<128xf32>
    %22 = vector.multi_reduction <add>, %21, %cst_9 [1] : vector<128x128xf32> to vector<128xf32>
    %23 = vector.shape_cast %22 : vector<128xf32> to vector<128x1xf32>
    %cst_10 = arith.constant 0.000000e+00 : f32
    %24 = vector.broadcast %cst_10 : f32 to vector<128x1xf32>
    %25 = arith.subf %24, %18 : vector<128x1xf32>
    %26 = math.exp %25 : vector<128x1xf32>
    %cst_11 = arith.constant 3.200000e+01 : f32
    %27 = vector.broadcast %cst_11 : f32 to vector<128x1xf32>
    %28 = arith.mulf %27, %26 : vector<128x1xf32>
    %29 = arith.subf %23, %28 : vector<128x1xf32>
    %30 = arith.mulf %21, %14 : vector<128x128xf32>
    %cst_12 = arith.constant dense<0.000000e+00> : vector<128xf32>
    %31 = vector.multi_reduction <add>, %30, %cst_12 [1] : vector<128x128xf32> to vector<128xf32>
    %32 = vector.shape_cast %31 : vector<128xf32> to vector<128x1xf32>
    %33 = arith.subf %29, %32 : vector<128x1xf32>
    %34 = vector.broadcast %33 : vector<128x1xf32> to vector<128x128xf32>
    %35 = arith.addf %21, %34 : vector<128x128xf32>
    %cst_13 = arith.constant 9.99999993E-9 : f32
    %36 = vector.broadcast %cst_13 : f32 to vector<128x128xf32>
    %37 = arith.addf %35, %36 : vector<128x128xf32>
    %38 = math.log %37 : vector<128x128xf32>
    %39 = arith.subf %20, %38 : vector<128x128xf32>
    %40 = arith.mulf %14, %39 : vector<128x128xf32>
    %cst_14 = arith.constant dense<0.000000e+00> : vector<128xf32>
    %41 = vector.multi_reduction <add>, %40, %cst_14 [1] : vector<128x128xf32> to vector<128xf32>
    %42 = vector.shape_cast %41 : vector<128xf32> to vector<128x1xf32>
    %43 = arith.mulf %6, %2 : vector<128x128xf32>
    %cst_15 = arith.constant dense<0.000000e+00> : vector<128xf32>
    %44 = vector.multi_reduction <add>, %43, %cst_15 [1] : vector<128x128xf32> to vector<128xf32>
    %45 = vector.shape_cast %44 : vector<128xf32> to vector<128x1xf32>
    %46 = arith.subf %45, %18 : vector<128x1xf32>
    %47 = math.exp %46 : vector<128x1xf32>
    %48 = arith.addf %47, %33 : vector<128x1xf32>
    %cst_16 = arith.constant 9.99999993E-9 : f32
    %49 = vector.broadcast %cst_16 : f32 to vector<128x1xf32>
    %50 = arith.addf %48, %49 : vector<128x1xf32>
    %51 = math.log %50 : vector<128x1xf32>
    %52 = arith.subf %46, %51 : vector<128x1xf32>
    %53 = arith.subf %42, %52 : vector<128x1xf32>
    %c0_17 = arith.constant 0 : index
    %c0_18 = arith.constant 0 : index
    %54 = vector.load %arg5[%c0_17, %c0_18] : memref<128x1xf32, #tpu.memory_space<vmem>>, vector<128x1xf32>
    %55 = arith.mulf %53, %54 : vector<128x1xf32>
    %cst_19 = arith.constant -1.42857146 : f32
    %56 = vector.broadcast %cst_19 : f32 to vector<128x1xf32>
    %57 = arith.mulf %56, %55 : vector<128x1xf32>
    %cst_20 = arith.constant 0.000000e+00 : f32
    %58 = vector.broadcast %cst_20 : f32 to vector<128x1xf32>
    %59 = arith.select %16, %57, %58 : vector<128x1xi1>, vector<128x1xf32>
    %60 = vector.shape_cast %59 : vector<128x1xf32> to vector<1x128x1xf32>
    %cst_21 = arith.constant dense<0.000000e+00> : vector<1xf32>
    %61 = vector.multi_reduction <add>, %60, %cst_21 [1, 2] : vector<1x128x1xf32> to vector<1xf32>
    %62 = vector.shape_cast %61 : vector<1xf32> to vector<1x1x1xf32>
    %63 = vector.extract %62[0, 0, 0] : f32 from vector<1x1x1xf32>
    %64 = vector.broadcast %63 : f32 to vector<1x8x128xf32>
    %c0_22 = arith.constant 0 : index
    %c0_23 = arith.constant 0 : index
    %c0_24 = arith.constant 0 : index
    %65 = vector.load %arg6[%c0_22, %c0_23, %c0_24] : memref<1x8x128xf32, #tpu.memory_space<vmem>>, vector<1x8x128xf32>
    tpu.vector_store %arg6[%c0_22, %c0_23, %c0_24], %64 {strides = array<i32>} : memref<1x8x128xf32, #tpu.memory_space<vmem>>, vector<1x8x128xf32>,
    return
  }
  func.func @transform_0(%arg0: i32) -> (i32, i32) {
    %c0_i32 = arith.constant 0 : i32
    %c0_i32_0 = arith.constant 0 : i32
    return %arg0, %c0_i32 : i32, i32
  }
  func.func @transform_1(%arg0: i32) -> (i32, i32) {
    %c0_i32 = arith.constant 0 : i32
    %c0_i32_0 = arith.constant 0 : i32
    %c0_i32_1 = arith.constant 0 : i32
    return %c0_i32, %c0_i32_0 : i32, i32
  }
  func.func @transform_2(%arg0: i32) -> (i32, i32) {
    %c0_i32 = arith.constant 0 : i32
    %c0_i32_0 = arith.constant 0 : i32
    return %arg0, %c0_i32 : i32, i32
  }
  func.func @transform_3(%arg0: i32) -> (i32, i32) {
    %c0_i32 = arith.constant 0 : i32
    %c0_i32_0 = arith.constant 0 : i32
    %c0_i32_1 = arith.constant 0 : i32
    return %c0_i32, %c0_i32_0 : i32, i32
  }
  func.func @transform_4(%arg0: i32) -> (i32, i32) {
    %c0_i32 = arith.constant 0 : i32
    %c0_i32_0 = arith.constant 0 : i32
    return %arg0, %c0_i32 : i32, i32
  }
  func.func @transform_5(%arg0: i32) -> (i32, i32, i32) {
    %c0_i32 = arith.constant 0 : i32
    %c0_i32_0 = arith.constant 0 : i32
    %c0_i32_1 = arith.constant 0 : i32
    return %arg0, %c0_i32, %c0_i32_0 : i32, i32, i32
  }
}

</mosaic_0001>

<bundles_post_ra>
// kernel: tpu_custom_call.1
= control target key start
LH: loop header
LB: loop body
LE: loop exit
PB: predicated region body
PF: predicated region fallthrough
CT: control target
= control target key end

     0   :  { %v1428_v2 = vmov 0   ;;  %s2364_s0 = inlined_call_operand.vmem [shape: bf16[128,128], index: 0, kind: input, shape index: {}]   ;;  %s2365_s1 = inlined_call_operand.vmem [shape: bf16[128,128], index: 1, kind: input, shape index: {}]   ;;  %s2366_s2 = inlined_call_operand.vmem [shape: s32[128,1], index: 2, kind: input, shape index: {}]   ;;  %s2367_s3 = inlined_call_operand.vmem [shape: s32[1,128], index: 3, kind: input, shape index: {}]   ;;  %s2368_s4 = inlined_call_operand.vmem [shape: f32[128,1], index: 4, kind: input, shape index: {}]   ;;  %s2369_s5 = inlined_call_operand.hbm [shape: f32[1,8,128], index: 5, kind: output, shape index: {}]  }
   0x1   :  { %v1220_v0 = vld [vmem:[%s2365_s1] sm:$0xff]   ;;  %v1221_v1 = vld [vmem:[%s2365_s1 + $0x8] sm:$0xff]   ;;  %1219 = vset.pattern.permute.xlu0 %v1428_v2  ;;  %1218 = vset.pattern.permute.xlu1 %v1428_v2  ;;  %v1222_v3 = vld [vmem:[%s2365_s1 + $0x10] sm:$0xff]  }
   0x2   :  { %1165 = vmatprep.subr.bf16.mxu0 %v1220_v0  ;;  %1197 = vmatprep.subr.bf16.mxu1 %v1220_v0  ;;  %v1473_v4 = vld [vmem:[%s2364_s0] sm:$0xff]   ;;  %v256_v10 = vld [vmem:[%s2366_s2 + $0x8] sm:$0xff]  ;;  %v257_v17 = vld [vmem:[%s2366_s2 + $0x10] sm:$0xff] }
   0x3   :  { %1166 = vmatpush3.bf16.xpose.msra.mxu0 %v1220_v0  ;;  %1205 = vmatpush3.bf16.xpose.msra.mxu1 %v1220_v0  ;;  %v1478_v5 = vld [vmem:[%s2364_s0 + $0x20] sm:$0xff]   ;;  %v2384_v6 = vunpack.c.l.bf16 %v1473_v4  ;;  %v2385_v7 = vunpack.c.h.bf16 %v1473_v4  ;;  %v1223_v19 = vld [vmem:[%s2365_s1 + $0x18] sm:$0xff]  }
   0x4   :  { %1167 = vmatprep.subr.bf16.mxu0 %v1221_v1  ;;  %1198 = vmatprep.subr.bf16.mxu1 %v1221_v1  ;;  %v2376_v8 = vunpack.c.l.bf16 %v1478_v5  ;;  %v2377_v9 = vunpack.c.h.bf16 %v1478_v5  ;;  %v255_v18 = vld [vmem:[%s2366_s2] sm:$0xff] }
   0x5   :  { %v70_v11 = vmul.f32 10.0, %v2384_v6  ;;  %v71_v12 = vmul.f32 10.0, %v2385_v7  ;;  %276 = vperm.xlu0 %1219, %v256_v10   ;;  %273 = vperm.xlu1 %1218, %v255_v18  }
   0x6   :  { %v78_v13 = vmul.f32 10.0, %v2376_v8  ;;  %v79_v14 = vmul.f32 10.0, %v2377_v9 }
   0x7   :  { %v1495_v15 = vpack.c.bf16 %v71_v12, %v70_v11 }
   0x8   :  { %v1497_v16 = vpack.c.bf16 %v79_v14, %v78_v13 }
   0x9   :  { %1181 = vmatprep.mubr.bf16.mxu0 %v1495_v15 }
   0xa   :  { %1189 = vmatprep.mubr.bf16.mxu1 %v1497_v16 }
   0xb   :  { %1168 = vmatpush3.bf16.xpose.msra.mxu0 %v1221_v1  ;;  %1206 = vmatpush3.bf16.xpose.msra.mxu1 %v1221_v1 }
   0xc   :  { %1169 = vmatprep.subr.bf16.mxu0 %v1222_v3  ;;  %1199 = vmatprep.subr.bf16.mxu1 %v1222_v3 }
   0xd   :  { %10 = vsyncpa [#allocation3], 0  ;;  %279 = vperm.xlu0 %1219, %v257_v17   ;;  %v259_v20 = vld [vmem:[%s2366_s2 + $0x20] sm:$0xff]  ;;  %v258_v21 = vld [vmem:[%s2366_s2 + $0x18] sm:$0xff] }
   0xe   :  { %282 = vperm.xlu1 %1218, %v258_v21   ;;  %v261_v22 = vld [vmem:[%s2366_s2 + $0x30] sm:$0xff]  ;;  %v260_v23 = vld [vmem:[%s2366_s2 + $0x28] sm:$0xff]  ;;  %v1224_v24 = vld [vmem:[%s2365_s1 + $0x20] sm:$0xff]  }
   0xf   :  { %v262_v25 = vld [vmem:[%s2366_s2 + $0x38] sm:$0xff]  ;;  %v263_v26 = vld [vmem:[%s2366_s2 + $0x40] sm:$0xff]  ;;  %v264_v27 = vld [vmem:[%s2366_s2 + $0x48] sm:$0xff] }
  0x10   :  { %v268_v28 = vld [vmem:[%s2366_s2 + $0x68] sm:$0xff]  ;;  %v265_v30 = vld [vmem:[%s2366_s2 + $0x50] sm:$0xff]  ;;  %v266_v31 = vld [vmem:[%s2366_s2 + $0x58] sm:$0xff] }
  0x11   :  { %285 = vperm.xlu0 %1219, %v259_v20   ;;  %v1225_v29 = vld [vmem:[%s2365_s1 + $0x28] sm:$0xff]   ;;  %v1226_v32 = vld [vmem:[%s2365_s1 + $0x30] sm:$0xff]   ;;  %v267_v33 = vld [vmem:[%s2366_s2 + $0x60] sm:$0xff] }
  0x12   :  { %288 = vperm.xlu1 %1218, %v260_v23   ;;  %v1227_v34 = vld [vmem:[%s2365_s1 + $0x38] sm:$0xff]   ;;  %v1558_v35 = vld [vmem:[%s2364_s0 + $0x8] sm:$0xff]   ;;  %v1568_v37 = vld [vmem:[%s2364_s0 + $0x10] sm:$0xff]  }
  0x13   :  { %1170 = vmatpush3.bf16.xpose.msra.mxu0 %v1222_v3  ;;  %1207 = vmatpush3.bf16.xpose.msra.mxu1 %v1222_v3  ;;  %v1563_v36 = vld [vmem:[%s2364_s0 + $0x28] sm:$0xff]   ;;  %v1573_v38 = vld [vmem:[%s2364_s0 + $0x30] sm:$0xff]   ;;  %v2382_v39 = vunpack.c.l.bf16 %v1558_v35  ;;  %v2383_v40 = vunpack.c.h.bf16 %v1558_v35  ;;  %v2380_v43 = vunpack.c.l.bf16 %v1568_v37  ;;  %v2381_v44 = vunpack.c.h.bf16 %v1568_v37  ;;  %v1598_v53 = vld [vmem:[%s2364_s0 + $0x18] sm:$0xff]  }
  0x14   :  { %1171 = vmatprep.subr.bf16.mxu0 %v1223_v19  ;;  %1200 = vmatprep.subr.bf16.mxu1 %v1223_v19  ;;  %v2374_v41 = vunpack.c.l.bf16 %v1563_v36  ;;  %v2375_v42 = vunpack.c.h.bf16 %v1563_v36  ;;  %v2372_v45 = vunpack.c.l.bf16 %v1573_v38  ;;  %v2373_v46 = vunpack.c.h.bf16 %v1573_v38  ;;  %v1607_v56 = vld [vmem:[%s2364_s0 + $0x38] sm:$0xff]  }
  0x15   :  { %291 = vperm.xlu0 %1219, %v261_v22   ;;  %v72_v47 = vmul.f32 10.0, %v2382_v39  ;;  %v73_v48 = vmul.f32 10.0, %v2383_v40  ;;  %v74_v51 = vmul.f32 10.0, %v2380_v43  ;;  %v75_v52 = vmul.f32 10.0, %v2381_v44 }
  0x16   :  { %297 = vperm.xlu1 %1218, %v263_v26   ;;  %v80_v49 = vmul.f32 10.0, %v2374_v41  ;;  %v81_v50 = vmul.f32 10.0, %v2375_v42  ;;  %v82_v54 = vmul.f32 10.0, %v2372_v45  ;;  %v83_v55 = vmul.f32 10.0, %v2373_v46 }
  0x17   :  { %v1609_v57 = vpack.c.bf16 %v73_v48, %v72_v47  ;;  %v2378_v59 = vunpack.c.l.bf16 %v1598_v53  ;;  %v2379_v60 = vunpack.c.h.bf16 %v1598_v53  ;;  %v2370_v61 = vunpack.c.l.bf16 %v1607_v56 }
  0x18   :  { %v1611_v58 = vpack.c.bf16 %v81_v50, %v80_v49  ;;  %v2371_v62 = vunpack.c.h.bf16 %v1607_v56  ;;  %v1617_v63 = vpack.c.bf16 %v75_v52, %v74_v51  ;;  %v1619_v0 = vpack.c.bf16 %v83_v55, %v82_v54 }
  0x19   :  { %294 = vperm.xlu0 %1219, %v262_v25   ;;  %v76_v1 = vmul.f32 10.0, %v2378_v59  ;;  %v77_v2 = vmul.f32 10.0, %v2379_v60  ;;  %v84_v3 = vmul.f32 10.0, %v2370_v61  ;;  %v2386_v40 = vmov 0.0  }
  0x1a   :  { %312 = vperm.xlu1 %1218, %v268_v28   ;;  %v85_v10 = vmul.f32 10.0, %v2371_v62 }
  0x1b   :  { %1172 = vmatpush3.bf16.xpose.msra.mxu0 %v1223_v19  ;;  %1208 = vmatpush3.bf16.xpose.msra.mxu1 %v1223_v19  ;;  %v1633_v11 = vpack.c.bf16 %v77_v2, %v76_v1 }
  0x1c   :  { %1173 = vmatprep.subr.bf16.mxu0 %v1224_v24  ;;  %1201 = vmatprep.subr.bf16.mxu1 %v1224_v24  ;;  %v1635_v12 = vpack.c.bf16 %v85_v10, %v84_v3 }
  0x1d   :  { %300 = vperm.xlu0 %1219, %v264_v27  }
  0x21   :  { %303 = vperm.xlu0 %1219, %v265_v30  }
  0x23   :  { %1174 = vmatpush3.bf16.xpose.msra.mxu0 %v1224_v24  ;;  %1209 = vmatpush3.bf16.xpose.msra.mxu1 %v1224_v24 }
  0x24   :  { %1175 = vmatprep.subr.bf16.mxu0 %v1225_v29  ;;  %1202 = vmatprep.subr.bf16.mxu1 %v1225_v29 }
  0x25   :  { %306 = vperm.xlu0 %1219, %v266_v31   ;;  %v270_v31 = vld [vmem:[%s2366_s2 + $0x78] sm:$0xff] }
  0x29   :  { %309 = vperm.xlu0 %1219, %v267_v33  }
  0x2b   :  { %1176 = vmatpush3.bf16.xpose.msra.mxu0 %v1225_v29  ;;  %1210 = vmatpush3.bf16.xpose.msra.mxu1 %v1225_v29 }
  0x2c   :  { %1177 = vmatprep.subr.bf16.mxu0 %v1226_v32  ;;  %1203 = vmatprep.subr.bf16.mxu1 %v1226_v32 }
  0x33   :  { %1178 = vmatpush3.bf16.xpose.msra.mxu0 %v1226_v32  ;;  %1211 = vmatpush3.bf16.xpose.msra.mxu1 %v1226_v32  ;;  %v269_v32 = vld [vmem:[%s2366_s2 + $0x70] sm:$0xff] }
  0x34   :  { %1179 = vmatprep.subr.bf16.mxu0 %v1227_v34  ;;  %1204 = vmatprep.subr.bf16.mxu1 %v1227_v34 }
  0x3b   :  { %1180 = vmatpush3.bf16.xpose.msra.mxu0 %v1227_v34  ;;  %1212 = vmatpush3.bf16.xpose.msra.mxu1 %v1227_v34 }
  0x42   :  { %1182 = vmatmul.mubr.bf16.vlgmr.msra.gmra.mrb[0].mxu0 %v1609_v57  ;;  %1190 = vmatmul.mubr.bf16.vlgmr.msra.gmra.mrb[0].mxu1 %v1611_v58 }
  0x43   :  { %1185 = vmatprep.mubr.bf16.mxu0 %v1617_v63  ;;  %1193 = vmatprep.mubr.bf16.mxu1 %v1619_v0 }
  0x4a   :  { %1186 = vmatmul.mubr.bf16.gmra.mrb[4].mxu0 %v1633_v11  ;;  %1194 = vmatmul.mubr.bf16.gmra.mrb[4].mxu1 %v1635_v12 }
  0x84   :  { %v1678_v33 = vpop.permute.xlu0 %276  ;;  %v1686_v50 = vpop.permute.xlu1 %273 }
  0x8c   :  { %v280_v34 = vpop.permute.xlu0 %279 }
  0x8d   :  { %v1690_v52 = vpop.permute.xlu1 %282 }
  0x90   :  { %v1680_v47 = vpop.permute.xlu0 %285 }
  0x91   :  { %v1694_v55 = vpop.permute.xlu1 %288 }
  0x94   :  { %v1682_v48 = vpop.permute.xlu0 %291 }
  0x95   :  { %v298_v2 = vpop.permute.xlu1 %297 }
  0x98   :  { %v1684_v49 = vpop.permute.xlu0 %294 }
  0x99   :  { %v1700_v10 = vpop.permute.xlu1 %312 }
  0x9c   :  { %v1688_v51 = vpop.permute.xlu0 %300 }
  0xa0   :  { %v1692_v54 = vpop.permute.xlu0 %303 }
  0xa4   :  { %v1696_v1 = vpop.permute.xlu0 %306 }
  0xa8   :  { %v1698_v3 = vpop.permute.xlu0 %309 }
 0x115   :  { %v1183_v13 = vpop.f32.mrb[0].mxu0  ;;  %v1191_v14 = vpop.f32.mrb[0].mxu1 }
 0x116   :  { %408 = vmax.xlane.f32.xlu0 %v1191_v14  ;;  %v224_v17 = vpop.f32.mrb[1].mxu1  ;;  %392 = vmax.xlane.f32.xlu1 %v1183_v13  ;;  %v192_v18 = vpop.f32.mrb[1].mxu0 }
 0x117   :  { %v1639_v19 = vpop.f32.mrb[2].mxu0  ;;  %v1641_v20 = vpop.f32.mrb[2].mxu1 }
 0x118   :  { %v195_v21 = vpop.f32.mrb[3].mxu0  ;;  %v1643_v22 = vpop.f32.mrb[3].mxu1 }
 0x11a   :  { %388 = vmax.xlane.f32.xlu0 %v192_v18  ;;  %394 = vmax.xlane.f32.xlu1 %v1639_v19 }
 0x11d   :  { %v1646_v23 = vpop.f32.mrb[4].mxu0  ;;  %v1648_v24 = vpop.f32.mrb[4].mxu1 }
 0x11e   :  { %404 = vmax.xlane.f32.xlu0 %v224_v17  ;;  %410 = vmax.xlane.f32.xlu1 %v1641_v20  ;;  %v1651_v25 = vpop.f32.mrb[5].mxu0  ;;  %v1653_v26 = vpop.f32.mrb[5].mxu1 }
 0x11f   :  { %v1655_v27 = vpop.f32.mrb[6].mxu0  ;;  %v1657_v28 = vpop.f32.mrb[6].mxu1 }
 0x120   :  { %v1659_v29 = vpop.f32.mrb[7].mxu0  ;;  %v1661_v30 = vpop.f32.mrb[7].mxu1 }
 0x122   :  { %406 = vmax.xlane.f32.xlu1 %v1643_v22  ;;  %390 = vmax.xlane.f32.xlu0 %v195_v21 }
 0x126   :  { %400 = vmax.xlane.f32.xlu0 %v1646_v23  ;;  %402 = vmax.xlane.f32.xlu1 %v1655_v27 }
 0x12a   :  { %416 = vmax.xlane.f32.xlu0 %v1648_v24  ;;  %418 = vmax.xlane.f32.xlu1 %v1657_v28 }
 0x12e   :  { %396 = vmax.xlane.f32.xlu0 %v1651_v25  ;;  %398 = vmax.xlane.f32.xlu1 %v1659_v29 }
 0x132   :  { %412 = vmax.xlane.f32.xlu0 %v1653_v26  ;;  %414 = vmax.xlane.f32.xlu1 %v1661_v30 }
 0x143   :  { %318 = vperm.xlu1 %1218, %v270_v31  }
 0x148   :  { %315 = vperm.xlu0 %1219, %v269_v32  }
 0x1a3   :  { %v1702_v31 = vpop.xlane.xlu0 %408  ;;  %v1704_v32 = vpop.xlane.xlu1 %392 }
 0x1a4   :  { %v1707_v61 = vsub.f32 %v1183_v13, %v1704_v32  ;;  %v1710_v62 = vsub.f32 %v1191_v14, %v1702_v31  ;;  %v1729_v14 = vld [vmem:[%s2367_s3] ss:$0 sm:$0xff] }
 0x1a5   :  { %vm326_vm0 = vcmp.eq.s32.totalorder %v280_v34, %v1729_v14  ;;  %vm332_vm1 = vcmp.eq.s32.totalorder %v298_v2, %v1729_v14  ;;  %vm324_vm2 = vcmp.eq.s32.totalorder %v1686_v50, %v1729_v14  ;;  %vm327_vm3 = vcmp.eq.s32.totalorder %v1690_v52, %v1729_v14 }
 0x1a6   :  { %2417 = vst [vmem:[#allocation5_spill] sm:$0xff] %v1707_v61  ;;  %2418 = vst [vmem:[#allocation6_spill] sm:$0xff] %v1710_v62  ;;  %v440_v45 = vmul.f32 1.442695, %v1707_v61  ;;  %v456_v42 = vmul.f32 1.442695, %v1710_v62  ;;  %vm325_vm4 = vcmp.eq.s32.totalorder %v1678_v33, %v1729_v14  ;;  %vm333_vm5 = vcmp.eq.s32.totalorder %v1688_v51, %v1729_v14 }
 0x1a7   :  { %v1713_v46 = vpop.xlane.xlu0 %388  ;;  %v1715_v41 = vpop.xlane.xlu1 %394  ;;  %v1751_v6 = vsel %vm326_vm0, 1.0, %v2386_v40  ;;  %vm330_vm6 = vcmp.eq.s32.totalorder %v1682_v48, %v1729_v14  ;;  %vm328_vm7 = vcmp.eq.s32.totalorder %v1680_v47, %v1729_v14  ;;  %vm331_vm8 = vcmp.eq.s32.totalorder %v1684_v49, %v1729_v14 }
 0x1a8   :  { %1228 = vpow2.f32 %v440_v45  ;;  %v1719_v8 = vsub.f32 %v192_v18, %v1713_v46  ;;  %v1743_v18 = vsub.f32 %v1639_v19, %v1715_v41  ;;  %2422 = vst [vmem:[#allocation10_spill] sm:$0xff] %v1751_v6  ;;  %vm329_vm9 = vcmp.eq.s32.totalorder %v1694_v55, %v1729_v14 }
 0x1a9   :  { %1230 = vpow2.f32 %v456_v42  ;;  %vm334_vm10 = vcmp.eq.s32.totalorder %v1692_v54, %v1729_v14  ;;  %vm335_vm11 = vcmp.eq.s32.totalorder %v1696_v1, %v1729_v14  ;;  %vm336_vm12 = vcmp.eq.s32.totalorder %v1698_v3, %v1729_v14 }
 0x1aa   :  { %v436_v59 = vmul.f32 1.442695, %v1719_v8  ;;  %2421 = vst [vmem:[#allocation9_spill] sm:$0xff] %v1743_v18  ;;  %v442_v19 = vmul.f32 1.442695, %v1743_v18  ;;  %vm337_vm13 = vcmp.eq.s32.totalorder %v1700_v10, %v1729_v14 }
 0x1ab   :  { %v1721_v9 = vpop.xlane.xlu0 %404  ;;  %v1732_v60 = vpop.xlane.xlu1 %410 }
 0x1ac   :  { %v1724_v13 = vsub.f32 %v224_v17, %v1721_v9  ;;  %1232 = vpow2.f32 %v436_v59 }
 0x1ae   :  { %2419 = vst [vmem:[#allocation7_spill] sm:$0xff] %v1724_v13  ;;  %v452_v17 = vmul.f32 1.442695, %v1724_v13 }
 0x1af   :  { %v1734_v43 = vpop.xlane.xlu0 %390 }
 0x1b0   :  { %v1737_v45 = vsub.f32 %v195_v21, %v1734_v43  ;;  %1234 = vpow2.f32 %v452_v17  ;;  %v1753_v21 = vpop.xlane.xlu1 %406 }
 0x1b1   :  { %v1766_v17 = vsub.f32 %v1643_v22, %v1753_v21 }
 0x1b2   :  { %2420 = vst [vmem:[#allocation8_spill] sm:$0xff] %v1737_v45  ;;  %v438_v42 = vmul.f32 1.442695, %v1737_v45  ;;  %v1748_v39 = vpop.eup %1228 }
 0x1b3   :  { %v1746_v44 = vpop.xlane.xlu0 %400  ;;  %472 = vadd.xlane.f32.xlu0 %v1748_v39  ;;  %v582_v59 = vmul.f32 %v1748_v39, %v1751_v6  ;;  %v1759_v34 = vpop.eup %1230  ;;  %2423 = vst [vmem:[#allocation11_spill] sm:$0xff] %v1766_v17 }
 0x1b4   :  { %1236 = vpow2.f32 %v438_v42  ;;  %v1768_v40 = vpop.xlane.xlu1 %402  ;;  %v454_v42 = vmul.f32 1.442695, %v1766_v17  ;;  %v2425_v17 = vmov 0.0  }
 0x1b5   :  { %600 = vadd.xlane.f32.xlu1 %v582_v59  ;;  %1238 = vpow2.f32 %v442_v19  ;;  %v1776_v59 = vsub.f32 %v1646_v23, %v1746_v44  ;;  %v1792_v23 = vsel %vm332_vm1, 1.0, %v2425_v17  ;;  %v1806_v61 = vsel %vm324_vm2, 1.0, %v2425_v17 }
 0x1b6   :  { %v1770_v62 = vpop.eup %1232  ;;  %2426 = vst [vmem:[#allocation13_spill] sm:$0xff] %v1792_v23  ;;  %1240 = vpow2.f32 %v454_v42  ;;  %2428 = vst [vmem:[#allocation15_spill] sm:$0xff] %v1806_v61  ;;  %v1810_v42 = vsel %vm327_vm3, 1.0, %v2425_v17  ;;  %v1941_v1 = vsel %vm336_vm12, 1.0, %v2425_v17  ;;  %vm1028_vm3 = vcmask 7168  }
 0x1b7   :  { %v1761_v7 = vpop.xlane.xlu0 %416  ;;  %488 = vadd.xlane.f32.xlu0 %v1759_v34  ;;  %2424 = vst [vmem:[#allocation12_spill] sm:$0xff] %v1776_v59  ;;  %v448_v6 = vmul.f32 1.442695, %v1776_v59  ;;  %v580_v59 = vmul.f32 %v1770_v62, %v1806_v61  ;;  %2442 = vst [vmem:[#allocation29_spill] sm:$0xff] %v1941_v1 }
 0x1b8   :  { %v1787_v18 = vpop.xlane.xlu1 %418 }
 0x1b9   :  { %1242 = vpow2.f32 %v448_v6 }
 0x1ba   :  { %v1778_v13 = vpop.eup %1234 }
 0x1bb   :  { %468 = vadd.xlane.f32.xlu0 %v1770_v62  ;;  %v1781_v19 = vpop.xlane.xlu0 %396  ;;  %v588_v50 = vmul.f32 %v1778_v13, %v1792_v23 }
 0x1bc   :  { %v1797_v2 = vsub.f32 %v1651_v25, %v1781_v19  ;;  %v1814_v25 = vsub.f32 %v1655_v27, %v1768_v40  ;;  %v1819_v23 = vpop.xlane.xlu1 %398 }
 0x1bd   :  { %v1828_v27 = vsub.f32 %v1659_v29, %v1819_v23  ;;  %v1845_v29 = vsub.f32 %v1641_v20, %v1732_v60 }
 0x1be   :  { %v1783_v22 = vpop.eup %1236  ;;  %2427 = vst [vmem:[#allocation14_spill] sm:$0xff] %v1797_v2  ;;  %2429 = vst [vmem:[#allocation16_spill] sm:$0xff] %v1814_v25  ;;  %v444_v52 = vmul.f32 1.442695, %v1797_v2  ;;  %v450_v6 = vmul.f32 1.442695, %v1814_v25 }
 0x1bf   :  { %484 = vadd.xlane.f32.xlu0 %v1778_v13  ;;  %470 = vadd.xlane.f32.xlu1 %v1783_v22  ;;  %v1803_v45 = vpop.eup %1238  ;;  %2430 = vst [vmem:[#allocation17_spill] sm:$0xff] %v1828_v27  ;;  %v1831_v2 = vsel %vm325_vm4, 1.0, %v2425_v17  ;;  %2432 = vst [vmem:[#allocation19_spill] sm:$0xff] %v1845_v29  ;;  %v1850_v51 = vpop.xlane.xlu0 %412  ;;  %v458_v20 = vmul.f32 1.442695, %v1845_v29 }
 0x1c0   :  { %1244 = vpow2.f32 %v444_v52  ;;  %v581_v33 = vmul.f32 %v1783_v22, %v1831_v2  ;;  %v1837_v61 = vpop.eup %1240  ;;  %v446_v52 = vmul.f32 1.442695, %v1828_v27  ;;  %v1867_v48 = vpop.xlane.xlu1 %414 }
 0x1c1   :  { %1246 = vpow2.f32 %v450_v6  ;;  %v1863_v6 = vsub.f32 %v1653_v26, %v1850_v51 }
 0x1c2   :  { %1248 = vpow2.f32 %v446_v52  ;;  %v1880_v52 = vsub.f32 %v1661_v30, %v1867_v48 }
 0x1c3   :  { %474 = vadd.xlane.f32.xlu0 %v1803_v45  ;;  %612 = vadd.xlane.f32.xlu1 %v588_v50  ;;  %v583_v50 = vmul.f32 %v1803_v45, %v1810_v42  ;;  %v1854_v25 = vpop.eup %1242  ;;  %2433 = vst [vmem:[#allocation20_spill] sm:$0xff] %v1863_v6  ;;  %1250 = vpow2.f32 %v458_v20  ;;  %v460_v26 = vmul.f32 1.442695, %v1863_v6  ;;  %v1894_v20 = vsub.f32 %v1648_v24, %v1761_v7 }
 0x1c4   :  { %2434 = vst [vmem:[#allocation21_spill] sm:$0xff] %v1880_v52  ;;  %v462_v30 = vmul.f32 1.442695, %v1880_v52 }
 0x1c5   :  { %2436 = vst [vmem:[#allocation23_spill] sm:$0xff] %v1894_v20  ;;  %1252 = vpow2.f32 %v460_v26  ;;  %v464_v24 = vmul.f32 1.442695, %v1894_v20  ;;  %v1910_v26 = vsub.f32 %v1657_v28, %v1787_v18 }
 0x1c6   :  { %1254 = vpow2.f32 %v462_v30  ;;  %v1931_v30 = vsel %vm335_vm11, 1.0, %v2425_v17 }
 0x1c7   :  { %596 = vadd.xlane.f32.xlu0 %v580_v59  ;;  %602 = vadd.xlane.f32.xlu1 %v583_v50  ;;  %v1841_v59 = vsel %vm333_vm5, 1.0, %v2425_v17  ;;  %2438 = vst [vmem:[#allocation25_spill] sm:$0xff] %v1910_v26  ;;  %1256 = vpow2.f32 %v464_v24  ;;  %v466_v20 = vmul.f32 1.442695, %v1910_v26  ;;  %2440 = vst [vmem:[#allocation27_spill] sm:$0xff] %v1931_v30  ;;  %v319_v26 = vpop.permute.xlu1 %318 }
 0x1c8   :  { %2431 = vst [vmem:[#allocation18_spill] sm:$0xff] %v1841_v59  ;;  %v589_v50 = vmul.f32 %v1837_v61, %v1841_v59  ;;  %vm339_vm14 = vcmp.eq.s32.totalorder %v319_v26, %v1729_v14  ;;  %v94_v26 = vunpack.c.l.bf16 %v1495_v15 }
 0x1c9   :  { %1258 = vpow2.f32 %v466_v20  ;;  %v1960_v10 = vsel %vm339_vm14, 1.0, %v2425_v17 }
 0x1ca   :  { %v1871_v27 = vpop.eup %1244  ;;  %2445 = vst [vmem:[#allocation32_spill] sm:$0xff] %v1960_v10 }
 0x1cb   :  { %486 = vadd.xlane.f32.xlu0 %v1837_v61  ;;  %598 = vadd.xlane.f32.xlu1 %v581_v33  ;;  %v1858_v33 = vsel %vm330_vm6, 1.0, %v2425_v17  ;;  %v1886_v29 = vpop.eup %1246 }
 0x1cc   :  { %v586_v59 = vmul.f32 %v1854_v25, %v1858_v33  ;;  %v1901_v6 = vpop.eup %1248 }
 0x1cd   :  { %v1916_v52 = vpop.eup %1250 }
 0x1ce   :  { %v591_v24 = vmul.f32 %v1916_v52, %v1931_v30 }
 0x1cf   :  { %480 = vadd.xlane.f32.xlu0 %v1854_v25  ;;  %614 = vadd.xlane.f32.xlu1 %v589_v50  ;;  %v1875_v50 = vsel %vm328_vm7, 1.0, %v2425_v17  ;;  %v1927_v54 = vpop.eup %1252 }
 0x1d0   :  { %v584_v47 = vmul.f32 %v1871_v27, %v1875_v50  ;;  %v592_v20 = vmul.f32 %v1927_v54, %v1941_v1 }
 0x1d3   :  { %476 = vadd.xlane.f32.xlu0 %v1871_v27  ;;  %608 = vadd.xlane.f32.xlu1 %v586_v59  ;;  %v1890_v59 = vsel %vm331_vm8, 1.0, %v2425_v17 }
 0x1d4   :  { %2435 = vst [vmem:[#allocation22_spill] sm:$0xff] %v1890_v59  ;;  %v587_v49 = vmul.f32 %v1886_v29, %v1890_v59 }
 0x1d7   :  { %482 = vadd.xlane.f32.xlu0 %v1886_v29  ;;  %604 = vadd.xlane.f32.xlu1 %v584_v47  ;;  %v1905_v47 = vsel %vm329_vm9, 1.0, %v2425_v17 }
 0x1d8   :  { %2437 = vst [vmem:[#allocation24_spill] sm:$0xff] %v1905_v47  ;;  %v585_v55 = vmul.f32 %v1901_v6, %v1905_v47 }
 0x1db   :  { %610 = vadd.xlane.f32.xlu1 %v587_v49  ;;  %478 = vadd.xlane.f32.xlu0 %v1901_v6  ;;  %v1920_v49 = vsel %vm334_vm10, 1.0, %v2425_v17 }
 0x1dc   :  { %2439 = vst [vmem:[#allocation26_spill] sm:$0xff] %v1920_v49  ;;  %v590_v28 = vmul.f32 %v1759_v34, %v1920_v49 }
 0x1df   :  { %490 = vadd.xlane.f32.xlu0 %v1916_v52  ;;  %606 = vadd.xlane.f32.xlu1 %v585_v55  ;;  %v1937_v55 = vpop.eup %1254 }
 0x1e0   :  { %2441 = vst [vmem:[#allocation28_spill] sm:$0xff] %v1937_v55  ;;  %v1947_v3 = vpop.eup %1256 }
 0x1e1   :  { %2443 = vst [vmem:[#allocation30_spill] sm:$0xff] %v1947_v3  ;;  %v1957_v49 = vpop.eup %1258 }
 0x1e3   :  { %492 = vadd.xlane.f32.xlu0 %v1927_v54  ;;  %616 = vadd.xlane.f32.xlu1 %v590_v28  ;;  %v316_v28 = vpop.permute.xlu0 %315 }
 0x1e4   :  { %vm338_vm15 = vcmp.eq.s32.totalorder %v316_v28, %v1729_v14  ;;  %v95_v14 = vunpack.c.h.bf16 %v1495_v15  ;;  %v2449_v15 = vunpack.c.h.bf16 %v1558_v35 }
 0x1e5   :  { %v1963_v1 = vsel %vm338_vm15, 1.0, %v2425_v17 }
 0x1e6   :  { %2446 = vst [vmem:[#allocation33_spill] sm:$0xff] %v1963_v1  ;;  %v594_v28 = vmul.f32 %v1947_v3, %v1963_v1 }
 0x1e7   :  { %618 = vadd.xlane.f32.xlu1 %v591_v24  ;;  %494 = vadd.xlane.f32.xlu0 %v1937_v55  ;;  %v1953_v24 = vsel %vm337_vm13, 1.0, %v2425_v17  ;;  %v2448_v17 = vunpack.c.l.bf16 %v1473_v4 }
 0x1e8   :  { %2444 = vst [vmem:[#allocation31_spill] sm:$0xff] %v1953_v24  ;;  %v593_v30 = vmul.f32 %v1937_v55, %v1953_v24  ;;  %v2447_v24 = vunpack.c.h.bf16 %v1473_v4  ;;  %v96_v55 = vunpack.c.l.bf16 %v1609_v57  ;;  %v2451_v4 = vunpack.c.h.bf16 %v1568_v37 }
 0x1e9   :  { %v772_v47 = vmul.f32 %v2448_v17, %v94_v26  ;;  %v2456_v17 = vunpack.c.l.bf16 %v1478_v5 }
 0x1ea   :  { %v773_v59 = vmul.f32 %v2447_v24, %v95_v14  ;;  %v2452_v14 = vunpack.c.l.bf16 %v1568_v37  ;;  %v2455_v37 = vunpack.c.h.bf16 %v1478_v5  ;;  %v2459_v5 = vunpack.c.h.bf16 %v1573_v38 }
 0x1eb   :  { %620 = vadd.xlane.f32.xlu1 %v592_v20  ;;  %496 = vadd.xlane.f32.xlu0 %v1947_v3  ;;  %v595_v20 = vmul.f32 %v1957_v49, %v1960_v10  ;;  %v2450_v3 = vunpack.c.l.bf16 %v1558_v35  ;;  %v2453_v35 = vunpack.c.h.bf16 %v1598_v53 }
 0x1ed   :  { %v774_v10 = vmul.f32 %v2450_v3, %v96_v55  ;;  %v2454_v3 = vunpack.c.l.bf16 %v1598_v53  ;;  %v2457_v53 = vunpack.c.h.bf16 %v1563_v36 }
 0x1ef   :  { %498 = vadd.xlane.f32.xlu0 %v1957_v49  ;;  %622 = vadd.xlane.f32.xlu1 %v593_v30  ;;  %v97_v30 = vunpack.c.h.bf16 %v1609_v57 }
 0x1f1   :  { %v775_v1 = vmul.f32 %v2449_v15, %v97_v30  ;;  %v105_v30 = vunpack.c.h.bf16 %v1611_v58  ;;  %v104_v15 = vunpack.c.l.bf16 %v1611_v58 }
 0x1f3   :  { %624 = vadd.xlane.f32.xlu1 %v594_v28  ;;  %626 = vadd.xlane.f32.xlu0 %v595_v20  ;;  %v99_v28 = vunpack.c.h.bf16 %v1617_v63  ;;  %v98_v20 = vunpack.c.l.bf16 %v1617_v63 }
 0x1f5   :  { %v777_v24 = vmul.f32 %v2451_v4, %v99_v28  ;;  %v776_v57 = vmul.f32 %v2452_v14, %v98_v20  ;;  %v783_v28 = vmul.f32 %v2457_v53, %v105_v30  ;;  %v2458_v20 = vunpack.c.l.bf16 %v1563_v36 }
 0x1f6   :  { %v107_v4 = vunpack.c.h.bf16 %v1619_v0  ;;  %v2461_v36 = vunpack.c.h.bf16 %v1607_v56  ;;  %v508_v30 = vsub.f32 0.0, %v1721_v9  ;;  %v506_v53 = vsub.f32 0.0, %v1746_v44 }
 0x1f7   :  { %790 = vadd.xlane.f32.xlu0 %v773_v59  ;;  %788 = vadd.xlane.f32.xlu1 %v772_v47  ;;  %v101_v59 = vunpack.c.h.bf16 %v1633_v11  ;;  %v100_v47 = vunpack.c.l.bf16 %v1633_v11 }
 0x1f8   :  { %v785_v14 = vmul.f32 %v2459_v5, %v107_v4  ;;  %v532_v4 = vmul.f32 1.442695, %v508_v30  ;;  %v504_v5 = vsub.f32 0.0, %v1781_v19 }
 0x1f9   :  { %v779_v55 = vmul.f32 %v2453_v35, %v101_v59  ;;  %v778_v63 = vmul.f32 %v2454_v3, %v100_v47  ;;  %v109_v59 = vunpack.c.h.bf16 %v1635_v12  ;;  %v108_v47 = vunpack.c.l.bf16 %v1635_v12 }
 0x1fa   :  { %v502_v3 = vsub.f32 0.0, %v1704_v32 }
 0x1fb   :  { %794 = vadd.xlane.f32.xlu0 %v775_v1  ;;  %792 = vadd.xlane.f32.xlu1 %v774_v10  ;;  %v103_v1 = vunpack.c.h.bf16 %v1497_v16  ;;  %v102_v10 = vunpack.c.l.bf16 %v1497_v16  ;;  %v782_v16 = vmul.f32 %v2458_v20, %v104_v15  ;;  %v787_v35 = vmul.f32 %v2461_v36, %v109_v59 }
 0x1fc   :  { %v509_v36 = vsub.f32 0.0, %v1753_v21 }
 0x1fd   :  { %v781_v26 = vmul.f32 %v2455_v37, %v103_v1  ;;  %v780_v11 = vmul.f32 %v2456_v17, %v102_v10  ;;  %v503_v1 = vsub.f32 0.0, %v1715_v41  ;;  %v501_v37 = vsub.f32 0.0, %v1734_v43 }
 0x1ff   :  { %798 = vadd.xlane.f32.xlu0 %v777_v24  ;;  %796 = vadd.xlane.f32.xlu1 %v776_v57  ;;  %v106_v24 = vunpack.c.l.bf16 %v1619_v0  ;;  %v2460_v57 = vunpack.c.l.bf16 %v1573_v38  ;;  %v500_v38 = vsub.f32 0.0, %v1713_v46  ;;  %v522_v12 = vmul.f32 1.442695, %v503_v1 }
 0x201   :  { %v784_v58 = vmul.f32 %v2460_v57, %v106_v24  ;;  %v516_v10 = vmul.f32 1.442695, %v500_v38  ;;  %v528_v24 = vmul.f32 1.442695, %v506_v53 }
 0x203   :  { %802 = vadd.xlane.f32.xlu0 %v779_v55  ;;  %800 = vadd.xlane.f32.xlu1 %v778_v63  ;;  %v2462_v55 = vunpack.c.l.bf16 %v1607_v56  ;;  %v520_v63 = vmul.f32 1.442695, %v502_v3  ;;  %v518_v56 = vmul.f32 1.442695, %v501_v37  ;;  %v534_v37 = vmul.f32 1.442695, %v509_v36 }
 0x205   :  { %v786_v0 = vmul.f32 %v2462_v55, %v108_v47  ;;  %1260 = vpow2.f32 %v520_v63  ;;  %v524_v55 = vmul.f32 1.442695, %v504_v5 }
 0x206   :  { %1262 = vpow2.f32 %v516_v10 }
 0x207   :  { %806 = vadd.xlane.f32.xlu0 %v781_v26  ;;  %804 = vadd.xlane.f32.xlu1 %v780_v11  ;;  %1264 = vpow2.f32 %v522_v12  ;;  %v505_v12 = vsub.f32 0.0, %v1819_v23 }
 0x208   :  { %1266 = vpow2.f32 %v518_v56 }
 0x209   :  { %1268 = vpow2.f32 %v532_v4 }
 0x20a   :  { %1270 = vpow2.f32 %v528_v24  ;;  %v526_v24 = vmul.f32 1.442695, %v505_v12 }
 0x20b   :  { %810 = vadd.xlane.f32.xlu0 %v783_v28  ;;  %808 = vadd.xlane.f32.xlu1 %v782_v16  ;;  %1272 = vpow2.f32 %v524_v55 }
 0x20c   :  { %1274 = vpow2.f32 %v534_v37 }
 0x20f   :  { %814 = vadd.xlane.f32.xlu0 %v785_v14  ;;  %812 = vadd.xlane.f32.xlu1 %v784_v58  ;;  %v1261_v17 = vpop.eup %1260 }
 0x210   :  { %v550_v15 = vmul.f32 32.0, %v1261_v17  ;;  %v1263_v58 = vpop.eup %1262 }
 0x211   :  { %v1265_v47 = vpop.eup %1264  ;;  %v548_v38 = vmul.f32 32.0, %v1263_v58  ;;  %v510_v58 = vsub.f32 0.0, %v1702_v31 }
 0x212   :  { %v551_v1 = vmul.f32 32.0, %v1265_v47  ;;  %v1267_v10 = vpop.eup %1266 }
 0x213   :  { %818 = vadd.xlane.f32.xlu0 %v787_v35  ;;  %816 = vadd.xlane.f32.xlu1 %v786_v0  ;;  %v507_v35 = vsub.f32 0.0, %v1768_v40 }
 0x215   :  { %v530_v56 = vmul.f32 1.442695, %v507_v35  ;;  %v1269_v35 = vpop.eup %1268 }
 0x217   :  { %1276 = vpow2.f32 %v530_v56 }
 0x240   :  { %v473_v26 = vpop.xlane.xlu0 %472 }
 0x241   :  { %v566_v16 = vsub.f32 %v473_v26, %v550_v15 }
 0x242   :  { %v601_v28 = vpop.xlane.xlu1 %600 }
 0x243   :  { %v2029_v59 = vsub.f32 %v566_v16, %v601_v28  ;;  %v549_v28 = vmul.f32 32.0, %v1267_v10 }
 0x244   :  { %v2022_v11 = vpop.xlane.xlu0 %488 }
 0x245   :  { %v646_v63 = vadd.f32 %v1748_v39, %v2029_v59 }
 0x247   :  { %v662_v53 = vadd.f32 1e-08, %v646_v63 }
 0x248   :  { %v469_v20 = vpop.xlane.xlu0 %468 }
 0x249   :  { %v564_v26 = vsub.f32 %v469_v20, %v548_v38  ;;  %1278 = vlog2.f32 %v662_v53  ;;  %v1271_v38 = vpop.eup %1270 }
 0x24a   :  { %1280 = vpow2.f32 %v526_v24 }
 0x24c   :  { %v2027_v14 = vpop.xlane.xlu0 %484  ;;  %v471_v57 = vpop.xlane.xlu1 %470 }
 0x24d   :  { %v565_v39 = vsub.f32 %v471_v57, %v549_v28  ;;  %v511_v57 = vsub.f32 0.0, %v1732_v60  ;;  %v513_v28 = vsub.f32 0.0, %v1867_v48 }
 0x250   :  { %v475_v0 = vpop.xlane.xlu0 %474  ;;  %v613_v3 = vpop.xlane.xlu1 %612 }
 0x251   :  { %v567_v17 = vsub.f32 %v475_v0, %v551_v1  ;;  %v556_v1 = vmul.f32 32.0, %v1269_v35 }
 0x253   :  { %v572_v56 = vsub.f32 %v2027_v14, %v556_v1 }
 0x254   :  { %v597_v30 = vpop.xlane.xlu0 %596  ;;  %v603_v15 = vpop.xlane.xlu1 %602 }
 0x255   :  { %v2036_v16 = vsub.f32 %v564_v26, %v597_v30  ;;  %v2038_v4 = vsub.f32 %v567_v17, %v603_v15  ;;  %v554_v26 = vmul.f32 32.0, %v1271_v38  ;;  %v1273_v17 = vpop.eup %1272  ;;  %v538_v30 = vmul.f32 1.442695, %v511_v57 }
 0x256   :  { %v512_v15 = vsub.f32 0.0, %v1850_v51  ;;  %v2055_v24 = vsub.f32 %v572_v56, %v613_v3  ;;  %v542_v57 = vmul.f32 1.442695, %v513_v28  ;;  %v514_v56 = vsub.f32 0.0, %v1761_v7 }
 0x257   :  { %v644_v5 = vadd.f32 %v1770_v62, %v2036_v16  ;;  %v647_v20 = vadd.f32 %v1803_v45, %v2038_v4  ;;  %v536_v45 = vmul.f32 1.442695, %v510_v58 }
 0x258   :  { %v2045_v47 = vpop.xlane.xlu0 %486  ;;  %v599_v36 = vpop.xlane.xlu1 %598  ;;  %v540_v14 = vmul.f32 1.442695, %v512_v15  ;;  %v652_v3 = vadd.f32 %v1778_v13, %v2055_v24 }
 0x259   :  { %v660_v55 = vadd.f32 1e-08, %v644_v5  ;;  %v663_v0 = vadd.f32 1e-08, %v647_v20  ;;  %v2047_v63 = vsub.f32 %v565_v39, %v599_v36  ;;  %v1275_v5 = vpop.eup %1274  ;;  %v552_v20 = vmul.f32 32.0, %v1273_v17 }
 0x25a   :  { %v1277_v36 = vpop.eup %1276 }
 0x25b   :  { %1282 = vlog2.f32 %v660_v55  ;;  %v645_v62 = vadd.f32 %v1783_v22, %v2047_v63  ;;  %v1279_v35 = vpop.eup %1278 }
 0x25c   :  { %v481_v10 = vpop.xlane.xlu0 %480  ;;  %v615_v12 = vpop.xlane.xlu1 %614  ;;  %1284 = vlog2.f32 %v663_v0 }
 0x25d   :  { %v661_v37 = vadd.f32 1e-08, %v645_v62  ;;  %v570_v53 = vsub.f32 %v481_v10, %v554_v26  ;;  %v1281_v38 = vpop.eup %1280  ;;  %v557_v10 = vmul.f32 32.0, %v1275_v5  ;;  %v555_v26 = vmul.f32 32.0, %v1277_v36 }
 0x25e   :  { %v553_v5 = vmul.f32 32.0, %v1281_v38 }
 0x25f   :  { %1286 = vlog2.f32 %v661_v37  ;;  %v573_v28 = vsub.f32 %v2045_v47, %v557_v10  ;;  %v2463_v47 = vld [vmem:[#allocation15_spill] sm:$0xff] }
 0x260   :  { %1288 = vpow2.f32 %v536_v45  ;;  %v477_v22 = vpop.xlane.xlu0 %476  ;;  %v609_v39 = vpop.xlane.xlu1 %608 }
 0x261   :  { %v2057_v58 = vsub.f32 %v570_v53, %v609_v39  ;;  %1290 = vpow2.f32 %v538_v30  ;;  %v568_v55 = vsub.f32 %v477_v22, %v552_v20  ;;  %v515_v30 = vsub.f32 0.0, %v1787_v18 }
 0x262   :  { %v681_v53 = vmul.f32 0.6931472, %v1279_v35  ;;  %1292 = vpow2.f32 %v540_v14  ;;  %v668_v39 = vadd.f32 1e-08, %v652_v3  ;;  %v544_v3 = vmul.f32 1.442695, %v514_v56 }
 0x263   :  { %v650_v0 = vadd.f32 %v1854_v25, %v2057_v58  ;;  %1294 = vpow2.f32 %v542_v57 }
 0x264   :  { %v483_v62 = vpop.xlane.xlu0 %482  ;;  %v605_v45 = vpop.xlane.xlu1 %604 }
 0x265   :  { %v1283_v1 = vpop.eup %1282  ;;  %v666_v37 = vadd.f32 1e-08, %v650_v0  ;;  %v2063_v17 = vsub.f32 %v568_v55, %v605_v45  ;;  %v571_v22 = vsub.f32 %v483_v62, %v555_v26  ;;  %v2071_v45 = vsub.f32 %v573_v28, %v615_v12  ;;  %v2464_v26 = vld [vmem:[#allocation5_spill] sm:$0xff]  ;;  %v2465_v28 = vld [vmem:[#allocation8_spill] sm:$0xff] }
 0x266   :  { %v677_v15 = vmul.f32 0.6931472, %v1283_v1  ;;  %v1285_v25 = vpop.eup %1284 }
 0x267   :  { %v648_v13 = vadd.f32 %v1871_v27, %v2063_v17  ;;  %1296 = vlog2.f32 %v666_v37  ;;  %v710_v27 = vsub.f32 %v2464_v26, %v681_v53  ;;  %v683_v57 = vmul.f32 0.6931472, %v1285_v25 }
 0x268   :  { %v479_v20 = vpop.xlane.xlu0 %478  ;;  %v611_v36 = vpop.xlane.xlu1 %610  ;;  %v708_v55 = vsub.f32 %v1719_v8, %v677_v15  ;;  %v546_v15 = vmul.f32 1.442695, %v515_v30 }
 0x269   :  { %v1287_v0 = vpop.eup %1286  ;;  %v664_v35 = vadd.f32 1e-08, %v648_v13  ;;  %v2073_v1 = vsub.f32 %v571_v22, %v611_v36  ;;  %v569_v38 = vsub.f32 %v479_v20, %v553_v5  ;;  %v2466_v5 = vld [vmem:[#allocation10_spill] sm:$0xff] }
 0x26a   :  { %v1289_v14 = vpop.eup %1288  ;;  %v724_v62 = vmul.f32 %v2463_v47, %v708_v55  ;;  %v679_v10 = vmul.f32 0.6931472, %v1287_v0  ;;  %v653_v55 = vadd.f32 %v1837_v61, %v2071_v45  ;;  %v726_v20 = vmul.f32 %v2466_v5, %v710_v27 }
 0x26b   :  { %1298 = vlog2.f32 %v664_v35  ;;  %v651_v8 = vadd.f32 %v1886_v29, %v2073_v1  ;;  %v1291_v13 = vpop.eup %1290  ;;  %v558_v36 = vmul.f32 32.0, %v1289_v14  ;;  %v2467_v29 = vld [vmem:[#allocation9_spill] sm:$0xff] }
 0x26c   :  { %1300 = vlog2.f32 %v668_v39  ;;  %v491_v12 = vpop.xlane.xlu0 %490  ;;  %v607_v37 = vpop.xlane.xlu1 %606  ;;  %740 = vadd.xlane.f32.xlu1 %v724_v62  ;;  %v709_v22 = vsub.f32 %v2465_v28, %v679_v10  ;;  %v711_v30 = vsub.f32 %v2467_v29, %v683_v57  ;;  %v559_v35 = vmul.f32 32.0, %v1291_v13 }
 0x26d   :  { %v667_v53 = vadd.f32 1e-08, %v651_v8  ;;  %v2082_v25 = vsub.f32 %v569_v38, %v607_v37  ;;  %1302 = vpow2.f32 %v544_v3  ;;  %v574_v39 = vsub.f32 %v2022_v11, %v558_v36  ;;  %v1293_v61 = vpop.eup %1292 }
 0x26e   :  { %v725_v56 = vmul.f32 %v1831_v2, %v709_v22  ;;  %1304 = vpow2.f32 %v546_v15  ;;  %v669_v62 = vadd.f32 1e-08, %v653_v55  ;;  %v1295_v26 = vpop.eup %1294  ;;  %v727_v27 = vmul.f32 %v1810_v42, %v711_v30 }
 0x26f   :  { %v649_v0 = vadd.f32 %v1901_v6, %v2082_v25  ;;  %1306 = vlog2.f32 %v667_v53  ;;  %v575_v11 = vsub.f32 %v491_v12, %v559_v35  ;;  %v560_v15 = vmul.f32 32.0, %v1293_v61 }
 0x270   :  { %v493_v14 = vpop.xlane.xlu0 %492  ;;  %v617_v47 = vpop.xlane.xlu1 %616  ;;  %742 = vadd.xlane.f32.xlu0 %v725_v56  ;;  %744 = vadd.xlane.f32.xlu1 %v726_v20  ;;  %v561_v20 = vmul.f32 32.0, %v1295_v26 }
 0x271   :  { %v665_v2 = vadd.f32 1e-08, %v649_v0  ;;  %v2090_v10 = vsub.f32 %v574_v39, %v617_v47  ;;  %v1297_v57 = vpop.eup %1296  ;;  %v576_v55 = vsub.f32 %v493_v14, %v560_v15  ;;  %v2469_v47 = vld [vmem:[#allocation12_spill] sm:$0xff] }
 0x272   :  { %v689_v36 = vmul.f32 0.6931472, %v1297_v57 }
 0x273   :  { %1308 = vlog2.f32 %v665_v2  ;;  %v654_v6 = vadd.f32 %v1759_v34, %v2090_v10  ;;  %v2468_v34 = vld [vmem:[#allocation14_spill] sm:$0xff] }
 0x274   :  { %v495_v3 = vpop.xlane.xlu0 %494  ;;  %v619_v38 = vpop.xlane.xlu1 %618  ;;  %746 = vadd.xlane.f32.xlu0 %v727_v27  ;;  %1310 = vlog2.f32 %v669_v62  ;;  %v714_v61 = vsub.f32 %v2469_v47, %v689_v36  ;;  %v2475_v47 = vld [vmem:[#allocation16_spill] sm:$0xff] }
 0x275   :  { %v1299_v8 = vpop.eup %1298  ;;  %v670_v37 = vadd.f32 1e-08, %v654_v6  ;;  %v2095_v28 = vsub.f32 %v575_v11, %v619_v38  ;;  %v577_v62 = vsub.f32 %v495_v3, %v561_v20 }
 0x276   :  { %v1301_v22 = vpop.eup %1300  ;;  %v685_v13 = vmul.f32 0.6931472, %v1299_v8  ;;  %v2470_v8 = vld [vmem:[#allocation7_spill] sm:$0xff] }
 0x277   :  { %1312 = vlog2.f32 %v670_v37  ;;  %v655_v42 = vadd.f32 %v1916_v52, %v2095_v28  ;;  %v1303_v5 = vpop.eup %1302  ;;  %v693_v39 = vmul.f32 0.6931472, %v1301_v22 }
 0x278   :  { %v497_v12 = vpop.xlane.xlu0 %496  ;;  %v621_v53 = vpop.xlane.xlu1 %620  ;;  %v712_v56 = vsub.f32 %v2468_v34, %v685_v13  ;;  %v562_v2 = vmul.f32 32.0, %v1303_v5  ;;  %v2472_v34 = vld [vmem:[#allocation17_spill] sm:$0xff] }
 0x279   :  { %v671_v29 = vadd.f32 1e-08, %v655_v42  ;;  %v2100_v30 = vsub.f32 %v576_v55, %v621_v53  ;;  %v1305_v0 = vpop.eup %1304  ;;  %v716_v15 = vsub.f32 %v2470_v8, %v693_v39 }
 0x27a   :  { %v728_v35 = vmul.f32 %v1875_v50, %v712_v56  ;;  %v1307_v14 = vpop.eup %1306  ;;  %v563_v6 = vmul.f32 32.0, %v1305_v0  ;;  %v730_v50 = vmul.f32 %v1858_v33, %v714_v61  ;;  %v578_v13 = vsub.f32 %v497_v12, %v562_v2  ;;  %v2473_v33 = vld [vmem:[#allocation13_spill] sm:$0xff]  ;;  %v2476_v2 = vld [vmem:[#allocation30_spill] sm:$0xff] }
 0x27b   :  { %1314 = vlog2.f32 %v671_v29  ;;  %v656_v52 = vadd.f32 %v1927_v54, %v2100_v30  ;;  %v691_v22 = vmul.f32 0.6931472, %v1307_v14  ;;  %v2471_v54 = vld [vmem:[#allocation28_spill] sm:$0xff]  ;;  %v732_v0 = vmul.f32 %v2473_v33, %v716_v15  ;;  %v2478_v15 = vld [vmem:[#allocation22_spill] sm:$0xff] }
 0x27c   :  { %v499_v27 = vpop.xlane.xlu0 %498  ;;  %v623_v57 = vpop.xlane.xlu1 %622  ;;  %748 = vadd.xlane.f32.xlu1 %v728_v35  ;;  %v2474_v35 = vld [vmem:[#allocation24_spill] sm:$0xff] }
 0x27d   :  { %v1309_v26 = vpop.eup %1308  ;;  %v672_v11 = vadd.f32 1e-08, %v656_v52  ;;  %v2106_v38 = vsub.f32 %v577_v62, %v623_v57  ;;  %v579_v36 = vsub.f32 %v499_v27, %v563_v6  ;;  %v715_v61 = vsub.f32 %v2475_v47, %v691_v22  ;;  %v2477_v57 = vld [vmem:[#allocation6_spill] sm:$0xff] }
 0x27e   :  { %v687_v37 = vmul.f32 0.6931472, %v1309_v26  ;;  %v1311_v3 = vpop.eup %1310 }
 0x27f   :  { %1316 = vlog2.f32 %v672_v11  ;;  %v657_v55 = vadd.f32 %v2471_v54, %v2106_v38  ;;  %v695_v62 = vmul.f32 0.6931472, %v1311_v3  ;;  %v2481_v54 = vld [vmem:[#allocation18_spill] sm:$0xff] }
 0x280   :  { %v627_v42 = vpop.xlane.xlu0 %626  ;;  %v625_v53 = vpop.xlane.xlu1 %624  ;;  %752 = vadd.xlane.f32.xlu1 %v730_v50  ;;  %v713_v56 = vsub.f32 %v2472_v34, %v687_v37  ;;  %v731_v50 = vmul.f32 %v2478_v15, %v715_v61  ;;  %v2479_v37 = vld [vmem:[#allocation26_spill] sm:$0xff]  ;;  %v2486_v61 = vld [vmem:[#allocation21_spill] sm:$0xff] }
 0x281   :  { %v1313_v5 = vpop.eup %1312  ;;  %v673_v20 = vadd.f32 1e-08, %v657_v55  ;;  %v2113_v29 = vsub.f32 %v579_v36, %v627_v42  ;;  %v2115_v39 = vsub.f32 %v578_v13, %v625_v53  ;;  %v2480_v13 = vld [vmem:[#allocation11_spill] sm:$0xff] }
 0x282   :  { %v729_v12 = vmul.f32 %v2474_v35, %v713_v56  ;;  %v697_v14 = vmul.f32 0.6931472, %v1313_v5  ;;  %v717_v3 = vsub.f32 %v2480_v13, %v695_v62  ;;  %v2482_v42 = vld [vmem:[#allocation19_spill] sm:$0xff]  ;;  %v2483_v56 = vld [vmem:[#allocation20_spill] sm:$0xff] }
 0x283   :  { %1318 = vlog2.f32 %v673_v20  ;;  %v659_v52 = vadd.f32 %v1957_v49, %v2113_v29  ;;  %v658_v27 = vadd.f32 %v2476_v2, %v2115_v39 }
 0x284   :  { %750 = vadd.xlane.f32.xlu0 %v729_v12  ;;  %756 = vadd.xlane.f32.xlu1 %v732_v0  ;;  %v718_v26 = vsub.f32 %v2477_v57, %v697_v14  ;;  %v733_v55 = vmul.f32 %v2481_v54, %v717_v3  ;;  %v2484_v0 = vld [vmem:[#allocation27_spill] sm:$0xff]  ;;  %v2485_v12 = vld [vmem:[#allocation29_spill] sm:$0xff]  ;;  %v791_v3 = vpop.xlane.xlu0 %790 }
 0x285   :  { %v1315_v11 = vpop.eup %1314  ;;  %v675_v6 = vadd.f32 1e-08, %v659_v52  ;;  %v674_v8 = vadd.f32 1e-08, %v658_v27  ;;  %v2487_v27 = vld [vmem:[#allocation31_spill] sm:$0xff] }
 0x286   :  { %v734_v22 = vmul.f32 %v2479_v37, %v718_v26  ;;  %v699_v36 = vmul.f32 0.6931472, %v1315_v11  ;;  %v2488_v11 = vld [vmem:[#allocation25_spill] sm:$0xff] }
 0x287   :  { %1320 = vlog2.f32 %v675_v6 }
 0x288   :  { %1322 = vlog2.f32 %v674_v8  ;;  %754 = vadd.xlane.f32.xlu0 %v731_v50  ;;  %760 = vadd.xlane.f32.xlu1 %v734_v22  ;;  %v719_v53 = vsub.f32 %v2482_v42, %v699_v36  ;;  %v2489_v8 = vld [vmem:[#allocation23_spill] sm:$0xff]  ;;  %v2490_v50 = vld [vmem:[#allocation32_spill] sm:$0xff]  ;;  %v2491_v22 = vld [vmem:[#allocation33_spill] sm:$0xff]  ;;  %v789_v36 = vpop.xlane.xlu1 %788  ;;  %v795_v54 = vpop.xlane.xlu0 %794  ;;  %v2143_v42 = vsub.f32 %v791_v3, %v1734_v43 }
 0x289   :  { %v1317_v49 = vpop.eup %1316 }
 0x28a   :  { %v701_v34 = vmul.f32 0.6931472, %v1317_v49  ;;  %v735_v35 = vmul.f32 %v2484_v0, %v719_v53  ;;  %v2140_v49 = vsub.f32 %v789_v36, %v1713_v46 }
 0x28c   :  { %758 = vadd.xlane.f32.xlu0 %v733_v55  ;;  %v720_v5 = vsub.f32 %v2483_v56, %v701_v34  ;;  %v793_v55 = vpop.xlane.xlu1 %792  ;;  %v836_v53 = vmul.f32 1.442695, %v2140_v49  ;;  %v838_v56 = vmul.f32 1.442695, %v2143_v42 }
 0x28d   :  { %v1319_v20 = vpop.eup %1318  ;;  %v2147_v34 = vsub.f32 %v793_v55, %v1704_v32 }
 0x28e   :  { %v703_v33 = vmul.f32 0.6931472, %v1319_v20  ;;  %v736_v47 = vmul.f32 %v2485_v12, %v720_v5  ;;  %v799_v5 = vpop.xlane.xlu0 %798  ;;  %1324 = vpow2.f32 %v836_v53 }
 0x28f   :  { %v840_v46 = vmul.f32 1.442695, %v2147_v34  ;;  %1326 = vpow2.f32 %v838_v56 }
 0x290   :  { %762 = vadd.xlane.f32.xlu0 %v735_v35  ;;  %764 = vadd.xlane.f32.xlu1 %v736_v47  ;;  %v721_v14 = vsub.f32 %v2486_v61, %v703_v33  ;;  %v797_v20 = vpop.xlane.xlu1 %796  ;;  %v2151_v33 = vsub.f32 %v795_v54, %v1715_v41 }
 0x291   :  { %v1321_v62 = vpop.eup %1320  ;;  %1328 = vpow2.f32 %v840_v46  ;;  %v2156_v32 = vsub.f32 %v797_v20, %v1781_v19 }
 0x292   :  { %v1323_v52 = vpop.eup %1322  ;;  %v707_v2 = vmul.f32 0.6931472, %v1321_v62  ;;  %v737_v57 = vmul.f32 %v2487_v27, %v721_v14  ;;  %v842_v0 = vmul.f32 1.442695, %v2151_v33  ;;  %v803_v43 = vpop.xlane.xlu0 %802  ;;  %v2164_v27 = vsub.f32 %v799_v5, %v1819_v23 }
 0x293   :  { %v705_v26 = vmul.f32 0.6931472, %v1323_v52  ;;  %v844_v62 = vmul.f32 1.442695, %v2156_v32 }
 0x294   :  { %766 = vadd.xlane.f32.xlu0 %v737_v57  ;;  %v723_v6 = vsub.f32 %v2488_v11, %v707_v2  ;;  %v801_v35 = vpop.xlane.xlu1 %800  ;;  %1330 = vpow2.f32 %v842_v0 }
 0x295   :  { %v722_v15 = vsub.f32 %v2489_v8, %v705_v26  ;;  %v2160_v41 = vsub.f32 %v801_v35, %v1746_v44  ;;  %1332 = vpow2.f32 %v844_v62 }
 0x296   :  { %v739_v37 = vmul.f32 %v2490_v50, %v723_v6  ;;  %v807_v47 = vpop.xlane.xlu0 %806  ;;  %v2174_v50 = vsub.f32 %v803_v43, %v1768_v40 }
 0x297   :  { %v738_v13 = vmul.f32 %v2491_v22, %v722_v15  ;;  %v848_v19 = vmul.f32 1.442695, %v2160_v41 }
 0x298   :  { %770 = vadd.xlane.f32.xlu0 %v739_v37  ;;  %v1325_v12 = vpop.eup %1324  ;;  %v805_v61 = vpop.xlane.xlu1 %804 }
 0x299   :  { %768 = vadd.xlane.f32.xlu1 %v738_v13  ;;  %v1327_v14 = vpop.eup %1326  ;;  %v868_v52 = vadd.f32 %v1325_v12, %v2036_v16  ;;  %v2169_v26 = vsub.f32 %v805_v61, %v1721_v9  ;;  %v846_v16 = vmul.f32 1.442695, %v2164_v27  ;;  %1334 = vpow2.f32 %v848_v19 }
 0x29a   :  { %v869_v57 = vadd.f32 %v1327_v14, %v2047_v63  ;;  %v811_v11 = vpop.xlane.xlu0 %810  ;;  %v2183_v13 = vsub.f32 %v807_v47, %v1753_v21 }
 0x29b   :  { %v1329_v2 = vpop.eup %1328  ;;  %v884_v8 = vadd.f32 1e-08, %v868_v52  ;;  %v852_v63 = vmul.f32 1.442695, %v2169_v26  ;;  %v2186_v40 = vsub.f32 %v811_v11, %v1732_v60 }
 0x29c   :  { %v809_v6 = vpop.xlane.xlu1 %808  ;;  %v870_v44 = vadd.f32 %v1329_v2, %v2029_v59  ;;  %v885_v23 = vadd.f32 1e-08, %v869_v57  ;;  %v850_v59 = vmul.f32 1.442695, %v2174_v50 }
 0x29d   :  { %v2178_v37 = vsub.f32 %v809_v6, %v1702_v31  ;;  %1336 = vlog2.f32 %v884_v8  ;;  %v858_v21 = vmul.f32 1.442695, %v2186_v40 }
 0x29e   :  { %v1331_v15 = vpop.eup %1330  ;;  %v886_v9 = vadd.f32 1e-08, %v870_v44  ;;  %1338 = vpow2.f32 %v846_v16  ;;  %v815_v3 = vpop.xlane.xlu0 %814 }
 0x29f   :  { %v871_v22 = vadd.f32 %v1331_v15, %v2038_v4  ;;  %1340 = vlog2.f32 %v885_v23  ;;  %v856_v36 = vmul.f32 1.442695, %v2178_v37  ;;  %v1333_v55 = vpop.eup %1332  ;;  %v854_v4 = vmul.f32 1.442695, %v2183_v13 }
 0x2a0   :  { %1342 = vpow2.f32 %v852_v63  ;;  %v813_v31 = vpop.xlane.xlu1 %812  ;;  %v872_v60 = vadd.f32 %v1333_v55, %v2063_v17  ;;  %v2196_v46 = vsub.f32 %v815_v3, %v1867_v48  ;;  %v965_v55 = vld [vmem:[%s2368_s4 + $0x8] sm:$0xff] }
 0x2a1   :  { %1344 = vlog2.f32 %v886_v9  ;;  %v887_v54 = vadd.f32 1e-08, %v871_v22  ;;  %v2191_v53 = vsub.f32 %v813_v31, %v1850_v51 }
 0x2a2   :  { %1346 = vpow2.f32 %v850_v59  ;;  %v819_v56 = vpop.xlane.xlu0 %818  ;;  %v888_v47 = vadd.f32 1e-08, %v872_v60  ;;  %v862_v52 = vmul.f32 1.442695, %v2196_v46 }
 0x2a3   :  { %1348 = vpow2.f32 %v856_v36  ;;  %v1335_v5 = vpop.eup %1334  ;;  %v860_v0 = vmul.f32 1.442695, %v2191_v53  ;;  %v2200_v51 = vsub.f32 %v819_v56, %v1787_v18 }
 0x2a4   :  { %1350 = vlog2.f32 %v887_v54  ;;  %v817_v12 = vpop.xlane.xlu1 %816  ;;  %v874_v61 = vadd.f32 %v1335_v5, %v2057_v58 }
 0x2a5   :  { %1352 = vpow2.f32 %v854_v4  ;;  %v866_v57 = vmul.f32 1.442695, %v2200_v51  ;;  %v2207_v19 = vsub.f32 %v817_v12, %v1761_v7 }
 0x2a6   :  { %1354 = vpow2.f32 %v858_v21  ;;  %v890_v18 = vadd.f32 1e-08, %v874_v61 }
 0x2a7   :  { %v1337_v20 = vpop.eup %1336  ;;  %1356 = vpow2.f32 %v860_v0  ;;  %v864_v9 = vmul.f32 1.442695, %v2207_v19  ;;  %v1389_v0 = vld [vmem:[%s2366_s2 + $0x8] sm:$0xff] }
 0x2a8   :  { %v1339_v43 = vpop.eup %1338  ;;  %v901_v17 = vmul.f32 0.6931472, %v1337_v20  ;;  %1358 = vlog2.f32 %v888_v47  ;;  %vm373_vm1 = vcmp.ge.s32.totalorder %v1389_v0, 0 }
 0x2a9   :  { %v1341_v35 = vpop.eup %1340  ;;  %v873_v48 = vadd.f32 %v1339_v43, %v2082_v25  ;;  %1360 = vpow2.f32 %v862_v52  ;;  %v964_v25 = vld [vmem:[%s2368_s4] sm:$0xff] }
 0x2aa   :  { %v1343_v14 = vpop.eup %1342  ;;  %v932_v58 = vsub.f32 %v2140_v49, %v901_v17  ;;  %v903_v8 = vmul.f32 0.6931472, %v1341_v35  ;;  %1362 = vpow2.f32 %v866_v57  ;;  %v1390_v17 = vld [vmem:[%s2366_s2 + $0x10] sm:$0xff] }
 0x2ab   :  { %v1345_v62 = vpop.eup %1344  ;;  %v876_v11 = vadd.f32 %v1343_v14, %v2055_v24  ;;  %v889_v23 = vadd.f32 1e-08, %v873_v48  ;;  %1364 = vlog2.f32 %v890_v18  ;;  %vm374_vm2 = vcmp.ge.s32.totalorder %v1390_v17, 0 }
 0x2ac   :  { %v1347_v2 = vpop.eup %1346  ;;  %v905_v44 = vmul.f32 0.6931472, %v1345_v62  ;;  %v933_v36 = vsub.f32 %v2143_v42, %v903_v8  ;;  %v967_v62 = vld [vmem:[%s2368_s4 + $0x18] sm:$0xff] }
 0x2ad   :  { %v1349_v6 = vpop.eup %1348  ;;  %v875_v7 = vadd.f32 %v1347_v2, %v2073_v1  ;;  %v892_v22 = vadd.f32 1e-08, %v876_v11  ;;  %v1388_v1 = vld [vmem:[%s2366_s2] sm:$0xff]  ;;  %1366 = vlog2.f32 %v889_v23 }
 0x2ae   :  { %v1351_v15 = vpop.eup %1350  ;;  %v878_v49 = vadd.f32 %v1349_v6, %v2090_v10  ;;  %v934_v31 = vsub.f32 %v2147_v34, %v905_v44  ;;  %vm372_vm0 = vcmp.ge.s32.totalorder %v1388_v1, 0  ;;  %v966_v10 = vld [vmem:[%s2368_s4 + $0x10] sm:$0xff]  ;;  %1368 = vpow2.f32 %v864_v9 }
 0x2af   :  { %v1353_v63 = vpop.eup %1352  ;;  %v907_v54 = vmul.f32 0.6931472, %v1351_v15  ;;  %v891_v42 = vadd.f32 1e-08, %v875_v7  ;;  %1370 = vlog2.f32 %v892_v22 }
 0x2b0   :  { %v1355_v59 = vpop.eup %1354  ;;  %v877_v34 = vadd.f32 %v1353_v63, %v2071_v45  ;;  %v894_v43 = vadd.f32 1e-08, %v878_v49 }
 0x2b1   :  { %v1357_v20 = vpop.eup %1356  ;;  %v879_v35 = vadd.f32 %v1355_v59, %v2095_v28  ;;  %v935_v45 = vsub.f32 %v2151_v33, %v907_v54  ;;  %1372 = vlog2.f32 %v891_v42 }
 0x2b2   :  { %v1359_v14 = vpop.eup %1358  ;;  %v893_v28 = vadd.f32 1e-08, %v877_v34  ;;  %v880_v18 = vadd.f32 %v1357_v20, %v2100_v30  ;;  %1374 = vlog2.f32 %v894_v43 }
 0x2b3   :  { %v1361_v33 = vpop.eup %1360  ;;  %v895_v11 = vadd.f32 1e-08, %v879_v35  ;;  %v909_v15 = vmul.f32 0.6931472, %v1359_v14  ;;  %v1392_v35 = vld [vmem:[%s2366_s2 + $0x20] sm:$0xff] }
 0x2b4   :  { %v1363_v6 = vpop.eup %1362  ;;  %1376 = vlog2.f32 %v893_v28  ;;  %v896_v9 = vadd.f32 1e-08, %v880_v18  ;;  %vm376_vm5 = vcmp.ge.s32.totalorder %v1392_v35, 0 }
 0x2b5   :  { %1378 = vlog2.f32 %v895_v11  ;;  %v972_v11 = vld [vmem:[%s2368_s4 + $0x40] sm:$0xff] }
 0x2b6   :  { %1380 = vlog2.f32 %v896_v9  ;;  %v1394_v9 = vld [vmem:[%s2366_s2 + $0x28] sm:$0xff] }
 0x2b7   :  { %vm377_vm7 = vcmp.ge.s32.totalorder %v1394_v9, 0 }
 0x2f9   :  { %v741_v16 = vpop.xlane.xlu1 %740 }
 0x2fa   :  { %v948_v24 = vsub.f32 %v741_v16, %v932_v58  ;;  %v1391_v16 = vld [vmem:[%s2366_s2 + $0x18] sm:$0xff] }
 0x2fb   :  { %vm375_vm4 = vcmp.ge.s32.totalorder %v1391_v16, 0 }
 0x2fc   :  { %v980_v3 = vmul.f32 %v964_v25, %v948_v24  ;;  %v1365_v25 = vpop.eup %1364  ;;  %v881_v24 = vadd.f32 %v1361_v33, %v2106_v38  ;;  %v883_v38 = vadd.f32 %v1363_v6, %v2113_v29  ;;  %v970_v29 = vld [vmem:[%s2368_s4 + $0x30] sm:$0xff]  ;;  %v969_v33 = vld [vmem:[%s2368_s4 + $0x28] sm:$0xff] }
 0x2fd   :  { %v743_v4 = vpop.xlane.xlu0 %742  ;;  %v745_v21 = vpop.xlane.xlu1 %744  ;;  %v913_v54 = vmul.f32 0.6931472, %v1365_v25 }
 0x2fe   :  { %v996_v56 = vmul.f32 -1.4285715, %v980_v3  ;;  %v949_v60 = vsub.f32 %v743_v4, %v933_v36  ;;  %v950_v5 = vsub.f32 %v745_v21, %v934_v31  ;;  %v1367_v22 = vpop.eup %1366  ;;  %v936_v31 = vsub.f32 %v2156_v32, %v909_v15  ;;  %v968_v4 = vld [vmem:[%s2368_s4 + $0x20] sm:$0xff] }
 0x2ff   :  { %v1369_v59 = vpop.eup %1368  ;;  %v897_v34 = vadd.f32 1e-08, %v881_v24  ;;  %v938_v20 = vsub.f32 %v2160_v41, %v913_v54  ;;  %v971_v24 = vld [vmem:[%s2368_s4 + $0x38] sm:$0xff] }
 0x300   :  { %v1012_v12 = vsel %vm372_vm0, %v996_v56, 0.0  ;;  %v981_v47 = vmul.f32 %v965_v55, %v949_v60  ;;  %v982_v61 = vmul.f32 %v966_v10, %v950_v5  ;;  %v1371_v1 = vpop.eup %1370  ;;  %v911_v60 = vmul.f32 0.6931472, %v1367_v22 }
 0x301   :  { %v747_v52 = vpop.xlane.xlu0 %746  ;;  %v1029_v23 = vsel %vm1028_vm3, %v1012_v12, 0.0  ;;  %v1373_v56 = vpop.eup %1372  ;;  %v882_v5 = vadd.f32 %v1369_v59, %v2115_v39  ;;  %v917_v0 = vmul.f32 0.6931472, %v1371_v1  ;;  %1382 = vlog2.f32 %v897_v34  ;;  %v1397_v34 = vld [vmem:[%s2366_s2 + $0x50] sm:$0xff] }
 0x302   :  { %v997_v48 = vmul.f32 -1.4285715, %v981_v47  ;;  %v998_v2 = vmul.f32 -1.4285715, %v982_v61  ;;  %v951_v57 = vsub.f32 %v747_v52, %v935_v45  ;;  %v1375_v43 = vpop.eup %1374  ;;  %v899_v47 = vadd.f32 1e-08, %v883_v38 }
 0x303   :  { %v1377_v39 = vpop.eup %1376  ;;  %v937_v14 = vsub.f32 %v2164_v27, %v911_v60  ;;  %v915_v41 = vmul.f32 0.6931472, %v1373_v56  ;;  %v898_v17 = vadd.f32 1e-08, %v882_v5  ;;  %v940_v28 = vsub.f32 %v2169_v26, %v917_v0  ;;  %v973_v60 = vld [vmem:[%s2368_s4 + $0x48] sm:$0xff] }
 0x304   :  { %v1013_v58 = vsel %vm373_vm1, %v997_v48, 0.0  ;;  %v1014_v8 = vsel %vm374_vm2, %v998_v2, 0.0  ;;  %v983_v44 = vmul.f32 %v967_v62, %v951_v57  ;;  %v921_v48 = vmul.f32 0.6931472, %v1375_v43  ;;  %v1379_v2 = vpop.eup %1378  ;;  %v1393_v57 = vld [vmem:[%s2366_s2 + $0x30] sm:$0xff] }
 0x305   :  { %v1030_v7 = vsel %vm1028_vm3, %v1013_v58, 0.0  ;;  %v1032_v49 = vsel %vm1028_vm3, %v1014_v8, 0.0  ;;  %vm378_vm6 = vcmp.ge.s32.totalorder %v1393_v57, 0  ;;  %1384 = vlog2.f32 %v899_v47  ;;  %v1381_v16 = vpop.eup %1380 }
 0x306   :  { %v1031_v30 = vadd.f32 %v1030_v7, %v1029_v23  ;;  %v999_v63 = vmul.f32 -1.4285715, %v983_v44  ;;  %v939_v15 = vsub.f32 %v2174_v50, %v915_v41  ;;  %v919_v25 = vmul.f32 0.6931472, %v1377_v39  ;;  %v974_v50 = vld [vmem:[%s2368_s4 + $0x50] sm:$0xff] }
 0x307   :  { %1386 = vlog2.f32 %v898_v17  ;;  %v923_v59 = vmul.f32 0.6931472, %v1379_v2  ;;  %v925_v1 = vmul.f32 0.6931472, %v1381_v16  ;;  %vm382_vm10 = vcmp.ge.s32.totalorder %v1397_v34, 0 }
 0x308   :  { %v1033_v3 = vadd.f32 %v1032_v49, %v1031_v30  ;;  %v1015_v36 = vsel %vm375_vm4, %v999_v63, 0.0  ;;  %v942_v63 = vsub.f32 %v2178_v37, %v921_v48  ;;  %v1395_v37 = vld [vmem:[%s2366_s2 + $0x40] sm:$0xff] }
 0x309   :  { %v1034_v55 = vsel %vm1028_vm3, %v1015_v36, 0.0  ;;  %v749_v10 = vpop.xlane.xlu1 %748  ;;  %vm380_vm8 = vcmp.ge.s32.totalorder %v1395_v37, 0  ;;  %v944_v47 = vsub.f32 %v2191_v53, %v925_v1 }
 0x30a   :  { %v1035_v21 = vadd.f32 %v1034_v55, %v1033_v3  ;;  %v952_v42 = vsub.f32 %v749_v10, %v936_v31 }
 0x30b   :  { %v1383_v55 = vpop.eup %1382 }
 0x30c   :  { %v984_v32 = vmul.f32 %v968_v4, %v952_v42  ;;  %v1396_v42 = vld [vmem:[%s2366_s2 + $0x38] sm:$0xff] }
 0x30d   :  { %v753_v12 = vpop.xlane.xlu1 %752  ;;  %vm379_vm9 = vcmp.ge.s32.totalorder %v1396_v42, 0 }
 0x30e   :  { %v1000_v61 = vmul.f32 -1.4285715, %v984_v32  ;;  %v954_v45 = vsub.f32 %v753_v12, %v938_v20  ;;  %v943_v32 = vsub.f32 %v2186_v40, %v923_v59  ;;  %v1398_v40 = vld [vmem:[%s2366_s2 + $0x48] sm:$0xff] }
 0x30f   :  { %v1385_v35 = vpop.eup %1384  ;;  %vm381_vm11 = vcmp.ge.s32.totalorder %v1398_v40, 0 }
 0x310   :  { %v1016_v62 = vsel %vm376_vm5, %v1000_v61, 0.0  ;;  %v986_v52 = vmul.f32 %v970_v29, %v954_v45  ;;  %v927_v61 = vmul.f32 0.6931472, %v1383_v55 }
 0x311   :  { %v1036_v18 = vsel %vm1028_vm3, %v1016_v62, 0.0  ;;  %v751_v27 = vpop.xlane.xlu0 %750  ;;  %v757_v6 = vpop.xlane.xlu1 %756 }
 0x312   :  { %v1037_v26 = vadd.f32 %v1036_v18, %v1035_v21  ;;  %v1002_v58 = vmul.f32 -1.4285715, %v986_v52  ;;  %v953_v8 = vsub.f32 %v751_v27, %v937_v14  ;;  %v956_v44 = vsub.f32 %v757_v6, %v940_v28  ;;  %v1387_v17 = vpop.eup %1386  ;;  %v975_v52 = vld [vmem:[%s2368_s4 + $0x58] sm:$0xff]  ;;  %v976_v28 = vld [vmem:[%s2368_s4 + $0x60] sm:$0xff] }
 0x313   :  { %v941_v21 = vsub.f32 %v2183_v13, %v919_v25  ;;  %v931_v6 = vmul.f32 0.6931472, %v1385_v35  ;;  %v1400_v25 = vld [vmem:[%s2366_s2 + $0x60] sm:$0xff] }
 0x314   :  { %v1018_v23 = vsel %vm378_vm6, %v1002_v58, 0.0  ;;  %v985_v7 = vmul.f32 %v969_v33, %v953_v8  ;;  %v988_v30 = vmul.f32 %v972_v11, %v956_v44  ;;  %v945_v11 = vsub.f32 %v2196_v46, %v927_v61  ;;  %v977_v46 = vld [vmem:[%s2368_s4 + $0x68] sm:$0xff] }
 0x315   :  { %v755_v22 = vpop.xlane.xlu0 %754  ;;  %v761_v49 = vpop.xlane.xlu1 %760  ;;  %v1040_v29 = vsel %vm1028_vm3, %v1018_v23, 0.0  ;;  %vm384_vm13 = vcmp.ge.s32.totalorder %v1400_v25, 0 }
 0x316   :  { %v1001_v3 = vmul.f32 -1.4285715, %v985_v7  ;;  %v955_v36 = vsub.f32 %v755_v22, %v939_v15  ;;  %v958_v31 = vsub.f32 %v761_v49, %v942_v63  ;;  %v1004_v54 = vmul.f32 -1.4285715, %v988_v30  ;;  %v1399_v15 = vld [vmem:[%s2366_s2 + $0x58] sm:$0xff] }
 0x317   :  { %vm383_vm12 = vcmp.ge.s32.totalorder %v1399_v15, 0  ;;  %v929_v7 = vmul.f32 0.6931472, %v1387_v17 }
 0x318   :  { %v1017_v4 = vsel %vm377_vm7, %v1001_v3, 0.0  ;;  %v987_v10 = vmul.f32 %v971_v24, %v955_v36  ;;  %v990_v38 = vmul.f32 %v974_v50, %v958_v31  ;;  %v1020_v12 = vsel %vm380_vm8, %v1004_v54, 0.0  ;;  %v1401_v31 = vld [vmem:[%s2366_s2 + $0x68] sm:$0xff]  ;;  %v979_v54 = vld [vmem:[%s2368_s4 + $0x78] sm:$0xff] }
 0x319   :  { %v1038_v56 = vsel %vm1028_vm3, %v1017_v4, 0.0  ;;  %v759_v5 = vpop.xlane.xlu0 %758  ;;  %v1044_v27 = vsel %vm1028_vm3, %v1020_v12, 0.0  ;;  %v947_v50 = vsub.f32 %v2200_v51, %v931_v6  ;;  %vm385_vm14 = vcmp.ge.s32.totalorder %v1401_v31, 0 }
 0x31a   :  { %v1039_v13 = vadd.f32 %v1038_v56, %v1037_v26  ;;  %v1003_v20 = vmul.f32 -1.4285715, %v987_v10  ;;  %v1006_v0 = vmul.f32 -1.4285715, %v990_v38  ;;  %v957_v43 = vsub.f32 %v759_v5, %v941_v21  ;;  %v978_v38 = vld [vmem:[%s2368_s4 + $0x70] sm:$0xff] }
 0x31b   :  { %v946_v55 = vsub.f32 %v2207_v19, %v929_v7  ;;  %v1402_v19 = vld [vmem:[%s2366_s2 + $0x78] sm:$0xff] }
 0x31c   :  { %v1019_v45 = vsel %vm379_vm9, %v1003_v20, 0.0  ;;  %v1041_v39 = vadd.f32 %v1040_v29, %v1039_v13  ;;  %v1022_v14 = vsel %vm382_vm10, %v1006_v0, 0.0  ;;  %v989_v41 = vmul.f32 %v973_v60, %v957_v43  ;;  %v1403_v20 = vld [vmem:[%s2366_s2 + $0x70] sm:$0xff]  ;;  %s1430_s2 = smov [#allocation2]  }
 0x31d   :  { %v1042_v62 = vsel %vm1028_vm3, %v1019_v45, 0.0  ;;  %v763_v53 = vpop.xlane.xlu0 %762  ;;  %v765_v48 = vpop.xlane.xlu1 %764  ;;  %v1048_v22 = vsel %vm1028_vm3, %v1022_v14, 0.0  ;;  %vm387_vm15 = vcmp.ge.s32.totalorder %v1402_v19, 0  ;;  %vm386_vm0 = vcmp.ge.s32.totalorder %v1403_v20, 0  ;;  %s1077_s4 = sshll.u32 %s1430_s2, 4  ;;  %s1078_s4 = int_to_ptr.vmem [resolvable:$true] %s1077_s4 }
 0x31e   :  { %v1043_v2 = vadd.f32 %v1042_v62, %v1041_v39  ;;  %v1005_v57 = vmul.f32 -1.4285715, %v989_v41  ;;  %v959_v18 = vsub.f32 %v763_v53, %v943_v32  ;;  %v960_v33 = vsub.f32 %v765_v48, %v944_v47  ;;  %s1404_s15 = scalar_lea.vmem %s1078_s4, 128  ;;  %p1409_p1 = scmp.lt.s32.totalorder %s1078_s4, %s1078_s4 }
 0x31f   :  { %p1405_p0 = scmp.ne.s32.totalorder %s1078_s4, %s1404_s15  ;;  %p1410_p2 = scmp.lt.s32.totalorder %s1404_s15, %s1404_s15 }
 0x320   :  { %v1021_v26 = vsel %vm381_vm11, %v1005_v57, 0.0  ;;  %v1045_v58 = vadd.f32 %v1044_v27, %v1043_v2  ;;  %v991_v8 = vmul.f32 %v975_v52, %v959_v18  ;;  %v992_v44 = vmul.f32 %v976_v28, %v960_v33 }
 0x321   :  { %v1046_v16 = vsel %vm1028_vm3, %v1021_v26, 0.0  ;;  %v767_v23 = vpop.xlane.xlu0 %766  ;;  %p1411_p3 = por %p1410_p2, %p1409_p1 }
 0x322   :  { %v1047_v30 = vadd.f32 %v1046_v16, %v1045_v58  ;;  %v1007_v63 = vmul.f32 -1.4285715, %v991_v8  ;;  %v1008_v9 = vmul.f32 -1.4285715, %v992_v44  ;;  %v961_v24 = vsub.f32 %v767_v23, %v945_v11 }
 0x323   :  { %p1412_p4 = pnand %p1411_p3, %p1405_p0 }
 0x324   :  { %v1023_v49 = vsel %vm383_vm12, %v1007_v63, 0.0  ;;  %v1049_v59 = vadd.f32 %v1048_v22, %v1047_v30  ;;  %v1024_v3 = vsel %vm384_vm13, %v1008_v9, 0.0  ;;  %v993_v36 = vmul.f32 %v977_v46, %v961_v24 }
 0x325   :  { %v1050_v37 = vsel %vm1028_vm3, %v1023_v49, 0.0  ;;  %v771_v1 = vpop.xlane.xlu0 %770  ;;  %v1052_v42 = vsel %vm1028_vm3, %v1024_v3, 0.0 }
 0x326   :  { %v1051_v4 = vadd.f32 %v1050_v37, %v1049_v59  ;;  %v1009_v51 = vmul.f32 -1.4285715, %v993_v36  ;;  %v963_v10 = vsub.f32 %v771_v1, %v947_v50  ;;  %v769_v21 = vpop.xlane.xlu1 %768 }
 0x327   :  { %v962_v34 = vsub.f32 %v769_v21, %v946_v55 }
 0x328   :  { %v1053_v56 = vadd.f32 %v1052_v42, %v1051_v4  ;;  %v1025_v60 = vsel %vm385_vm14, %v1009_v51, 0.0  ;;  %v995_v5 = vmul.f32 %v979_v54, %v963_v10 }
 0x329   :  { %v1054_v32 = vsel %vm1028_vm3, %v1025_v60, 0.0  ;;  %v994_v13 = vmul.f32 %v978_v38, %v962_v34 }
 0x32a   :  { %v1011_v0 = vmul.f32 -1.4285715, %v995_v5  ;;  %v1055_v43 = vadd.f32 %v1054_v32, %v1053_v56 }
 0x32b   :  { %v1010_v35 = vmul.f32 -1.4285715, %v994_v13 }
 0x32c   :  { %v1027_v12 = vsel %vm387_vm15, %v1011_v0, 0.0 }
 0x32d   :  { %v1026_v29 = vsel %vm386_vm0, %v1010_v35, 0.0  ;;  %v1058_v45 = vsel %vm1028_vm3, %v1027_v12, 0.0 }
 0x32e   :  { %v1056_v47 = vsel %vm1028_vm3, %v1026_v29, 0.0 }
 0x32f   :  { %v1057_v61 = vadd.f32 %v1056_v47, %v1055_v43 }
 0x331   :  { %v1059_v39 = vadd.f32 %v1058_v45, %v1057_v61 }
 0x333   :  { %1060 = vadd.xlane.f32.xlu1 %v1059_v39 }
 0x3c0   :  { %v1061_v14 = vpop.xlane.xlu1 %1060 }
 0x3c1   :  { %v1062_v41 = vrot.slane %v1061_v14, 4 }
 0x3c3   :  { %v1063_v17 = vadd.f32 %v1062_v41, %v1061_v14 }
 0x3c5   :  { %v1064_v40 = vrot.slane %v1063_v17, 2 }
 0x3c7   :  { %v1065_v62 = vadd.f32 %v1064_v40, %v1063_v17 }
 0x3c9   :  { %v1066_v52 = vrot.slane %v1065_v62, 1 }
 0x3cb   :  { %v1067_v53 = vadd.f32 %v1066_v52, %v1065_v62 }
 0x3cd   :  { %1213 = vpush %v1067_v53 }
 0x3fe   :  { %s1214_s14 = spop %1213 }
 0x3ff   :  { %v1069_v28 = vstv %s1214_s14 }
 0x400   :  { %1070 = vst [vmem:[#allocation2] sm:$0xff] %v1069_v28 }
 0x401   :  { %1415 = shalt.err (!%p1412_p4)
}
 0x402   :  { %s1416_s18 = scalar_lea.hbm %s2369_s5, 128 }
 0x403   :  { %p1417_p5 = scmp.ne.s32.totalorder %s2369_s5, %s1416_s18  ;;  %p1420_p6 = scmp.lt.u32.totalorder %s1416_s18, %s2369_s5 }
 0x405   :  { %p1422_p7 = pnand %p1420_p6, %p1417_p5 }
 0x407   :  { %1425 = shalt.err (!%p1422_p7)
}
 0x408   :  { %1080 = dma.vmem_to_hbm [thread:$0]  %s1078_s4, 128, %s2369_s5, [#allocation3]  }
 0x409   :  { %1426 = dma.done.wait [#allocation3], 128  }
 0x40a   :  { %1427 = vsyncadd [#allocation3], 4294967168 }
 0x40b   :  { %1084 = vsyncpa [#allocation3], 1 }

// kernel: tpu_custom_call.1
= control target key start
LH: loop header
LB: loop body
LE: loop exit
PB: predicated region body
PF: predicated region fallthrough
CT: control target
= control target key end

     0   :  { %v1428_v2 = vmov 0   ;;  %s2364_s0 = inlined_call_operand.vmem [shape: bf16[128,128], index: 0, kind: input, shape index: {}]   ;;  %s2365_s1 = inlined_call_operand.vmem [shape: bf16[128,128], index: 1, kind: input, shape index: {}]   ;;  %s2366_s2 = inlined_call_operand.vmem [shape: s32[128,1], index: 2, kind: input, shape index: {}]   ;;  %s2367_s3 = inlined_call_operand.vmem [shape: s32[1,128], index: 3, kind: input, shape index: {}]   ;;  %s2368_s4 = inlined_call_operand.vmem [shape: f32[128,1], index: 4, kind: input, shape index: {}]   ;;  %s2369_s5 = inlined_call_operand.hbm [shape: f32[1,8,128], index: 5, kind: output, shape index: {}]  }
   0x1   :  { %v1220_v0 = vld [vmem:[%s2365_s1] sm:$0xff]   ;;  %v1221_v1 = vld [vmem:[%s2365_s1 + $0x8] sm:$0xff]   ;;  %1219 = vset.pattern.permute.xlu0 %v1428_v2  ;;  %1218 = vset.pattern.permute.xlu1 %v1428_v2  ;;  %v1222_v3 = vld [vmem:[%s2365_s1 + $0x10] sm:$0xff]  }
   0x2   :  { %1165 = vmatprep.subr.bf16.mxu0 %v1220_v0  ;;  %1197 = vmatprep.subr.bf16.mxu1 %v1220_v0  ;;  %v1473_v4 = vld [vmem:[%s2364_s0] sm:$0xff]   ;;  %v256_v10 = vld [vmem:[%s2366_s2 + $0x8] sm:$0xff]  ;;  %v257_v17 = vld [vmem:[%s2366_s2 + $0x10] sm:$0xff] }
   0x3   :  { %1166 = vmatpush3.bf16.xpose.msra.mxu0 %v1220_v0  ;;  %1205 = vmatpush3.bf16.xpose.msra.mxu1 %v1220_v0  ;;  %v1478_v5 = vld [vmem:[%s2364_s0 + $0x20] sm:$0xff]   ;;  %v2384_v6 = vunpack.c.l.bf16 %v1473_v4  ;;  %v2385_v7 = vunpack.c.h.bf16 %v1473_v4  ;;  %v1223_v19 = vld [vmem:[%s2365_s1 + $0x18] sm:$0xff]  }
   0x4   :  { %1167 = vmatprep.subr.bf16.mxu0 %v1221_v1  ;;  %1198 = vmatprep.subr.bf16.mxu1 %v1221_v1  ;;  %v2376_v8 = vunpack.c.l.bf16 %v1478_v5  ;;  %v2377_v9 = vunpack.c.h.bf16 %v1478_v5  ;;  %v255_v18 = vld [vmem:[%s2366_s2] sm:$0xff] }
   0x5   :  { %v70_v11 = vmul.f32 10.0, %v2384_v6  ;;  %v71_v12 = vmul.f32 10.0, %v2385_v7  ;;  %276 = vperm.xlu0 %1219, %v256_v10   ;;  %273 = vperm.xlu1 %1218, %v255_v18  }
   0x6   :  { %v78_v13 = vmul.f32 10.0, %v2376_v8  ;;  %v79_v14 = vmul.f32 10.0, %v2377_v9 }
   0x7   :  { %v1495_v15 = vpack.c.bf16 %v71_v12, %v70_v11 }
   0x8   :  { %v1497_v16 = vpack.c.bf16 %v79_v14, %v78_v13 }
   0x9   :  { %1181 = vmatprep.mubr.bf16.mxu0 %v1495_v15 }
   0xa   :  { %1189 = vmatprep.mubr.bf16.mxu1 %v1497_v16 }
   0xb   :  { %1168 = vmatpush3.bf16.xpose.msra.mxu0 %v1221_v1  ;;  %1206 = vmatpush3.bf16.xpose.msra.mxu1 %v1221_v1 }
   0xc   :  { %1169 = vmatprep.subr.bf16.mxu0 %v1222_v3  ;;  %1199 = vmatprep.subr.bf16.mxu1 %v1222_v3 }
   0xd   :  { %10 = vsyncpa [#allocation3], 0  ;;  %279 = vperm.xlu0 %1219, %v257_v17   ;;  %v259_v20 = vld [vmem:[%s2366_s2 + $0x20] sm:$0xff]  ;;  %v258_v21 = vld [vmem:[%s2366_s2 + $0x18] sm:$0xff] }
   0xe   :  { %282 = vperm.xlu1 %1218, %v258_v21   ;;  %v261_v22 = vld [vmem:[%s2366_s2 + $0x30] sm:$0xff]  ;;  %v260_v23 = vld [vmem:[%s2366_s2 + $0x28] sm:$0xff]  ;;  %v1224_v24 = vld [vmem:[%s2365_s1 + $0x20] sm:$0xff]  }
   0xf   :  { %v262_v25 = vld [vmem:[%s2366_s2 + $0x38] sm:$0xff]  ;;  %v263_v26 = vld [vmem:[%s2366_s2 + $0x40] sm:$0xff]  ;;  %v264_v27 = vld [vmem:[%s2366_s2 + $0x48] sm:$0xff] }
  0x10   :  { %v268_v28 = vld [vmem:[%s2366_s2 + $0x68] sm:$0xff]  ;;  %v265_v30 = vld [vmem:[%s2366_s2 + $0x50] sm:$0xff]  ;;  %v266_v31 = vld [vmem:[%s2366_s2 + $0x58] sm:$0xff] }
  0x11   :  { %285 = vperm.xlu0 %1219, %v259_v20   ;;  %v1225_v29 = vld [vmem:[%s2365_s1 + $0x28] sm:$0xff]   ;;  %v1226_v32 = vld [vmem:[%s2365_s1 + $0x30] sm:$0xff]   ;;  %v267_v33 = vld [vmem:[%s2366_s2 + $0x60] sm:$0xff] }
  0x12   :  { %288 = vperm.xlu1 %1218, %v260_v23   ;;  %v1227_v34 = vld [vmem:[%s2365_s1 + $0x38] sm:$0xff]   ;;  %v1558_v35 = vld [vmem:[%s2364_s0 + $0x8] sm:$0xff]   ;;  %v1568_v37 = vld [vmem:[%s2364_s0 + $0x10] sm:$0xff]  }
  0x13   :  { %1170 = vmatpush3.bf16.xpose.msra.mxu0 %v1222_v3  ;;  %1207 = vmatpush3.bf16.xpose.msra.mxu1 %v1222_v3  ;;  %v1563_v36 = vld [vmem:[%s2364_s0 + $0x28] sm:$0xff]   ;;  %v1573_v38 = vld [vmem:[%s2364_s0 + $0x30] sm:$0xff]   ;;  %v2382_v39 = vunpack.c.l.bf16 %v1558_v35  ;;  %v2383_v40 = vunpack.c.h.bf16 %v1558_v35  ;;  %v2380_v43 = vunpack.c.l.bf16 %v1568_v37  ;;  %v2381_v44 = vunpack.c.h.bf16 %v1568_v37  ;;  %v1598_v53 = vld [vmem:[%s2364_s0 + $0x18] sm:$0xff]  }
  0x14   :  { %1171 = vmatprep.subr.bf16.mxu0 %v1223_v19  ;;  %1200 = vmatprep.subr.bf16.mxu1 %v1223_v19  ;;  %v2374_v41 = vunpack.c.l.bf16 %v1563_v36  ;;  %v2375_v42 = vunpack.c.h.bf16 %v1563_v36  ;;  %v2372_v45 = vunpack.c.l.bf16 %v1573_v38  ;;  %v2373_v46 = vunpack.c.h.bf16 %v1573_v38  ;;  %v1607_v56 = vld [vmem:[%s2364_s0 + $0x38] sm:$0xff]  }
  0x15   :  { %291 = vperm.xlu0 %1219, %v261_v22   ;;  %v72_v47 = vmul.f32 10.0, %v2382_v39  ;;  %v73_v48 = vmul.f32 10.0, %v2383_v40  ;;  %v74_v51 = vmul.f32 10.0, %v2380_v43  ;;  %v75_v52 = vmul.f32 10.0, %v2381_v44 }
  0x16   :  { %297 = vperm.xlu1 %1218, %v263_v26   ;;  %v80_v49 = vmul.f32 10.0, %v2374_v41  ;;  %v81_v50 = vmul.f32 10.0, %v2375_v42  ;;  %v82_v54 = vmul.f32 10.0, %v2372_v45  ;;  %v83_v55 = vmul.f32 10.0, %v2373_v46 }
  0x17   :  { %v1609_v57 = vpack.c.bf16 %v73_v48, %v72_v47  ;;  %v2378_v59 = vunpack.c.l.bf16 %v1598_v53  ;;  %v2379_v60 = vunpack.c.h.bf16 %v1598_v53  ;;  %v2370_v61 = vunpack.c.l.bf16 %v1607_v56 }
  0x18   :  { %v1611_v58 = vpack.c.bf16 %v81_v50, %v80_v49  ;;  %v2371_v62 = vunpack.c.h.bf16 %v1607_v56  ;;  %v1617_v63 = vpack.c.bf16 %v75_v52, %v74_v51  ;;  %v1619_v0 = vpack.c.bf16 %v83_v55, %v82_v54 }
  0x19   :  { %294 = vperm.xlu0 %1219, %v262_v25   ;;  %v76_v1 = vmul.f32 10.0, %v2378_v59  ;;  %v77_v2 = vmul.f32 10.0, %v2379_v60  ;;  %v84_v3 = vmul.f32 10.0, %v2370_v61  ;;  %v2386_v40 = vmov 0.0  }
  0x1a   :  { %312 = vperm.xlu1 %1218, %v268_v28   ;;  %v85_v10 = vmul.f32 10.0, %v2371_v62 }
  0x1b   :  { %1172 = vmatpush3.bf16.xpose.msra.mxu0 %v1223_v19  ;;  %1208 = vmatpush3.bf16.xpose.msra.mxu1 %v1223_v19  ;;  %v1633_v11 = vpack.c.bf16 %v77_v2, %v76_v1 }
  0x1c   :  { %1173 = vmatprep.subr.bf16.mxu0 %v1224_v24  ;;  %1201 = vmatprep.subr.bf16.mxu1 %v1224_v24  ;;  %v1635_v12 = vpack.c.bf16 %v85_v10, %v84_v3 }
  0x1d   :  { %300 = vperm.xlu0 %1219, %v264_v27  }
  0x21   :  { %303 = vperm.xlu0 %1219, %v265_v30  }
  0x23   :  { %1174 = vmatpush3.bf16.xpose.msra.mxu0 %v1224_v24  ;;  %1209 = vmatpush3.bf16.xpose.msra.mxu1 %v1224_v24 }
  0x24   :  { %1175 = vmatprep.subr.bf16.mxu0 %v1225_v29  ;;  %1202 = vmatprep.subr.bf16.mxu1 %v1225_v29 }
  0x25   :  { %306 = vperm.xlu0 %1219, %v266_v31   ;;  %v270_v31 = vld [vmem:[%s2366_s2 + $0x78] sm:$0xff] }
  0x29   :  { %309 = vperm.xlu0 %1219, %v267_v33  }
  0x2b   :  { %1176 = vmatpush3.bf16.xpose.msra.mxu0 %v1225_v29  ;;  %1210 = vmatpush3.bf16.xpose.msra.mxu1 %v1225_v29 }
  0x2c   :  { %1177 = vmatprep.subr.bf16.mxu0 %v1226_v32  ;;  %1203 = vmatprep.subr.bf16.mxu1 %v1226_v32 }
  0x33   :  { %1178 = vmatpush3.bf16.xpose.msra.mxu0 %v1226_v32  ;;  %1211 = vmatpush3.bf16.xpose.msra.mxu1 %v1226_v32  ;;  %v269_v32 = vld [vmem:[%s2366_s2 + $0x70] sm:$0xff] }
  0x34   :  { %1179 = vmatprep.subr.bf16.mxu0 %v1227_v34  ;;  %1204 = vmatprep.subr.bf16.mxu1 %v1227_v34 }
  0x3b   :  { %1180 = vmatpush3.bf16.xpose.msra.mxu0 %v1227_v34  ;;  %1212 = vmatpush3.bf16.xpose.msra.mxu1 %v1227_v34 }
  0x42   :  { %1182 = vmatmul.mubr.bf16.vlgmr.msra.gmra.mrb[0].mxu0 %v1609_v57  ;;  %1190 = vmatmul.mubr.bf16.vlgmr.msra.gmra.mrb[0].mxu1 %v1611_v58 }
  0x43   :  { %1185 = vmatprep.mubr.bf16.mxu0 %v1617_v63  ;;  %1193 = vmatprep.mubr.bf16.mxu1 %v1619_v0 }
  0x4a   :  { %1186 = vmatmul.mubr.bf16.gmra.mrb[4].mxu0 %v1633_v11  ;;  %1194 = vmatmul.mubr.bf16.gmra.mrb[4].mxu1 %v1635_v12 }
  0x84   :  { %v1678_v33 = vpop.permute.xlu0 %276  ;;  %v1686_v50 = vpop.permute.xlu1 %273 }
  0x8c   :  { %v280_v34 = vpop.permute.xlu0 %279 }
  0x8d   :  { %v1690_v52 = vpop.permute.xlu1 %282 }
  0x90   :  { %v1680_v47 = vpop.permute.xlu0 %285 }
  0x91   :  { %v1694_v55 = vpop.permute.xlu1 %288 }
  0x94   :  { %v1682_v48 = vpop.permute.xlu0 %291 }
  0x95   :  { %v298_v2 = vpop.permute.xlu1 %297 }
  0x98   :  { %v1684_v49 = vpop.permute.xlu0 %294 }
  0x99   :  { %v1700_v10 = vpop.permute.xlu1 %312 }
  0x9c   :  { %v1688_v51 = vpop.permute.xlu0 %300 }
  0xa0   :  { %v1692_v54 = vpop.permute.xlu0 %303 }
  0xa4   :  { %v1696_v1 = vpop.permute.xlu0 %306 }
  0xa8   :  { %v1698_v3 = vpop.permute.xlu0 %309 }
 0x115   :  { %v1183_v13 = vpop.f32.mrb[0].mxu0  ;;  %v1191_v14 = vpop.f32.mrb[0].mxu1 }
 0x116   :  { %408 = vmax.xlane.f32.xlu0 %v1191_v14  ;;  %v224_v17 = vpop.f32.mrb[1].mxu1  ;;  %392 = vmax.xlane.f32.xlu1 %v1183_v13  ;;  %v192_v18 = vpop.f32.mrb[1].mxu0 }
 0x117   :  { %v1639_v19 = vpop.f32.mrb[2].mxu0  ;;  %v1641_v20 = vpop.f32.mrb[2].mxu1 }
 0x118   :  { %v195_v21 = vpop.f32.mrb[3].mxu0  ;;  %v1643_v22 = vpop.f32.mrb[3].mxu1 }
 0x11a   :  { %388 = vmax.xlane.f32.xlu0 %v192_v18  ;;  %394 = vmax.xlane.f32.xlu1 %v1639_v19 }
 0x11d   :  { %v1646_v23 = vpop.f32.mrb[4].mxu0  ;;  %v1648_v24 = vpop.f32.mrb[4].mxu1 }
 0x11e   :  { %404 = vmax.xlane.f32.xlu0 %v224_v17  ;;  %410 = vmax.xlane.f32.xlu1 %v1641_v20  ;;  %v1651_v25 = vpop.f32.mrb[5].mxu0  ;;  %v1653_v26 = vpop.f32.mrb[5].mxu1 }
 0x11f   :  { %v1655_v27 = vpop.f32.mrb[6].mxu0  ;;  %v1657_v28 = vpop.f32.mrb[6].mxu1 }
 0x120   :  { %v1659_v29 = vpop.f32.mrb[7].mxu0  ;;  %v1661_v30 = vpop.f32.mrb[7].mxu1 }
 0x122   :  { %406 = vmax.xlane.f32.xlu1 %v1643_v22  ;;  %390 = vmax.xlane.f32.xlu0 %v195_v21 }
 0x126   :  { %400 = vmax.xlane.f32.xlu0 %v1646_v23  ;;  %402 = vmax.xlane.f32.xlu1 %v1655_v27 }
 0x12a   :  { %416 = vmax.xlane.f32.xlu0 %v1648_v24  ;;  %418 = vmax.xlane.f32.xlu1 %v1657_v28 }
 0x12e   :  { %396 = vmax.xlane.f32.xlu0 %v1651_v25  ;;  %398 = vmax.xlane.f32.xlu1 %v1659_v29 }
 0x132   :  { %412 = vmax.xlane.f32.xlu0 %v1653_v26  ;;  %414 = vmax.xlane.f32.xlu1 %v1661_v30 }
 0x143   :  { %318 = vperm.xlu1 %1218, %v270_v31  }
 0x148   :  { %315 = vperm.xlu0 %1219, %v269_v32  }
 0x1a3   :  { %v1702_v31 = vpop.xlane.xlu0 %408  ;;  %v1704_v32 = vpop.xlane.xlu1 %392 }
 0x1a4   :  { %v1707_v61 = vsub.f32 %v1183_v13, %v1704_v32  ;;  %v1710_v62 = vsub.f32 %v1191_v14, %v1702_v31  ;;  %v1729_v14 = vld [vmem:[%s2367_s3] ss:$0 sm:$0xff] }
 0x1a5   :  { %vm326_vm0 = vcmp.eq.s32.totalorder %v280_v34, %v1729_v14  ;;  %vm332_vm1 = vcmp.eq.s32.totalorder %v298_v2, %v1729_v14  ;;  %vm324_vm2 = vcmp.eq.s32.totalorder %v1686_v50, %v1729_v14  ;;  %vm327_vm3 = vcmp.eq.s32.totalorder %v1690_v52, %v1729_v14 }
 0x1a6   :  { %2417 = vst [vmem:[#allocation5_spill] sm:$0xff] %v1707_v61  ;;  %2418 = vst [vmem:[#allocation6_spill] sm:$0xff] %v1710_v62  ;;  %v440_v45 = vmul.f32 1.442695, %v1707_v61  ;;  %v456_v42 = vmul.f32 1.442695, %v1710_v62  ;;  %vm325_vm4 = vcmp.eq.s32.totalorder %v1678_v33, %v1729_v14  ;;  %vm333_vm5 = vcmp.eq.s32.totalorder %v1688_v51, %v1729_v14 }
 0x1a7   :  { %v1713_v46 = vpop.xlane.xlu0 %388  ;;  %v1715_v41 = vpop.xlane.xlu1 %394  ;;  %v1751_v6 = vsel %vm326_vm0, 1.0, %v2386_v40  ;;  %vm330_vm6 = vcmp.eq.s32.totalorder %v1682_v48, %v1729_v14  ;;  %vm328_vm7 = vcmp.eq.s32.totalorder %v1680_v47, %v1729_v14  ;;  %vm331_vm8 = vcmp.eq.s32.totalorder %v1684_v49, %v1729_v14 }
 0x1a8   :  { %1228 = vpow2.f32 %v440_v45  ;;  %v1719_v8 = vsub.f32 %v192_v18, %v1713_v46  ;;  %v1743_v18 = vsub.f32 %v1639_v19, %v1715_v41  ;;  %2422 = vst [vmem:[#allocation10_spill] sm:$0xff] %v1751_v6  ;;  %vm329_vm9 = vcmp.eq.s32.totalorder %v1694_v55, %v1729_v14 }
 0x1a9   :  { %1230 = vpow2.f32 %v456_v42  ;;  %vm334_vm10 = vcmp.eq.s32.totalorder %v1692_v54, %v1729_v14  ;;  %vm335_vm11 = vcmp.eq.s32.totalorder %v1696_v1, %v1729_v14  ;;  %vm336_vm12 = vcmp.eq.s32.totalorder %v1698_v3, %v1729_v14 }
 0x1aa   :  { %v436_v59 = vmul.f32 1.442695, %v1719_v8  ;;  %2421 = vst [vmem:[#allocation9_spill] sm:$0xff] %v1743_v18  ;;  %v442_v19 = vmul.f32 1.442695, %v1743_v18  ;;  %vm337_vm13 = vcmp.eq.s32.totalorder %v1700_v10, %v1729_v14 }
 0x1ab   :  { %v1721_v9 = vpop.xlane.xlu0 %404  ;;  %v1732_v60 = vpop.xlane.xlu1 %410 }
 0x1ac   :  { %v1724_v13 = vsub.f32 %v224_v17, %v1721_v9  ;;  %1232 = vpow2.f32 %v436_v59 }
 0x1ae   :  { %2419 = vst [vmem:[#allocation7_spill] sm:$0xff] %v1724_v13  ;;  %v452_v17 = vmul.f32 1.442695, %v1724_v13 }
 0x1af   :  { %v1734_v43 = vpop.xlane.xlu0 %390 }
 0x1b0   :  { %v1737_v45 = vsub.f32 %v195_v21, %v1734_v43  ;;  %1234 = vpow2.f32 %v452_v17  ;;  %v1753_v21 = vpop.xlane.xlu1 %406 }
 0x1b1   :  { %v1766_v17 = vsub.f32 %v1643_v22, %v1753_v21 }
 0x1b2   :  { %2420 = vst [vmem:[#allocation8_spill] sm:$0xff] %v1737_v45  ;;  %v438_v42 = vmul.f32 1.442695, %v1737_v45  ;;  %v1748_v39 = vpop.eup %1228 }
 0x1b3   :  { %v1746_v44 = vpop.xlane.xlu0 %400  ;;  %472 = vadd.xlane.f32.xlu0 %v1748_v39  ;;  %v582_v59 = vmul.f32 %v1748_v39, %v1751_v6  ;;  %v1759_v34 = vpop.eup %1230  ;;  %2423 = vst [vmem:[#allocation11_spill] sm:$0xff] %v1766_v17 }
 0x1b4   :  { %1236 = vpow2.f32 %v438_v42  ;;  %v1768_v40 = vpop.xlane.xlu1 %402  ;;  %v454_v42 = vmul.f32 1.442695, %v1766_v17  ;;  %v2425_v17 = vmov 0.0  }
 0x1b5   :  { %600 = vadd.xlane.f32.xlu1 %v582_v59  ;;  %1238 = vpow2.f32 %v442_v19  ;;  %v1776_v59 = vsub.f32 %v1646_v23, %v1746_v44  ;;  %v1792_v23 = vsel %vm332_vm1, 1.0, %v2425_v17  ;;  %v1806_v61 = vsel %vm324_vm2, 1.0, %v2425_v17 }
 0x1b6   :  { %v1770_v62 = vpop.eup %1232  ;;  %2426 = vst [vmem:[#allocation13_spill] sm:$0xff] %v1792_v23  ;;  %1240 = vpow2.f32 %v454_v42  ;;  %2428 = vst [vmem:[#allocation15_spill] sm:$0xff] %v1806_v61  ;;  %v1810_v42 = vsel %vm327_vm3, 1.0, %v2425_v17  ;;  %v1941_v1 = vsel %vm336_vm12, 1.0, %v2425_v17  ;;  %vm1028_vm3 = vcmask 7168  }
 0x1b7   :  { %v1761_v7 = vpop.xlane.xlu0 %416  ;;  %488 = vadd.xlane.f32.xlu0 %v1759_v34  ;;  %2424 = vst [vmem:[#allocation12_spill] sm:$0xff] %v1776_v59  ;;  %v448_v6 = vmul.f32 1.442695, %v1776_v59  ;;  %v580_v59 = vmul.f32 %v1770_v62, %v1806_v61  ;;  %2442 = vst [vmem:[#allocation29_spill] sm:$0xff] %v1941_v1 }
 0x1b8   :  { %v1787_v18 = vpop.xlane.xlu1 %418 }
 0x1b9   :  { %1242 = vpow2.f32 %v448_v6 }
 0x1ba   :  { %v1778_v13 = vpop.eup %1234 }
 0x1bb   :  { %468 = vadd.xlane.f32.xlu0 %v1770_v62  ;;  %v1781_v19 = vpop.xlane.xlu0 %396  ;;  %v588_v50 = vmul.f32 %v1778_v13, %v1792_v23 }
 0x1bc   :  { %v1797_v2 = vsub.f32 %v1651_v25, %v1781_v19  ;;  %v1814_v25 = vsub.f32 %v1655_v27, %v1768_v40  ;;  %v1819_v23 = vpop.xlane.xlu1 %398 }
 0x1bd   :  { %v1828_v27 = vsub.f32 %v1659_v29, %v1819_v23  ;;  %v1845_v29 = vsub.f32 %v1641_v20, %v1732_v60 }
 0x1be   :  { %v1783_v22 = vpop.eup %1236  ;;  %2427 = vst [vmem:[#allocation14_spill] sm:$0xff] %v1797_v2  ;;  %2429 = vst [vmem:[#allocation16_spill] sm:$0xff] %v1814_v25  ;;  %v444_v52 = vmul.f32 1.442695, %v1797_v2  ;;  %v450_v6 = vmul.f32 1.442695, %v1814_v25 }
 0x1bf   :  { %484 = vadd.xlane.f32.xlu0 %v1778_v13  ;;  %470 = vadd.xlane.f32.xlu1 %v1783_v22  ;;  %v1803_v45 = vpop.eup %1238  ;;  %2430 = vst [vmem:[#allocation17_spill] sm:$0xff] %v1828_v27  ;;  %v1831_v2 = vsel %vm325_vm4, 1.0, %v2425_v17  ;;  %2432 = vst [vmem:[#allocation19_spill] sm:$0xff] %v1845_v29  ;;  %v1850_v51 = vpop.xlane.xlu0 %412  ;;  %v458_v20 = vmul.f32 1.442695, %v1845_v29 }
 0x1c0   :  { %1244 = vpow2.f32 %v444_v52  ;;  %v581_v33 = vmul.f32 %v1783_v22, %v1831_v2  ;;  %v1837_v61 = vpop.eup %1240  ;;  %v446_v52 = vmul.f32 1.442695, %v1828_v27  ;;  %v1867_v48 = vpop.xlane.xlu1 %414 }
 0x1c1   :  { %1246 = vpow2.f32 %v450_v6  ;;  %v1863_v6 = vsub.f32 %v1653_v26, %v1850_v51 }
 0x1c2   :  { %1248 = vpow2.f32 %v446_v52  ;;  %v1880_v52 = vsub.f32 %v1661_v30, %v1867_v48 }
 0x1c3   :  { %474 = vadd.xlane.f32.xlu0 %v1803_v45  ;;  %612 = vadd.xlane.f32.xlu1 %v588_v50  ;;  %v583_v50 = vmul.f32 %v1803_v45, %v1810_v42  ;;  %v1854_v25 = vpop.eup %1242  ;;  %2433 = vst [vmem:[#allocation20_spill] sm:$0xff] %v1863_v6  ;;  %1250 = vpow2.f32 %v458_v20  ;;  %v460_v26 = vmul.f32 1.442695, %v1863_v6  ;;  %v1894_v20 = vsub.f32 %v1648_v24, %v1761_v7 }
 0x1c4   :  { %2434 = vst [vmem:[#allocation21_spill] sm:$0xff] %v1880_v52  ;;  %v462_v30 = vmul.f32 1.442695, %v1880_v52 }
 0x1c5   :  { %2436 = vst [vmem:[#allocation23_spill] sm:$0xff] %v1894_v20  ;;  %1252 = vpow2.f32 %v460_v26  ;;  %v464_v24 = vmul.f32 1.442695, %v1894_v20  ;;  %v1910_v26 = vsub.f32 %v1657_v28, %v1787_v18 }
 0x1c6   :  { %1254 = vpow2.f32 %v462_v30  ;;  %v1931_v30 = vsel %vm335_vm11, 1.0, %v2425_v17 }
 0x1c7   :  { %596 = vadd.xlane.f32.xlu0 %v580_v59  ;;  %602 = vadd.xlane.f32.xlu1 %v583_v50  ;;  %v1841_v59 = vsel %vm333_vm5, 1.0, %v2425_v17  ;;  %2438 = vst [vmem:[#allocation25_spill] sm:$0xff] %v1910_v26  ;;  %1256 = vpow2.f32 %v464_v24  ;;  %v466_v20 = vmul.f32 1.442695, %v1910_v26  ;;  %2440 = vst [vmem:[#allocation27_spill] sm:$0xff] %v1931_v30  ;;  %v319_v26 = vpop.permute.xlu1 %318 }
 0x1c8   :  { %2431 = vst [vmem:[#allocation18_spill] sm:$0xff] %v1841_v59  ;;  %v589_v50 = vmul.f32 %v1837_v61, %v1841_v59  ;;  %vm339_vm14 = vcmp.eq.s32.totalorder %v319_v26, %v1729_v14  ;;  %v94_v26 = vunpack.c.l.bf16 %v1495_v15 }
 0x1c9   :  { %1258 = vpow2.f32 %v466_v20  ;;  %v1960_v10 = vsel %vm339_vm14, 1.0, %v2425_v17 }
 0x1ca   :  { %v1871_v27 = vpop.eup %1244  ;;  %2445 = vst [vmem:[#allocation32_spill] sm:$0xff] %v1960_v10 }
 0x1cb   :  { %486 = vadd.xlane.f32.xlu0 %v1837_v61  ;;  %598 = vadd.xlane.f32.xlu1 %v581_v33  ;;  %v1858_v33 = vsel %vm330_vm6, 1.0, %v2425_v17  ;;  %v1886_v29 = vpop.eup %1246 }
 0x1cc   :  { %v586_v59 = vmul.f32 %v1854_v25, %v1858_v33  ;;  %v1901_v6 = vpop.eup %1248 }
 0x1cd   :  { %v1916_v52 = vpop.eup %1250 }
 0x1ce   :  { %v591_v24 = vmul.f32 %v1916_v52, %v1931_v30 }
 0x1cf   :  { %480 = vadd.xlane.f32.xlu0 %v1854_v25  ;;  %614 = vadd.xlane.f32.xlu1 %v589_v50  ;;  %v1875_v50 = vsel %vm328_vm7, 1.0, %v2425_v17  ;;  %v1927_v54 = vpop.eup %1252 }
 0x1d0   :  { %v584_v47 = vmul.f32 %v1871_v27, %v1875_v50  ;;  %v592_v20 = vmul.f32 %v1927_v54, %v1941_v1 }
 0x1d3   :  { %476 = vadd.xlane.f32.xlu0 %v1871_v27  ;;  %608 = vadd.xlane.f32.xlu1 %v586_v59  ;;  %v1890_v59 = vsel %vm331_vm8, 1.0, %v2425_v17 }
 0x1d4   :  { %2435 = vst [vmem:[#allocation22_spill] sm:$0xff] %v1890_v59  ;;  %v587_v49 = vmul.f32 %v1886_v29, %v1890_v59 }
 0x1d7   :  { %482 = vadd.xlane.f32.xlu0 %v1886_v29  ;;  %604 = vadd.xlane.f32.xlu1 %v584_v47  ;;  %v1905_v47 = vsel %vm329_vm9, 1.0, %v2425_v17 }
 0x1d8   :  { %2437 = vst [vmem:[#allocation24_spill] sm:$0xff] %v1905_v47  ;;  %v585_v55 = vmul.f32 %v1901_v6, %v1905_v47 }
 0x1db   :  { %610 = vadd.xlane.f32.xlu1 %v587_v49  ;;  %478 = vadd.xlane.f32.xlu0 %v1901_v6  ;;  %v1920_v49 = vsel %vm334_vm10, 1.0, %v2425_v17 }
 0x1dc   :  { %2439 = vst [vmem:[#allocation26_spill] sm:$0xff] %v1920_v49  ;;  %v590_v28 = vmul.f32 %v1759_v34, %v1920_v49 }
 0x1df   :  { %490 = vadd.xlane.f32.xlu0 %v1916_v52  ;;  %606 = vadd.xlane.f32.xlu1 %v585_v55  ;;  %v1937_v55 = vpop.eup %1254 }
 0x1e0   :  { %2441 = vst [vmem:[#allocation28_spill] sm:$0xff] %v1937_v55  ;;  %v1947_v3 = vpop.eup %1256 }
 0x1e1   :  { %2443 = vst [vmem:[#allocation30_spill] sm:$0xff] %v1947_v3  ;;  %v1957_v49 = vpop.eup %1258 }
 0x1e3   :  { %492 = vadd.xlane.f32.xlu0 %v1927_v54  ;;  %616 = vadd.xlane.f32.xlu1 %v590_v28  ;;  %v316_v28 = vpop.permute.xlu0 %315 }
 0x1e4   :  { %vm338_vm15 = vcmp.eq.s32.totalorder %v316_v28, %v1729_v14  ;;  %v95_v14 = vunpack.c.h.bf16 %v1495_v15  ;;  %v2449_v15 = vunpack.c.h.bf16 %v1558_v35 }
 0x1e5   :  { %v1963_v1 = vsel %vm338_vm15, 1.0, %v2425_v17 }
 0x1e6   :  { %2446 = vst [vmem:[#allocation33_spill] sm:$0xff] %v1963_v1  ;;  %v594_v28 = vmul.f32 %v1947_v3, %v1963_v1 }
 0x1e7   :  { %618 = vadd.xlane.f32.xlu1 %v591_v24  ;;  %494 = vadd.xlane.f32.xlu0 %v1937_v55  ;;  %v1953_v24 = vsel %vm337_vm13, 1.0, %v2425_v17  ;;  %v2448_v17 = vunpack.c.l.bf16 %v1473_v4 }
 0x1e8   :  { %2444 = vst [vmem:[#allocation31_spill] sm:$0xff] %v1953_v24  ;;  %v593_v30 = vmul.f32 %v1937_v55, %v1953_v24  ;;  %v2447_v24 = vunpack.c.h.bf16 %v1473_v4  ;;  %v96_v55 = vunpack.c.l.bf16 %v1609_v57  ;;  %v2451_v4 = vunpack.c.h.bf16 %v1568_v37 }
 0x1e9   :  { %v772_v47 = vmul.f32 %v2448_v17, %v94_v26  ;;  %v2456_v17 = vunpack.c.l.bf16 %v1478_v5 }
 0x1ea   :  { %v773_v59 = vmul.f32 %v2447_v24, %v95_v14  ;;  %v2452_v14 = vunpack.c.l.bf16 %v1568_v37  ;;  %v2455_v37 = vunpack.c.h.bf16 %v1478_v5  ;;  %v2459_v5 = vunpack.c.h.bf16 %v1573_v38 }
 0x1eb   :  { %620 = vadd.xlane.f32.xlu1 %v592_v20  ;;  %496 = vadd.xlane.f32.xlu0 %v1947_v3  ;;  %v595_v20 = vmul.f32 %v1957_v49, %v1960_v10  ;;  %v2450_v3 = vunpack.c.l.bf16 %v1558_v35  ;;  %v2453_v35 = vunpack.c.h.bf16 %v1598_v53 }
 0x1ed   :  { %v774_v10 = vmul.f32 %v2450_v3, %v96_v55  ;;  %v2454_v3 = vunpack.c.l.bf16 %v1598_v53  ;;  %v2457_v53 = vunpack.c.h.bf16 %v1563_v36 }
 0x1ef   :  { %498 = vadd.xlane.f32.xlu0 %v1957_v49  ;;  %622 = vadd.xlane.f32.xlu1 %v593_v30  ;;  %v97_v30 = vunpack.c.h.bf16 %v1609_v57 }
 0x1f1   :  { %v775_v1 = vmul.f32 %v2449_v15, %v97_v30  ;;  %v105_v30 = vunpack.c.h.bf16 %v1611_v58  ;;  %v104_v15 = vunpack.c.l.bf16 %v1611_v58 }
 0x1f3   :  { %624 = vadd.xlane.f32.xlu1 %v594_v28  ;;  %626 = vadd.xlane.f32.xlu0 %v595_v20  ;;  %v99_v28 = vunpack.c.h.bf16 %v1617_v63  ;;  %v98_v20 = vunpack.c.l.bf16 %v1617_v63 }
 0x1f5   :  { %v777_v24 = vmul.f32 %v2451_v4, %v99_v28  ;;  %v776_v57 = vmul.f32 %v2452_v14, %v98_v20  ;;  %v783_v28 = vmul.f32 %v2457_v53, %v105_v30  ;;  %v2458_v20 = vunpack.c.l.bf16 %v1563_v36 }
 0x1f6   :  { %v107_v4 = vunpack.c.h.bf16 %v1619_v0  ;;  %v2461_v36 = vunpack.c.h.bf16 %v1607_v56  ;;  %v508_v30 = vsub.f32 0.0, %v1721_v9  ;;  %v506_v53 = vsub.f32 0.0, %v1746_v44 }
 0x1f7   :  { %790 = vadd.xlane.f32.xlu0 %v773_v59  ;;  %788 = vadd.xlane.f32.xlu1 %v772_v47  ;;  %v101_v59 = vunpack.c.h.bf16 %v1633_v11  ;;  %v100_v47 = vunpack.c.l.bf16 %v1633_v11 }
 0x1f8   :  { %v785_v14 = vmul.f32 %v2459_v5, %v107_v4  ;;  %v532_v4 = vmul.f32 1.442695, %v508_v30  ;;  %v504_v5 = vsub.f32 0.0, %v1781_v19 }
 0x1f9   :  { %v779_v55 = vmul.f32 %v2453_v35, %v101_v59  ;;  %v778_v63 = vmul.f32 %v2454_v3, %v100_v47  ;;  %v109_v59 = vunpack.c.h.bf16 %v1635_v12  ;;  %v108_v47 = vunpack.c.l.bf16 %v1635_v12 }
 0x1fa   :  { %v502_v3 = vsub.f32 0.0, %v1704_v32 }
 0x1fb   :  { %794 = vadd.xlane.f32.xlu0 %v775_v1  ;;  %792 = vadd.xlane.f32.xlu1 %v774_v10  ;;  %v103_v1 = vunpack.c.h.bf16 %v1497_v16  ;;  %v102_v10 = vunpack.c.l.bf16 %v1497_v16  ;;  %v782_v16 = vmul.f32 %v2458_v20, %v104_v15  ;;  %v787_v35 = vmul.f32 %v2461_v36, %v109_v59 }
 0x1fc   :  { %v509_v36 = vsub.f32 0.0, %v1753_v21 }
 0x1fd   :  { %v781_v26 = vmul.f32 %v2455_v37, %v103_v1  ;;  %v780_v11 = vmul.f32 %v2456_v17, %v102_v10  ;;  %v503_v1 = vsub.f32 0.0, %v1715_v41  ;;  %v501_v37 = vsub.f32 0.0, %v1734_v43 }
 0x1ff   :  { %798 = vadd.xlane.f32.xlu0 %v777_v24  ;;  %796 = vadd.xlane.f32.xlu1 %v776_v57  ;;  %v106_v24 = vunpack.c.l.bf16 %v1619_v0  ;;  %v2460_v57 = vunpack.c.l.bf16 %v1573_v38  ;;  %v500_v38 = vsub.f32 0.0, %v1713_v46  ;;  %v522_v12 = vmul.f32 1.442695, %v503_v1 }
 0x201   :  { %v784_v58 = vmul.f32 %v2460_v57, %v106_v24  ;;  %v516_v10 = vmul.f32 1.442695, %v500_v38  ;;  %v528_v24 = vmul.f32 1.442695, %v506_v53 }
 0x203   :  { %802 = vadd.xlane.f32.xlu0 %v779_v55  ;;  %800 = vadd.xlane.f32.xlu1 %v778_v63  ;;  %v2462_v55 = vunpack.c.l.bf16 %v1607_v56  ;;  %v520_v63 = vmul.f32 1.442695, %v502_v3  ;;  %v518_v56 = vmul.f32 1.442695, %v501_v37  ;;  %v534_v37 = vmul.f32 1.442695, %v509_v36 }
 0x205   :  { %v786_v0 = vmul.f32 %v2462_v55, %v108_v47  ;;  %1260 = vpow2.f32 %v520_v63  ;;  %v524_v55 = vmul.f32 1.442695, %v504_v5 }
 0x206   :  { %1262 = vpow2.f32 %v516_v10 }
 0x207   :  { %806 = vadd.xlane.f32.xlu0 %v781_v26  ;;  %804 = vadd.xlane.f32.xlu1 %v780_v11  ;;  %1264 = vpow2.f32 %v522_v12  ;;  %v505_v12 = vsub.f32 0.0, %v1819_v23 }
 0x208   :  { %1266 = vpow2.f32 %v518_v56 }
 0x209   :  { %1268 = vpow2.f32 %v532_v4 }
 0x20a   :  { %1270 = vpow2.f32 %v528_v24  ;;  %v526_v24 = vmul.f32 1.442695, %v505_v12 }
 0x20b   :  { %810 = vadd.xlane.f32.xlu0 %v783_v28  ;;  %808 = vadd.xlane.f32.xlu1 %v782_v16  ;;  %1272 = vpow2.f32 %v524_v55 }
 0x20c   :  { %1274 = vpow2.f32 %v534_v37 }
 0x20f   :  { %814 = vadd.xlane.f32.xlu0 %v785_v14  ;;  %812 = vadd.xlane.f32.xlu1 %v784_v58  ;;  %v1261_v17 = vpop.eup %1260 }
 0x210   :  { %v550_v15 = vmul.f32 32.0, %v1261_v17  ;;  %v1263_v58 = vpop.eup %1262 }
 0x211   :  { %v1265_v47 = vpop.eup %1264  ;;  %v548_v38 = vmul.f32 32.0, %v1263_v58  ;;  %v510_v58 = vsub.f32 0.0, %v1702_v31 }
 0x212   :  { %v551_v1 = vmul.f32 32.0, %v1265_v47  ;;  %v1267_v10 = vpop.eup %1266 }
 0x213   :  { %818 = vadd.xlane.f32.xlu0 %v787_v35  ;;  %816 = vadd.xlane.f32.xlu1 %v786_v0  ;;  %v507_v35 = vsub.f32 0.0, %v1768_v40 }
 0x215   :  { %v530_v56 = vmul.f32 1.442695, %v507_v35  ;;  %v1269_v35 = vpop.eup %1268 }
 0x217   :  { %1276 = vpow2.f32 %v530_v56 }
 0x240   :  { %v473_v26 = vpop.xlane.xlu0 %472 }
 0x241   :  { %v566_v16 = vsub.f32 %v473_v26, %v550_v15 }
 0x242   :  { %v601_v28 = vpop.xlane.xlu1 %600 }
 0x243   :  { %v2029_v59 = vsub.f32 %v566_v16, %v601_v28  ;;  %v549_v28 = vmul.f32 32.0, %v1267_v10 }
 0x244   :  { %v2022_v11 = vpop.xlane.xlu0 %488 }
 0x245   :  { %v646_v63 = vadd.f32 %v1748_v39, %v2029_v59 }
 0x247   :  { %v662_v53 = vadd.f32 1e-08, %v646_v63 }
 0x248   :  { %v469_v20 = vpop.xlane.xlu0 %468 }
 0x249   :  { %v564_v26 = vsub.f32 %v469_v20, %v548_v38  ;;  %1278 = vlog2.f32 %v662_v53  ;;  %v1271_v38 = vpop.eup %1270 }
 0x24a   :  { %1280 = vpow2.f32 %v526_v24 }
 0x24c   :  { %v2027_v14 = vpop.xlane.xlu0 %484  ;;  %v471_v57 = vpop.xlane.xlu1 %470 }
 0x24d   :  { %v565_v39 = vsub.f32 %v471_v57, %v549_v28  ;;  %v511_v57 = vsub.f32 0.0, %v1732_v60  ;;  %v513_v28 = vsub.f32 0.0, %v1867_v48 }
 0x250   :  { %v475_v0 = vpop.xlane.xlu0 %474  ;;  %v613_v3 = vpop.xlane.xlu1 %612 }
 0x251   :  { %v567_v17 = vsub.f32 %v475_v0, %v551_v1  ;;  %v556_v1 = vmul.f32 32.0, %v1269_v35 }
 0x253   :  { %v572_v56 = vsub.f32 %v2027_v14, %v556_v1 }
 0x254   :  { %v597_v30 = vpop.xlane.xlu0 %596  ;;  %v603_v15 = vpop.xlane.xlu1 %602 }
 0x255   :  { %v2036_v16 = vsub.f32 %v564_v26, %v597_v30  ;;  %v2038_v4 = vsub.f32 %v567_v17, %v603_v15  ;;  %v554_v26 = vmul.f32 32.0, %v1271_v38  ;;  %v1273_v17 = vpop.eup %1272  ;;  %v538_v30 = vmul.f32 1.442695, %v511_v57 }
 0x256   :  { %v512_v15 = vsub.f32 0.0, %v1850_v51  ;;  %v2055_v24 = vsub.f32 %v572_v56, %v613_v3  ;;  %v542_v57 = vmul.f32 1.442695, %v513_v28  ;;  %v514_v56 = vsub.f32 0.0, %v1761_v7 }
 0x257   :  { %v644_v5 = vadd.f32 %v1770_v62, %v2036_v16  ;;  %v647_v20 = vadd.f32 %v1803_v45, %v2038_v4  ;;  %v536_v45 = vmul.f32 1.442695, %v510_v58 }
 0x258   :  { %v2045_v47 = vpop.xlane.xlu0 %486  ;;  %v599_v36 = vpop.xlane.xlu1 %598  ;;  %v540_v14 = vmul.f32 1.442695, %v512_v15  ;;  %v652_v3 = vadd.f32 %v1778_v13, %v2055_v24 }
 0x259   :  { %v660_v55 = vadd.f32 1e-08, %v644_v5  ;;  %v663_v0 = vadd.f32 1e-08, %v647_v20  ;;  %v2047_v63 = vsub.f32 %v565_v39, %v599_v36  ;;  %v1275_v5 = vpop.eup %1274  ;;  %v552_v20 = vmul.f32 32.0, %v1273_v17 }
 0x25a   :  { %v1277_v36 = vpop.eup %1276 }
 0x25b   :  { %1282 = vlog2.f32 %v660_v55  ;;  %v645_v62 = vadd.f32 %v1783_v22, %v2047_v63  ;;  %v1279_v35 = vpop.eup %1278 }
 0x25c   :  { %v481_v10 = vpop.xlane.xlu0 %480  ;;  %v615_v12 = vpop.xlane.xlu1 %614  ;;  %1284 = vlog2.f32 %v663_v0 }
 0x25d   :  { %v661_v37 = vadd.f32 1e-08, %v645_v62  ;;  %v570_v53 = vsub.f32 %v481_v10, %v554_v26  ;;  %v1281_v38 = vpop.eup %1280  ;;  %v557_v10 = vmul.f32 32.0, %v1275_v5  ;;  %v555_v26 = vmul.f32 32.0, %v1277_v36 }
 0x25e   :  { %v553_v5 = vmul.f32 32.0, %v1281_v38 }
 0x25f   :  { %1286 = vlog2.f32 %v661_v37  ;;  %v573_v28 = vsub.f32 %v2045_v47, %v557_v10  ;;  %v2463_v47 = vld [vmem:[#allocation15_spill] sm:$0xff] }
 0x260   :  { %1288 = vpow2.f32 %v536_v45  ;;  %v477_v22 = vpop.xlane.xlu0 %476  ;;  %v609_v39 = vpop.xlane.xlu1 %608 }
 0x261   :  { %v2057_v58 = vsub.f32 %v570_v53, %v609_v39  ;;  %1290 = vpow2.f32 %v538_v30  ;;  %v568_v55 = vsub.f32 %v477_v22, %v552_v20  ;;  %v515_v30 = vsub.f32 0.0, %v1787_v18 }
 0x262   :  { %v681_v53 = vmul.f32 0.6931472, %v1279_v35  ;;  %1292 = vpow2.f32 %v540_v14  ;;  %v668_v39 = vadd.f32 1e-08, %v652_v3  ;;  %v544_v3 = vmul.f32 1.442695, %v514_v56 }
 0x263   :  { %v650_v0 = vadd.f32 %v1854_v25, %v2057_v58  ;;  %1294 = vpow2.f32 %v542_v57 }
 0x264   :  { %v483_v62 = vpop.xlane.xlu0 %482  ;;  %v605_v45 = vpop.xlane.xlu1 %604 }
 0x265   :  { %v1283_v1 = vpop.eup %1282  ;;  %v666_v37 = vadd.f32 1e-08, %v650_v0  ;;  %v2063_v17 = vsub.f32 %v568_v55, %v605_v45  ;;  %v571_v22 = vsub.f32 %v483_v62, %v555_v26  ;;  %v2071_v45 = vsub.f32 %v573_v28, %v615_v12  ;;  %v2464_v26 = vld [vmem:[#allocation5_spill] sm:$0xff]  ;;  %v2465_v28 = vld [vmem:[#allocation8_spill] sm:$0xff] }
 0x266   :  { %v677_v15 = vmul.f32 0.6931472, %v1283_v1  ;;  %v1285_v25 = vpop.eup %1284 }
 0x267   :  { %v648_v13 = vadd.f32 %v1871_v27, %v2063_v17  ;;  %1296 = vlog2.f32 %v666_v37  ;;  %v710_v27 = vsub.f32 %v2464_v26, %v681_v53  ;;  %v683_v57 = vmul.f32 0.6931472, %v1285_v25 }
 0x268   :  { %v479_v20 = vpop.xlane.xlu0 %478  ;;  %v611_v36 = vpop.xlane.xlu1 %610  ;;  %v708_v55 = vsub.f32 %v1719_v8, %v677_v15  ;;  %v546_v15 = vmul.f32 1.442695, %v515_v30 }
 0x269   :  { %v1287_v0 = vpop.eup %1286  ;;  %v664_v35 = vadd.f32 1e-08, %v648_v13  ;;  %v2073_v1 = vsub.f32 %v571_v22, %v611_v36  ;;  %v569_v38 = vsub.f32 %v479_v20, %v553_v5  ;;  %v2466_v5 = vld [vmem:[#allocation10_spill] sm:$0xff] }
 0x26a   :  { %v1289_v14 = vpop.eup %1288  ;;  %v724_v62 = vmul.f32 %v2463_v47, %v708_v55  ;;  %v679_v10 = vmul.f32 0.6931472, %v1287_v0  ;;  %v653_v55 = vadd.f32 %v1837_v61, %v2071_v45  ;;  %v726_v20 = vmul.f32 %v2466_v5, %v710_v27 }
 0x26b   :  { %1298 = vlog2.f32 %v664_v35  ;;  %v651_v8 = vadd.f32 %v1886_v29, %v2073_v1  ;;  %v1291_v13 = vpop.eup %1290  ;;  %v558_v36 = vmul.f32 32.0, %v1289_v14  ;;  %v2467_v29 = vld [vmem:[#allocation9_spill] sm:$0xff] }
 0x26c   :  { %1300 = vlog2.f32 %v668_v39  ;;  %v491_v12 = vpop.xlane.xlu0 %490  ;;  %v607_v37 = vpop.xlane.xlu1 %606  ;;  %740 = vadd.xlane.f32.xlu1 %v724_v62  ;;  %v709_v22 = vsub.f32 %v2465_v28, %v679_v10  ;;  %v711_v30 = vsub.f32 %v2467_v29, %v683_v57  ;;  %v559_v35 = vmul.f32 32.0, %v1291_v13 }
 0x26d   :  { %v667_v53 = vadd.f32 1e-08, %v651_v8  ;;  %v2082_v25 = vsub.f32 %v569_v38, %v607_v37  ;;  %1302 = vpow2.f32 %v544_v3  ;;  %v574_v39 = vsub.f32 %v2022_v11, %v558_v36  ;;  %v1293_v61 = vpop.eup %1292 }
 0x26e   :  { %v725_v56 = vmul.f32 %v1831_v2, %v709_v22  ;;  %1304 = vpow2.f32 %v546_v15  ;;  %v669_v62 = vadd.f32 1e-08, %v653_v55  ;;  %v1295_v26 = vpop.eup %1294  ;;  %v727_v27 = vmul.f32 %v1810_v42, %v711_v30 }
 0x26f   :  { %v649_v0 = vadd.f32 %v1901_v6, %v2082_v25  ;;  %1306 = vlog2.f32 %v667_v53  ;;  %v575_v11 = vsub.f32 %v491_v12, %v559_v35  ;;  %v560_v15 = vmul.f32 32.0, %v1293_v61 }
 0x270   :  { %v493_v14 = vpop.xlane.xlu0 %492  ;;  %v617_v47 = vpop.xlane.xlu1 %616  ;;  %742 = vadd.xlane.f32.xlu0 %v725_v56  ;;  %744 = vadd.xlane.f32.xlu1 %v726_v20  ;;  %v561_v20 = vmul.f32 32.0, %v1295_v26 }
 0x271   :  { %v665_v2 = vadd.f32 1e-08, %v649_v0  ;;  %v2090_v10 = vsub.f32 %v574_v39, %v617_v47  ;;  %v1297_v57 = vpop.eup %1296  ;;  %v576_v55 = vsub.f32 %v493_v14, %v560_v15  ;;  %v2469_v47 = vld [vmem:[#allocation12_spill] sm:$0xff] }
 0x272   :  { %v689_v36 = vmul.f32 0.6931472, %v1297_v57 }
 0x273   :  { %1308 = vlog2.f32 %v665_v2  ;;  %v654_v6 = vadd.f32 %v1759_v34, %v2090_v10  ;;  %v2468_v34 = vld [vmem:[#allocation14_spill] sm:$0xff] }
 0x274   :  { %v495_v3 = vpop.xlane.xlu0 %494  ;;  %v619_v38 = vpop.xlane.xlu1 %618  ;;  %746 = vadd.xlane.f32.xlu0 %v727_v27  ;;  %1310 = vlog2.f32 %v669_v62  ;;  %v714_v61 = vsub.f32 %v2469_v47, %v689_v36  ;;  %v2475_v47 = vld [vmem:[#allocation16_spill] sm:$0xff] }
 0x275   :  { %v1299_v8 = vpop.eup %1298  ;;  %v670_v37 = vadd.f32 1e-08, %v654_v6  ;;  %v2095_v28 = vsub.f32 %v575_v11, %v619_v38  ;;  %v577_v62 = vsub.f32 %v495_v3, %v561_v20 }
 0x276   :  { %v1301_v22 = vpop.eup %1300  ;;  %v685_v13 = vmul.f32 0.6931472, %v1299_v8  ;;  %v2470_v8 = vld [vmem:[#allocation7_spill] sm:$0xff] }
 0x277   :  { %1312 = vlog2.f32 %v670_v37  ;;  %v655_v42 = vadd.f32 %v1916_v52, %v2095_v28  ;;  %v1303_v5 = vpop.eup %1302  ;;  %v693_v39 = vmul.f32 0.6931472, %v1301_v22 }
 0x278   :  { %v497_v12 = vpop.xlane.xlu0 %496  ;;  %v621_v53 = vpop.xlane.xlu1 %620  ;;  %v712_v56 = vsub.f32 %v2468_v34, %v685_v13  ;;  %v562_v2 = vmul.f32 32.0, %v1303_v5  ;;  %v2472_v34 = vld [vmem:[#allocation17_spill] sm:$0xff] }
 0x279   :  { %v671_v29 = vadd.f32 1e-08, %v655_v42  ;;  %v2100_v30 = vsub.f32 %v576_v55, %v621_v53  ;;  %v1305_v0 = vpop.eup %1304  ;;  %v716_v15 = vsub.f32 %v2470_v8, %v693_v39 }
 0x27a   :  { %v728_v35 = vmul.f32 %v1875_v50, %v712_v56  ;;  %v1307_v14 = vpop.eup %1306  ;;  %v563_v6 = vmul.f32 32.0, %v1305_v0  ;;  %v730_v50 = vmul.f32 %v1858_v33, %v714_v61  ;;  %v578_v13 = vsub.f32 %v497_v12, %v562_v2  ;;  %v2473_v33 = vld [vmem:[#allocation13_spill] sm:$0xff]  ;;  %v2476_v2 = vld [vmem:[#allocation30_spill] sm:$0xff] }
 0x27b   :  { %1314 = vlog2.f32 %v671_v29  ;;  %v656_v52 = vadd.f32 %v1927_v54, %v2100_v30  ;;  %v691_v22 = vmul.f32 0.6931472, %v1307_v14  ;;  %v2471_v54 = vld [vmem:[#allocation28_spill] sm:$0xff]  ;;  %v732_v0 = vmul.f32 %v2473_v33, %v716_v15  ;;  %v2478_v15 = vld [vmem:[#allocation22_spill] sm:$0xff] }
 0x27c   :  { %v499_v27 = vpop.xlane.xlu0 %498  ;;  %v623_v57 = vpop.xlane.xlu1 %622  ;;  %748 = vadd.xlane.f32.xlu1 %v728_v35  ;;  %v2474_v35 = vld [vmem:[#allocation24_spill] sm:$0xff] }
 0x27d   :  { %v1309_v26 = vpop.eup %1308  ;;  %v672_v11 = vadd.f32 1e-08, %v656_v52  ;;  %v2106_v38 = vsub.f32 %v577_v62, %v623_v57  ;;  %v579_v36 = vsub.f32 %v499_v27, %v563_v6  ;;  %v715_v61 = vsub.f32 %v2475_v47, %v691_v22  ;;  %v2477_v57 = vld [vmem:[#allocation6_spill] sm:$0xff] }
 0x27e   :  { %v687_v37 = vmul.f32 0.6931472, %v1309_v26  ;;  %v1311_v3 = vpop.eup %1310 }
 0x27f   :  { %1316 = vlog2.f32 %v672_v11  ;;  %v657_v55 = vadd.f32 %v2471_v54, %v2106_v38  ;;  %v695_v62 = vmul.f32 0.6931472, %v1311_v3  ;;  %v2481_v54 = vld [vmem:[#allocation18_spill] sm:$0xff] }
 0x280   :  { %v627_v42 = vpop.xlane.xlu0 %626  ;;  %v625_v53 = vpop.xlane.xlu1 %624  ;;  %752 = vadd.xlane.f32.xlu1 %v730_v50  ;;  %v713_v56 = vsub.f32 %v2472_v34, %v687_v37  ;;  %v731_v50 = vmul.f32 %v2478_v15, %v715_v61  ;;  %v2479_v37 = vld [vmem:[#allocation26_spill] sm:$0xff]  ;;  %v2486_v61 = vld [vmem:[#allocation21_spill] sm:$0xff] }
 0x281   :  { %v1313_v5 = vpop.eup %1312  ;;  %v673_v20 = vadd.f32 1e-08, %v657_v55  ;;  %v2113_v29 = vsub.f32 %v579_v36, %v627_v42  ;;  %v2115_v39 = vsub.f32 %v578_v13, %v625_v53  ;;  %v2480_v13 = vld [vmem:[#allocation11_spill] sm:$0xff] }
 0x282   :  { %v729_v12 = vmul.f32 %v2474_v35, %v713_v56  ;;  %v697_v14 = vmul.f32 0.6931472, %v1313_v5  ;;  %v717_v3 = vsub.f32 %v2480_v13, %v695_v62  ;;  %v2482_v42 = vld [vmem:[#allocation19_spill] sm:$0xff]  ;;  %v2483_v56 = vld [vmem:[#allocation20_spill] sm:$0xff] }
 0x283   :  { %1318 = vlog2.f32 %v673_v20  ;;  %v659_v52 = vadd.f32 %v1957_v49, %v2113_v29  ;;  %v658_v27 = vadd.f32 %v2476_v2, %v2115_v39 }
 0x284   :  { %750 = vadd.xlane.f32.xlu0 %v729_v12  ;;  %756 = vadd.xlane.f32.xlu1 %v732_v0  ;;  %v718_v26 = vsub.f32 %v2477_v57, %v697_v14  ;;  %v733_v55 = vmul.f32 %v2481_v54, %v717_v3  ;;  %v2484_v0 = vld [vmem:[#allocation27_spill] sm:$0xff]  ;;  %v2485_v12 = vld [vmem:[#allocation29_spill] sm:$0xff]  ;;  %v791_v3 = vpop.xlane.xlu0 %790 }
 0x285   :  { %v1315_v11 = vpop.eup %1314  ;;  %v675_v6 = vadd.f32 1e-08, %v659_v52  ;;  %v674_v8 = vadd.f32 1e-08, %v658_v27  ;;  %v2487_v27 = vld [vmem:[#allocation31_spill] sm:$0xff] }
 0x286   :  { %v734_v22 = vmul.f32 %v2479_v37, %v718_v26  ;;  %v699_v36 = vmul.f32 0.6931472, %v1315_v11  ;;  %v2488_v11 = vld [vmem:[#allocation25_spill] sm:$0xff] }
 0x287   :  { %1320 = vlog2.f32 %v675_v6 }
 0x288   :  { %1322 = vlog2.f32 %v674_v8  ;;  %754 = vadd.xlane.f32.xlu0 %v731_v50  ;;  %760 = vadd.xlane.f32.xlu1 %v734_v22  ;;  %v719_v53 = vsub.f32 %v2482_v42, %v699_v36  ;;  %v2489_v8 = vld [vmem:[#allocation23_spill] sm:$0xff]  ;;  %v2490_v50 = vld [vmem:[#allocation32_spill] sm:$0xff]  ;;  %v2491_v22 = vld [vmem:[#allocation33_spill] sm:$0xff]  ;;  %v789_v36 = vpop.xlane.xlu1 %788  ;;  %v795_v54 = vpop.xlane.xlu0 %794  ;;  %v2143_v42 = vsub.f32 %v791_v3, %v1734_v43 }
 0x289   :  { %v1317_v49 = vpop.eup %1316 }
 0x28a   :  { %v701_v34 = vmul.f32 0.6931472, %v1317_v49  ;;  %v735_v35 = vmul.f32 %v2484_v0, %v719_v53  ;;  %v2140_v49 = vsub.f32 %v789_v36, %v1713_v46 }
 0x28c   :  { %758 = vadd.xlane.f32.xlu0 %v733_v55  ;;  %v720_v5 = vsub.f32 %v2483_v56, %v701_v34  ;;  %v793_v55 = vpop.xlane.xlu1 %792  ;;  %v836_v53 = vmul.f32 1.442695, %v2140_v49  ;;  %v838_v56 = vmul.f32 1.442695, %v2143_v42 }
 0x28d   :  { %v1319_v20 = vpop.eup %1318  ;;  %v2147_v34 = vsub.f32 %v793_v55, %v1704_v32 }
 0x28e   :  { %v703_v33 = vmul.f32 0.6931472, %v1319_v20  ;;  %v736_v47 = vmul.f32 %v2485_v12, %v720_v5  ;;  %v799_v5 = vpop.xlane.xlu0 %798  ;;  %1324 = vpow2.f32 %v836_v53 }
 0x28f   :  { %v840_v46 = vmul.f32 1.442695, %v2147_v34  ;;  %1326 = vpow2.f32 %v838_v56 }
 0x290   :  { %762 = vadd.xlane.f32.xlu0 %v735_v35  ;;  %764 = vadd.xlane.f32.xlu1 %v736_v47  ;;  %v721_v14 = vsub.f32 %v2486_v61, %v703_v33  ;;  %v797_v20 = vpop.xlane.xlu1 %796  ;;  %v2151_v33 = vsub.f32 %v795_v54, %v1715_v41 }
 0x291   :  { %v1321_v62 = vpop.eup %1320  ;;  %1328 = vpow2.f32 %v840_v46  ;;  %v2156_v32 = vsub.f32 %v797_v20, %v1781_v19 }
 0x292   :  { %v1323_v52 = vpop.eup %1322  ;;  %v707_v2 = vmul.f32 0.6931472, %v1321_v62  ;;  %v737_v57 = vmul.f32 %v2487_v27, %v721_v14  ;;  %v842_v0 = vmul.f32 1.442695, %v2151_v33  ;;  %v803_v43 = vpop.xlane.xlu0 %802  ;;  %v2164_v27 = vsub.f32 %v799_v5, %v1819_v23 }
 0x293   :  { %v705_v26 = vmul.f32 0.6931472, %v1323_v52  ;;  %v844_v62 = vmul.f32 1.442695, %v2156_v32 }
 0x294   :  { %766 = vadd.xlane.f32.xlu0 %v737_v57  ;;  %v723_v6 = vsub.f32 %v2488_v11, %v707_v2  ;;  %v801_v35 = vpop.xlane.xlu1 %800  ;;  %1330 = vpow2.f32 %v842_v0 }
 0x295   :  { %v722_v15 = vsub.f32 %v2489_v8, %v705_v26  ;;  %v2160_v41 = vsub.f32 %v801_v35, %v1746_v44  ;;  %1332 = vpow2.f32 %v844_v62 }
 0x296   :  { %v739_v37 = vmul.f32 %v2490_v50, %v723_v6  ;;  %v807_v47 = vpop.xlane.xlu0 %806  ;;  %v2174_v50 = vsub.f32 %v803_v43, %v1768_v40 }
 0x297   :  { %v738_v13 = vmul.f32 %v2491_v22, %v722_v15  ;;  %v848_v19 = vmul.f32 1.442695, %v2160_v41 }
 0x298   :  { %770 = vadd.xlane.f32.xlu0 %v739_v37  ;;  %v1325_v12 = vpop.eup %1324  ;;  %v805_v61 = vpop.xlane.xlu1 %804 }
 0x299   :  { %768 = vadd.xlane.f32.xlu1 %v738_v13  ;;  %v1327_v14 = vpop.eup %1326  ;;  %v868_v52 = vadd.f32 %v1325_v12, %v2036_v16  ;;  %v2169_v26 = vsub.f32 %v805_v61, %v1721_v9  ;;  %v846_v16 = vmul.f32 1.442695, %v2164_v27  ;;  %1334 = vpow2.f32 %v848_v19 }
 0x29a   :  { %v869_v57 = vadd.f32 %v1327_v14, %v2047_v63  ;;  %v811_v11 = vpop.xlane.xlu0 %810  ;;  %v2183_v13 = vsub.f32 %v807_v47, %v1753_v21 }
 0x29b   :  { %v1329_v2 = vpop.eup %1328  ;;  %v884_v8 = vadd.f32 1e-08, %v868_v52  ;;  %v852_v63 = vmul.f32 1.442695, %v2169_v26  ;;  %v2186_v40 = vsub.f32 %v811_v11, %v1732_v60 }
 0x29c   :  { %v809_v6 = vpop.xlane.xlu1 %808  ;;  %v870_v44 = vadd.f32 %v1329_v2, %v2029_v59  ;;  %v885_v23 = vadd.f32 1e-08, %v869_v57  ;;  %v850_v59 = vmul.f32 1.442695, %v2174_v50 }
 0x29d   :  { %v2178_v37 = vsub.f32 %v809_v6, %v1702_v31  ;;  %1336 = vlog2.f32 %v884_v8  ;;  %v858_v21 = vmul.f32 1.442695, %v2186_v40 }
 0x29e   :  { %v1331_v15 = vpop.eup %1330  ;;  %v886_v9 = vadd.f32 1e-08, %v870_v44  ;;  %1338 = vpow2.f32 %v846_v16  ;;  %v815_v3 = vpop.xlane.xlu0 %814 }
 0x29f   :  { %v871_v22 = vadd.f32 %v1331_v15, %v2038_v4  ;;  %1340 = vlog2.f32 %v885_v23  ;;  %v856_v36 = vmul.f32 1.442695, %v2178_v37  ;;  %v1333_v55 = vpop.eup %1332  ;;  %v854_v4 = vmul.f32 1.442695, %v2183_v13 }
 0x2a0   :  { %1342 = vpow2.f32 %v852_v63  ;;  %v813_v31 = vpop.xlane.xlu1 %812  ;;  %v872_v60 = vadd.f32 %v1333_v55, %v2063_v17  ;;  %v2196_v46 = vsub.f32 %v815_v3, %v1867_v48  ;;  %v965_v55 = vld [vmem:[%s2368_s4 + $0x8] sm:$0xff] }
 0x2a1   :  { %1344 = vlog2.f32 %v886_v9  ;;  %v887_v54 = vadd.f32 1e-08, %v871_v22  ;;  %v2191_v53 = vsub.f32 %v813_v31, %v1850_v51 }
 0x2a2   :  { %1346 = vpow2.f32 %v850_v59  ;;  %v819_v56 = vpop.xlane.xlu0 %818  ;;  %v888_v47 = vadd.f32 1e-08, %v872_v60  ;;  %v862_v52 = vmul.f32 1.442695, %v2196_v46 }
 0x2a3   :  { %1348 = vpow2.f32 %v856_v36  ;;  %v1335_v5 = vpop.eup %1334  ;;  %v860_v0 = vmul.f32 1.442695, %v2191_v53  ;;  %v2200_v51 = vsub.f32 %v819_v56, %v1787_v18 }
 0x2a4   :  { %1350 = vlog2.f32 %v887_v54  ;;  %v817_v12 = vpop.xlane.xlu1 %816  ;;  %v874_v61 = vadd.f32 %v1335_v5, %v2057_v58 }
 0x2a5   :  { %1352 = vpow2.f32 %v854_v4  ;;  %v866_v57 = vmul.f32 1.442695, %v2200_v51  ;;  %v2207_v19 = vsub.f32 %v817_v12, %v1761_v7 }
 0x2a6   :  { %1354 = vpow2.f32 %v858_v21  ;;  %v890_v18 = vadd.f32 1e-08, %v874_v61 }
 0x2a7   :  { %v1337_v20 = vpop.eup %1336  ;;  %1356 = vpow2.f32 %v860_v0  ;;  %v864_v9 = vmul.f32 1.442695, %v2207_v19  ;;  %v1389_v0 = vld [vmem:[%s2366_s2 + $0x8] sm:$0xff] }
 0x2a8   :  { %v1339_v43 = vpop.eup %1338  ;;  %v901_v17 = vmul.f32 0.6931472, %v1337_v20  ;;  %1358 = vlog2.f32 %v888_v47  ;;  %vm373_vm1 = vcmp.ge.s32.totalorder %v1389_v0, 0 }
 0x2a9   :  { %v1341_v35 = vpop.eup %1340  ;;  %v873_v48 = vadd.f32 %v1339_v43, %v2082_v25  ;;  %1360 = vpow2.f32 %v862_v52  ;;  %v964_v25 = vld [vmem:[%s2368_s4] sm:$0xff] }
 0x2aa   :  { %v1343_v14 = vpop.eup %1342  ;;  %v932_v58 = vsub.f32 %v2140_v49, %v901_v17  ;;  %v903_v8 = vmul.f32 0.6931472, %v1341_v35  ;;  %1362 = vpow2.f32 %v866_v57  ;;  %v1390_v17 = vld [vmem:[%s2366_s2 + $0x10] sm:$0xff] }
 0x2ab   :  { %v1345_v62 = vpop.eup %1344  ;;  %v876_v11 = vadd.f32 %v1343_v14, %v2055_v24  ;;  %v889_v23 = vadd.f32 1e-08, %v873_v48  ;;  %1364 = vlog2.f32 %v890_v18  ;;  %vm374_vm2 = vcmp.ge.s32.totalorder %v1390_v17, 0 }
 0x2ac   :  { %v1347_v2 = vpop.eup %1346  ;;  %v905_v44 = vmul.f32 0.6931472, %v1345_v62  ;;  %v933_v36 = vsub.f32 %v2143_v42, %v903_v8  ;;  %v967_v62 = vld [vmem:[%s2368_s4 + $0x18] sm:$0xff] }
 0x2ad   :  { %v1349_v6 = vpop.eup %1348  ;;  %v875_v7 = vadd.f32 %v1347_v2, %v2073_v1  ;;  %v892_v22 = vadd.f32 1e-08, %v876_v11  ;;  %v1388_v1 = vld [vmem:[%s2366_s2] sm:$0xff]  ;;  %1366 = vlog2.f32 %v889_v23 }
 0x2ae   :  { %v1351_v15 = vpop.eup %1350  ;;  %v878_v49 = vadd.f32 %v1349_v6, %v2090_v10  ;;  %v934_v31 = vsub.f32 %v2147_v34, %v905_v44  ;;  %vm372_vm0 = vcmp.ge.s32.totalorder %v1388_v1, 0  ;;  %v966_v10 = vld [vmem:[%s2368_s4 + $0x10] sm:$0xff]  ;;  %1368 = vpow2.f32 %v864_v9 }
 0x2af   :  { %v1353_v63 = vpop.eup %1352  ;;  %v907_v54 = vmul.f32 0.6931472, %v1351_v15  ;;  %v891_v42 = vadd.f32 1e-08, %v875_v7  ;;  %1370 = vlog2.f32 %v892_v22 }
 0x2b0   :  { %v1355_v59 = vpop.eup %1354  ;;  %v877_v34 = vadd.f32 %v1353_v63, %v2071_v45  ;;  %v894_v43 = vadd.f32 1e-08, %v878_v49 }
 0x2b1   :  { %v1357_v20 = vpop.eup %1356  ;;  %v879_v35 = vadd.f32 %v1355_v59, %v2095_v28  ;;  %v935_v45 = vsub.f32 %v2151_v33, %v907_v54  ;;  %1372 = vlog2.f32 %v891_v42 }
 0x2b2   :  { %v1359_v14 = vpop.eup %1358  ;;  %v893_v28 = vadd.f32 1e-08, %v877_v34  ;;  %v880_v18 = vadd.f32 %v1357_v20, %v2100_v30  ;;  %1374 = vlog2.f32 %v894_v43 }
 0x2b3   :  { %v1361_v33 = vpop.eup %1360  ;;  %v895_v11 = vadd.f32 1e-08, %v879_v35  ;;  %v909_v15 = vmul.f32 0.6931472, %v1359_v14  ;;  %v1392_v35 = vld [vmem:[%s2366_s2 + $0x20] sm:$0xff] }
 0x2b4   :  { %v1363_v6 = vpop.eup %1362  ;;  %1376 = vlog2.f32 %v893_v28  ;;  %v896_v9 = vadd.f32 1e-08, %v880_v18  ;;  %vm376_vm5 = vcmp.ge.s32.totalorder %v1392_v35, 0 }
 0x2b5   :  { %1378 = vlog2.f32 %v895_v11  ;;  %v972_v11 = vld [vmem:[%s2368_s4 + $0x40] sm:$0xff] }
 0x2b6   :  { %1380 = vlog2.f32 %v896_v9  ;;  %v1394_v9 = vld [vmem:[%s2366_s2 + $0x28] sm:$0xff] }
 0x2b7   :  { %vm377_vm7 = vcmp.ge.s32.totalorder %v1394_v9, 0 }
 0x2f9   :  { %v741_v16 = vpop.xlane.xlu1 %740 }
 0x2fa   :  { %v948_v24 = vsub.f32 %v741_v16, %v932_v58  ;;  %v1391_v16 = vld [vmem:[%s2366_s2 + $0x18] sm:$0xff] }
 0x2fb   :  { %vm375_vm4 = vcmp.ge.s32.totalorder %v1391_v16, 0 }
 0x2fc   :  { %v980_v3 = vmul.f32 %v964_v25, %v948_v24  ;;  %v1365_v25 = vpop.eup %1364  ;;  %v881_v24 = vadd.f32 %v1361_v33, %v2106_v38  ;;  %v883_v38 = vadd.f32 %v1363_v6, %v2113_v29  ;;  %v970_v29 = vld [vmem:[%s2368_s4 + $0x30] sm:$0xff]  ;;  %v969_v33 = vld [vmem:[%s2368_s4 + $0x28] sm:$0xff] }
 0x2fd   :  { %v743_v4 = vpop.xlane.xlu0 %742  ;;  %v745_v21 = vpop.xlane.xlu1 %744  ;;  %v913_v54 = vmul.f32 0.6931472, %v1365_v25 }
 0x2fe   :  { %v996_v56 = vmul.f32 -1.4285715, %v980_v3  ;;  %v949_v60 = vsub.f32 %v743_v4, %v933_v36  ;;  %v950_v5 = vsub.f32 %v745_v21, %v934_v31  ;;  %v1367_v22 = vpop.eup %1366  ;;  %v936_v31 = vsub.f32 %v2156_v32, %v909_v15  ;;  %v968_v4 = vld [vmem:[%s2368_s4 + $0x20] sm:$0xff] }
 0x2ff   :  { %v1369_v59 = vpop.eup %1368  ;;  %v897_v34 = vadd.f32 1e-08, %v881_v24  ;;  %v938_v20 = vsub.f32 %v2160_v41, %v913_v54  ;;  %v971_v24 = vld [vmem:[%s2368_s4 + $0x38] sm:$0xff] }
 0x300   :  { %v1012_v12 = vsel %vm372_vm0, %v996_v56, 0.0  ;;  %v981_v47 = vmul.f32 %v965_v55, %v949_v60  ;;  %v982_v61 = vmul.f32 %v966_v10, %v950_v5  ;;  %v1371_v1 = vpop.eup %1370  ;;  %v911_v60 = vmul.f32 0.6931472, %v1367_v22 }
 0x301   :  { %v747_v52 = vpop.xlane.xlu0 %746  ;;  %v1029_v23 = vsel %vm1028_vm3, %v1012_v12, 0.0  ;;  %v1373_v56 = vpop.eup %1372  ;;  %v882_v5 = vadd.f32 %v1369_v59, %v2115_v39  ;;  %v917_v0 = vmul.f32 0.6931472, %v1371_v1  ;;  %1382 = vlog2.f32 %v897_v34  ;;  %v1397_v34 = vld [vmem:[%s2366_s2 + $0x50] sm:$0xff] }
 0x302   :  { %v997_v48 = vmul.f32 -1.4285715, %v981_v47  ;;  %v998_v2 = vmul.f32 -1.4285715, %v982_v61  ;;  %v951_v57 = vsub.f32 %v747_v52, %v935_v45  ;;  %v1375_v43 = vpop.eup %1374  ;;  %v899_v47 = vadd.f32 1e-08, %v883_v38 }
 0x303   :  { %v1377_v39 = vpop.eup %1376  ;;  %v937_v14 = vsub.f32 %v2164_v27, %v911_v60  ;;  %v915_v41 = vmul.f32 0.6931472, %v1373_v56  ;;  %v898_v17 = vadd.f32 1e-08, %v882_v5  ;;  %v940_v28 = vsub.f32 %v2169_v26, %v917_v0  ;;  %v973_v60 = vld [vmem:[%s2368_s4 + $0x48] sm:$0xff] }
 0x304   :  { %v1013_v58 = vsel %vm373_vm1, %v997_v48, 0.0  ;;  %v1014_v8 = vsel %vm374_vm2, %v998_v2, 0.0  ;;  %v983_v44 = vmul.f32 %v967_v62, %v951_v57  ;;  %v921_v48 = vmul.f32 0.6931472, %v1375_v43  ;;  %v1379_v2 = vpop.eup %1378  ;;  %v1393_v57 = vld [vmem:[%s2366_s2 + $0x30] sm:$0xff] }
 0x305   :  { %v1030_v7 = vsel %vm1028_vm3, %v1013_v58, 0.0  ;;  %v1032_v49 = vsel %vm1028_vm3, %v1014_v8, 0.0  ;;  %vm378_vm6 = vcmp.ge.s32.totalorder %v1393_v57, 0  ;;  %1384 = vlog2.f32 %v899_v47  ;;  %v1381_v16 = vpop.eup %1380 }
 0x306   :  { %v1031_v30 = vadd.f32 %v1030_v7, %v1029_v23  ;;  %v999_v63 = vmul.f32 -1.4285715, %v983_v44  ;;  %v939_v15 = vsub.f32 %v2174_v50, %v915_v41  ;;  %v919_v25 = vmul.f32 0.6931472, %v1377_v39  ;;  %v974_v50 = vld [vmem:[%s2368_s4 + $0x50] sm:$0xff] }
 0x307   :  { %1386 = vlog2.f32 %v898_v17  ;;  %v923_v59 = vmul.f32 0.6931472, %v1379_v2  ;;  %v925_v1 = vmul.f32 0.6931472, %v1381_v16  ;;  %vm382_vm10 = vcmp.ge.s32.totalorder %v1397_v34, 0 }
 0x308   :  { %v1033_v3 = vadd.f32 %v1032_v49, %v1031_v30  ;;  %v1015_v36 = vsel %vm375_vm4, %v999_v63, 0.0  ;;  %v942_v63 = vsub.f32 %v2178_v37, %v921_v48  ;;  %v1395_v37 = vld [vmem:[%s2366_s2 + $0x40] sm:$0xff] }
 0x309   :  { %v1034_v55 = vsel %vm1028_vm3, %v1015_v36, 0.0  ;;  %v749_v10 = vpop.xlane.xlu1 %748  ;;  %vm380_vm8 = vcmp.ge.s32.totalorder %v1395_v37, 0  ;;  %v944_v47 = vsub.f32 %v2191_v53, %v925_v1 }
 0x30a   :  { %v1035_v21 = vadd.f32 %v1034_v55, %v1033_v3  ;;  %v952_v42 = vsub.f32 %v749_v10, %v936_v31 }
 0x30b   :  { %v1383_v55 = vpop.eup %1382 }
 0x30c   :  { %v984_v32 = vmul.f32 %v968_v4, %v952_v42  ;;  %v1396_v42 = vld [vmem:[%s2366_s2 + $0x38] sm:$0xff] }
 0x30d   :  { %v753_v12 = vpop.xlane.xlu1 %752  ;;  %vm379_vm9 = vcmp.ge.s32.totalorder %v1396_v42, 0 }
 0x30e   :  { %v1000_v61 = vmul.f32 -1.4285715, %v984_v32  ;;  %v954_v45 = vsub.f32 %v753_v12, %v938_v20  ;;  %v943_v32 = vsub.f32 %v2186_v40, %v923_v59  ;;  %v1398_v40 = vld [vmem:[%s2366_s2 + $0x48] sm:$0xff] }
 0x30f   :  { %v1385_v35 = vpop.eup %1384  ;;  %vm381_vm11 = vcmp.ge.s32.totalorder %v1398_v40, 0 }
 0x310   :  { %v1016_v62 = vsel %vm376_vm5, %v1000_v61, 0.0  ;;  %v986_v52 = vmul.f32 %v970_v29, %v954_v45  ;;  %v927_v61 = vmul.f32 0.6931472, %v1383_v55 }
 0x311   :  { %v1036_v18 = vsel %vm1028_vm3, %v1016_v62, 0.0  ;;  %v751_v27 = vpop.xlane.xlu0 %750  ;;  %v757_v6 = vpop.xlane.xlu1 %756 }
 0x312   :  { %v1037_v26 = vadd.f32 %v1036_v18, %v1035_v21  ;;  %v1002_v58 = vmul.f32 -1.4285715, %v986_v52  ;;  %v953_v8 = vsub.f32 %v751_v27, %v937_v14  ;;  %v956_v44 = vsub.f32 %v757_v6, %v940_v28  ;;  %v1387_v17 = vpop.eup %1386  ;;  %v975_v52 = vld [vmem:[%s2368_s4 + $0x58] sm:$0xff]  ;;  %v976_v28 = vld [vmem:[%s2368_s4 + $0x60] sm:$0xff] }
 0x313   :  { %v941_v21 = vsub.f32 %v2183_v13, %v919_v25  ;;  %v931_v6 = vmul.f32 0.6931472, %v1385_v35  ;;  %v1400_v25 = vld [vmem:[%s2366_s2 + $0x60] sm:$0xff] }
 0x314   :  { %v1018_v23 = vsel %vm378_vm6, %v1002_v58, 0.0  ;;  %v985_v7 = vmul.f32 %v969_v33, %v953_v8  ;;  %v988_v30 = vmul.f32 %v972_v11, %v956_v44  ;;  %v945_v11 = vsub.f32 %v2196_v46, %v927_v61  ;;  %v977_v46 = vld [vmem:[%s2368_s4 + $0x68] sm:$0xff] }
 0x315   :  { %v755_v22 = vpop.xlane.xlu0 %754  ;;  %v761_v49 = vpop.xlane.xlu1 %760  ;;  %v1040_v29 = vsel %vm1028_vm3, %v1018_v23, 0.0  ;;  %vm384_vm13 = vcmp.ge.s32.totalorder %v1400_v25, 0 }
 0x316   :  { %v1001_v3 = vmul.f32 -1.4285715, %v985_v7  ;;  %v955_v36 = vsub.f32 %v755_v22, %v939_v15  ;;  %v958_v31 = vsub.f32 %v761_v49, %v942_v63  ;;  %v1004_v54 = vmul.f32 -1.4285715, %v988_v30  ;;  %v1399_v15 = vld [vmem:[%s2366_s2 + $0x58] sm:$0xff] }
 0x317   :  { %vm383_vm12 = vcmp.ge.s32.totalorder %v1399_v15, 0  ;;  %v929_v7 = vmul.f32 0.6931472, %v1387_v17 }
 0x318   :  { %v1017_v4 = vsel %vm377_vm7, %v1001_v3, 0.0  ;;  %v987_v10 = vmul.f32 %v971_v24, %v955_v36  ;;  %v990_v38 = vmul.f32 %v974_v50, %v958_v31  ;;  %v1020_v12 = vsel %vm380_vm8, %v1004_v54, 0.0  ;;  %v1401_v31 = vld [vmem:[%s2366_s2 + $0x68] sm:$0xff]  ;;  %v979_v54 = vld [vmem:[%s2368_s4 + $0x78] sm:$0xff] }
 0x319   :  { %v1038_v56 = vsel %vm1028_vm3, %v1017_v4, 0.0  ;;  %v759_v5 = vpop.xlane.xlu0 %758  ;;  %v1044_v27 = vsel %vm1028_vm3, %v1020_v12, 0.0  ;;  %v947_v50 = vsub.f32 %v2200_v51, %v931_v6  ;;  %vm385_vm14 = vcmp.ge.s32.totalorder %v1401_v31, 0 }
 0x31a   :  { %v1039_v13 = vadd.f32 %v1038_v56, %v1037_v26  ;;  %v1003_v20 = vmul.f32 -1.4285715, %v987_v10  ;;  %v1006_v0 = vmul.f32 -1.4285715, %v990_v38  ;;  %v957_v43 = vsub.f32 %v759_v5, %v941_v21  ;;  %v978_v38 = vld [vmem:[%s2368_s4 + $0x70] sm:$0xff] }
 0x31b   :  { %v946_v55 = vsub.f32 %v2207_v19, %v929_v7  ;;  %v1402_v19 = vld [vmem:[%s2366_s2 + $0x78] sm:$0xff] }
 0x31c   :  { %v1019_v45 = vsel %vm379_vm9, %v1003_v20, 0.0  ;;  %v1041_v39 = vadd.f32 %v1040_v29, %v1039_v13  ;;  %v1022_v14 = vsel %vm382_vm10, %v1006_v0, 0.0  ;;  %v989_v41 = vmul.f32 %v973_v60, %v957_v43  ;;  %v1403_v20 = vld [vmem:[%s2366_s2 + $0x70] sm:$0xff]  ;;  %s1430_s2 = smov [#allocation2]  }
 0x31d   :  { %v1042_v62 = vsel %vm1028_vm3, %v1019_v45, 0.0  ;;  %v763_v53 = vpop.xlane.xlu0 %762  ;;  %v765_v48 = vpop.xlane.xlu1 %764  ;;  %v1048_v22 = vsel %vm1028_vm3, %v1022_v14, 0.0  ;;  %vm387_vm15 = vcmp.ge.s32.totalorder %v1402_v19, 0  ;;  %vm386_vm0 = vcmp.ge.s32.totalorder %v1403_v20, 0  ;;  %s1077_s4 = sshll.u32 %s1430_s2, 4  ;;  %s1078_s4 = int_to_ptr.vmem [resolvable:$true] %s1077_s4 }
 0x31e   :  { %v1043_v2 = vadd.f32 %v1042_v62, %v1041_v39  ;;  %v1005_v57 = vmul.f32 -1.4285715, %v989_v41  ;;  %v959_v18 = vsub.f32 %v763_v53, %v943_v32  ;;  %v960_v33 = vsub.f32 %v765_v48, %v944_v47  ;;  %s1404_s15 = scalar_lea.vmem %s1078_s4, 128  ;;  %p1409_p1 = scmp.lt.s32.totalorder %s1078_s4, %s1078_s4 }
 0x31f   :  { %p1405_p0 = scmp.ne.s32.totalorder %s1078_s4, %s1404_s15  ;;  %p1410_p2 = scmp.lt.s32.totalorder %s1404_s15, %s1404_s15 }
 0x320   :  { %v1021_v26 = vsel %vm381_vm11, %v1005_v57, 0.0  ;;  %v1045_v58 = vadd.f32 %v1044_v27, %v1043_v2  ;;  %v991_v8 = vmul.f32 %v975_v52, %v959_v18  ;;  %v992_v44 = vmul.f32 %v976_v28, %v960_v33 }
 0x321   :  { %v1046_v16 = vsel %vm1028_vm3, %v1021_v26, 0.0  ;;  %v767_v23 = vpop.xlane.xlu0 %766  ;;  %p1411_p3 = por %p1410_p2, %p1409_p1 }
 0x322   :  { %v1047_v30 = vadd.f32 %v1046_v16, %v1045_v58  ;;  %v1007_v63 = vmul.f32 -1.4285715, %v991_v8  ;;  %v1008_v9 = vmul.f32 -1.4285715, %v992_v44  ;;  %v961_v24 = vsub.f32 %v767_v23, %v945_v11 }
 0x323   :  { %p1412_p4 = pnand %p1411_p3, %p1405_p0 }
 0x324   :  { %v1023_v49 = vsel %vm383_vm12, %v1007_v63, 0.0  ;;  %v1049_v59 = vadd.f32 %v1048_v22, %v1047_v30  ;;  %v1024_v3 = vsel %vm384_vm13, %v1008_v9, 0.0  ;;  %v993_v36 = vmul.f32 %v977_v46, %v961_v24 }
 0x325   :  { %v1050_v37 = vsel %vm1028_vm3, %v1023_v49, 0.0  ;;  %v771_v1 = vpop.xlane.xlu0 %770  ;;  %v1052_v42 = vsel %vm1028_vm3, %v1024_v3, 0.0 }
 0x326   :  { %v1051_v4 = vadd.f32 %v1050_v37, %v1049_v59  ;;  %v1009_v51 = vmul.f32 -1.4285715, %v993_v36  ;;  %v963_v10 = vsub.f32 %v771_v1, %v947_v50  ;;  %v769_v21 = vpop.xlane.xlu1 %768 }
 0x327   :  { %v962_v34 = vsub.f32 %v769_v21, %v946_v55 }
 0x328   :  { %v1053_v56 = vadd.f32 %v1052_v42, %v1051_v4  ;;  %v1025_v60 = vsel %vm385_vm14, %v1009_v51, 0.0  ;;  %v995_v5 = vmul.f32 %v979_v54, %v963_v10 }
 0x329   :  { %v1054_v32 = vsel %vm1028_vm3, %v1025_v60, 0.0  ;;  %v994_v13 = vmul.f32 %v978_v38, %v962_v34 }
 0x32a   :  { %v1011_v0 = vmul.f32 -1.4285715, %v995_v5  ;;  %v1055_v43 = vadd.f32 %v1054_v32, %v1053_v56 }
 0x32b   :  { %v1010_v35 = vmul.f32 -1.4285715, %v994_v13 }
 0x32c   :  { %v1027_v12 = vsel %vm387_vm15, %v1011_v0, 0.0 }
 0x32d   :  { %v1026_v29 = vsel %vm386_vm0, %v1010_v35, 0.0  ;;  %v1058_v45 = vsel %vm1028_vm3, %v1027_v12, 0.0 }
 0x32e   :  { %v1056_v47 = vsel %vm1028_vm3, %v1026_v29, 0.0 }
 0x32f   :  { %v1057_v61 = vadd.f32 %v1056_v47, %v1055_v43 }
 0x331   :  { %v1059_v39 = vadd.f32 %v1058_v45, %v1057_v61 }
 0x333   :  { %1060 = vadd.xlane.f32.xlu1 %v1059_v39 }
 0x3c0   :  { %v1061_v14 = vpop.xlane.xlu1 %1060 }
 0x3c1   :  { %v1062_v41 = vrot.slane %v1061_v14, 4 }
 0x3c3   :  { %v1063_v17 = vadd.f32 %v1062_v41, %v1061_v14 }
 0x3c5   :  { %v1064_v40 = vrot.slane %v1063_v17, 2 }
 0x3c7   :  { %v1065_v62 = vadd.f32 %v1064_v40, %v1063_v17 }
 0x3c9   :  { %v1066_v52 = vrot.slane %v1065_v62, 1 }
 0x3cb   :  { %v1067_v53 = vadd.f32 %v1066_v52, %v1065_v62 }
 0x3cd   :  { %1213 = vpush %v1067_v53 }
 0x3fe   :  { %s1214_s14 = spop %1213 }
 0x3ff   :  { %v1069_v28 = vstv %s1214_s14 }
 0x400   :  { %1070 = vst [vmem:[#allocation2] sm:$0xff] %v1069_v28 }
 0x401   :  { %1415 = shalt.err (!%p1412_p4)
}
 0x402   :  { %s1416_s18 = scalar_lea.hbm %s2369_s5, 128 }
 0x403   :  { %p1417_p5 = scmp.ne.s32.totalorder %s2369_s5, %s1416_s18  ;;  %p1420_p6 = scmp.lt.u32.totalorder %s1416_s18, %s2369_s5 }
 0x405   :  { %p1422_p7 = pnand %p1420_p6, %p1417_p5 }
 0x407   :  { %1425 = shalt.err (!%p1422_p7)
}
 0x408   :  { %1080 = dma.vmem_to_hbm [thread:$0]  %s1078_s4, 128, %s2369_s5, [#allocation3]  }
 0x409   :  { %1426 = dma.done.wait [#allocation3], 128  }
 0x40a   :  { %1427 = vsyncadd [#allocation3], 4294967168 }
 0x40b   :  { %1084 = vsyncpa [#allocation3], 1 }

</bundles_post_ra>
